<compile_context>
chip_gen: v6e
topology: v6e:2x2x1
jax: 0.10.0
libtpu: 0.0.40
codegen_flags: <defaults>
</compile_context>

<pallas_src>
import math
from functools import partial

import jax
import jax.numpy as jnp
import numpy as np
from jax import lax
from jax.experimental import pallas as pl
from jax.experimental.pallas import tpu as pltpu  # noqa: F401  (TPU backend)

# ----------------------------- model config (small) -----------------------------
OUTPUT_DIM = 50      # outputDim  (target vocab size)
HIDDEN_DIM = 32      # hiddenDim  (d_model)
NUM_LAYERS = 2       # numLayers
NUM_HEADS = 4        # numHeads
PFF_HIDDEN = 64      # pffHiddenDim
HEAD_DIM = HIDDEN_DIM // NUM_HEADS
BATCH = 2
TRG_LEN = 8
SRC_LEN = 10
NUM_POS_EMBEDDINGS = 1000
LN_EPS = 1e-5
NEG_INF = -1e10
PADDED_OUT = 128               # lane-dense final output; sliced to OUTPUT_DIM outside
PROJ = 2 * HIDDEN_DIM          # width of the fused [K|V] projection (and padded Q)


# ----------------------------- in-kernel helpers ---------------------------------
def _layer_norm(x, g, b):
    mu = jnp.mean(x, axis=-1, keepdims=True)
    var = jnp.mean((x - mu) ** 2, axis=-1, keepdims=True)
    return (x - mu) * lax.rsqrt(var + LN_EPS) * g + b


def _fused_mha(xq, xkv, bias, selk, selv, seg, wq, bq, wkv, bkv, wo, bo):
    """All-heads-in-one-dot multi-head attention (no per-head loop / slicing).

    xq: (Nq, D); xkv: (Nk, D)
    wq: (D, 2D) = [Wq / sqrt(hd) | 0],  bq: (1, 2D)
    wkv: (D, 2D) = [Wk | Wv],          bkv: (1, 2D)
    selk/selv: (H*Nk, 2D) 0/1 head-block selectors (K-half / V-half)
    seg: (H*Nk, H*Nk) block-ones matrix (per-head softmax segment sums)
    bias: (Nq, H*Nk) additive mask, already tiled across heads
    wo: (2D, D) = [0 ; Wo],  bo: (1, D)
    """
    q = jnp.dot(xq, wq, preferred_element_type=jnp.float32) + bq        # (Nq, 2D)
    kv = jnp.dot(xkv, wkv, preferred_element_type=jnp.float32) + bkv    # (Nk, 2D)

    kv_rep = jnp.concatenate([kv] * NUM_HEADS, axis=0)                  # (H*Nk, 2D)
    k_exp = kv_rep * selk                                               # block-diag K
    v_exp = kv_rep * selv                                               # block-diag V

    # all-heads energy in a single MXU pass (contraction over the 2D axis;
    # the zero V-half of q and zeroed columns of k_exp make it per-head exact)
    energy = lax.dot_general(q, k_exp, (((1,), (1,)), ((), ())),
                             preferred_element_type=jnp.float32) + bias  # (Nq, H*Nk)

    # one row-wide max across all heads (per-row constant cancels in per-head softmax)
    energy = energy - jnp.max(energy, axis=-1, keepdims=True)
    p = jnp.exp(energy)                                                  # masked lanes -> 0
    denom = jnp.dot(p, seg, preferred_element_type=jnp.float32)          # per-head sums, broadcast
    attn = p * pl.reciprocal(denom, approx=True)

    z = jnp.dot(attn, v_exp, preferred_element_type=jnp.float32)         # (Nq, 2D): head-concat in V-half
    return jnp.dot(z, wo, preferred_element_type=jnp.float32) + bo       # (Nq, D)


# ----------------------------- fused decoder kernel ------------------------------
def decoder_kernel(x_ref, src_ref, tbias_ref, sbias_ref,
                   selk_t_ref, selv_t_ref, seg_t_ref,
                   selk_s_ref, selv_s_ref, seg_s_ref,
                   sa_wq, sa_bq, sa_wkv, sa_bkv, sa_wo, sa_bo,
                   ln1_g, ln1_b,
                   ea_wq, ea_bq, ea_wkv, ea_bkv, ea_wo, ea_bo,
                   ln2_g, ln2_b,
                   ff_w1, ff_b1, ff_w2, ff_b2,
                   ln3_g, ln3_b,
                   wout_ref, bout_ref,
                   out_ref):
    x = x_ref[...]            # (B*L, D)  already = emb*sqrt(D) + PE
    src = src_ref[...]        # (B*Ls, D)
    tbias = tbias_ref[...]    # (B*L, H*B*L)
    sbias = sbias_ref[...]    # (B*L, H*B*Ls)
    selk_t = selk_t_ref[...]
    selv_t = selv_t_ref[...]
    seg_t = seg_t_ref[...]
    selk_s = selk_s_ref[...]
    selv_s = selv_s_ref[...]
    seg_s = seg_s_ref[...]

    # decoder layers, unrolled (layer params stacked on a leading axis)
    for l in range(NUM_LAYERS):
        # masked multi-head self-attention + residual + LayerNorm
        sa = _fused_mha(x, x, tbias, selk_t, selv_t, seg_t,
                        sa_wq[l], sa_bq[l], sa_wkv[l], sa_bkv[l], sa_wo[l], sa_bo[l])
        x = _layer_norm(x + sa, ln1_g[l], ln1_b[l])

        # encoder-decoder attention + residual + LayerNorm
        ea = _fused_mha(x, src, sbias, selk_s, selv_s, seg_s,
                        ea_wq[l], ea_bq[l], ea_wkv[l], ea_bkv[l], ea_wo[l], ea_bo[l])
        x = _layer_norm(x + ea, ln2_g[l], ln2_b[l])

        # position-wise feedforward (ReLU) + residual + LayerNorm
        h = jnp.maximum(
            jnp.dot(x, ff_w1[l], preferred_element_type=jnp.float32) + ff_b1[l], 0.0)
        ff = jnp.dot(h, ff_w2[l], preferred_element_type=jnp.float32) + ff_b2[l]
        x = _layer_norm(x + ff, ln3_g[l], ln3_b[l])

    # final linear (lane-dense padded output; sliced to OUTPUT_DIM outside)
    out_ref[...] = (jnp.dot(x, wout_ref[...], preferred_element_type=jnp.float32)
                    + bout_ref[...])


# ----------------------------- one-time parameter prep ---------------------------
def _head_select_mask(n_keys, offset):
    """(H*n_keys, 2D) 0/1 matrix: row h*n_keys+j selects columns
    [offset + h*HEAD_DIM, offset + (h+1)*HEAD_DIM)."""
    rows = np.arange(NUM_HEADS * n_keys)
    cols = np.arange(PROJ)
    lo = offset + (rows // n_keys)[:, None] * HEAD_DIM
    sel = (cols[None, :] >= lo) & (cols[None, :] < lo + HEAD_DIM)
    return jnp.asarray(sel.astype(np.float32))


def _segment_ones(n_keys):
    """(H*n_keys, H*n_keys) block-ones matrix for per-head softmax sums."""
    blk = np.arange(NUM_HEADS * n_keys) // n_keys
    return jnp.asarray((blk[:, None] == blk[None, :]).astype(np.float32))


def prepare_params(params):
    """One-time prep (hoisted out of the per-call path): fuse K|V projections,
    zero-pad Q / Wo for slice-free head fusion, fold 1/sqrt(head_dim) into Q,
    bake sqrt(D) into the embedding table, pad W_out to 128 lanes, and build
    the constant head-selector / segment matrices and tiled positional encoding."""
    D = HIDDEN_DIM
    inv = 1.0 / math.sqrt(HEAD_DIM)
    zcol = jnp.zeros((D, D), jnp.float32)
    zb = jnp.zeros((1, D), jnp.float32)
    layers = params["layers"]

    def stack(fn):
        return jnp.stack([fn(lp) for lp in layers], axis=0)

    def attn_params(pre):
        return {
            f"{pre}_wq": stack(lambda lp: jnp.concatenate([lp[f"{pre}_wq"] * inv, zcol], 1)),
            f"{pre}_bq": stack(lambda lp: jnp.concatenate([lp[f"{pre}_bq"] * inv, zb], 1)),
            f"{pre}_wkv": stack(lambda lp: jnp.concatenate([lp[f"{pre}_wk"], lp[f"{pre}_wv"]], 1)),
            f"{pre}_bkv": stack(lambda lp: jnp.concatenate([lp[f"{pre}_bk"], lp[f"{pre}_bv"]], 1)),
            f"{pre}_wo": stack(lambda lp: jnp.concatenate([zcol, lp[f"{pre}_wo"]], 0)),
            f"{pre}_bo": stack(lambda lp: lp[f"{pre}_bo"]),
        }

    pad = PADDED_OUT - OUTPUT_DIM
    prep = {
        "tok_emb": params["tok_emb"] * math.sqrt(D),              # sqrt(D) baked in
        "pe": jnp.tile(params["pe"][:TRG_LEN], (BATCH, 1)),        # (B*L, D)
        "wout": jnp.pad(params["W_out"], ((0, 0), (0, pad))),      # (D, 128)
        "bout": jnp.pad(params["b_out"], ((0, 0), (0, pad))),      # (1, 128)
        "selk_t": _head_select_mask(BATCH * TRG_LEN, 0),
        "selv_t": _head_select_mask(BATCH * TRG_LEN, HIDDEN_DIM),
        "seg_t": _segment_ones(BATCH * TRG_LEN),
        "selk_s": _head_select_mask(BATCH * SRC_LEN, 0),
        "selv_s": _head_select_mask(BATCH * SRC_LEN, HIDDEN_DIM),
        "seg_s": _segment_ones(BATCH * SRC_LEN),
    }
    prep.update(attn_params("sa"))
    prep.update(attn_params("ea"))
    for nm in ("ln1_g", "ln1_b", "ln2_g", "ln2_b", "ln3_g", "ln3_b",
               "ff_w1", "ff_b1", "ff_w2", "ff_b2"):
        prep[nm] = stack(lambda lp, nm=nm: lp[nm])
    return prep


def _attention_biases(trg_mask, src_mask):
    """Vectorized additive biases for the flattened-batch attention:
    0 where attention allowed, NEG_INF where masked or across batch elements;
    tiled across heads to match the fused (Nq, H*Nk) energy layout."""
    B = trg_mask.shape[0]
    L = trg_mask.shape[-1]
    Ls = src_mask.shape[-1]
    eye = jnp.eye(B, dtype=jnp.float32)

    tmask = trg_mask.reshape(B, L, L).astype(jnp.float32)
    tkeep = jnp.einsum("bc,bij->bicj", eye, tmask).reshape(B * L, B * L)

    smask = src_mask.reshape(B, Ls).astype(jnp.float32)
    skeep = jnp.broadcast_to(eye[:, None, :, None] * smask[:, None, None, :],
                             (B, L, B, Ls)).reshape(B * L, B * Ls)

    tbias = jnp.tile((1.0 - tkeep) * NEG_INF, (1, NUM_HEADS))
    sbias = jnp.tile((1.0 - skeep) * NEG_INF, (1, NUM_HEADS))
    return tbias, sbias


def decoder_forward(trg_tokens, src, trg_mask, src_mask, prep):
    B, L = trg_tokens.shape
    Ls = src.shape[1]
    D = HIDDEN_DIM

    # embedding lookup (gather) is JAX glue; everything else runs in the kernel
    x = prep["tok_emb"][trg_tokens].reshape(B * L, D) + prep["pe"]
    src_flat = src.reshape(B * Ls, D)
    tbias, sbias = _attention_biases(trg_mask, src_mask)

    args = [
        x, src_flat, tbias, sbias,
        prep["selk_t"], prep["selv_t"], prep["seg_t"],
        prep["selk_s"], prep["selv_s"], prep["seg_s"],
        prep["sa_wq"], prep["sa_bq"], prep["sa_wkv"], prep["sa_bkv"],
        prep["sa_wo"], prep["sa_bo"], prep["ln1_g"], prep["ln1_b"],
        prep["ea_wq"], prep["ea_bq"], prep["ea_wkv"], prep["ea_bkv"],
        prep["ea_wo"], prep["ea_bo"], prep["ln2_g"], prep["ln2_b"],
        prep["ff_w1"], prep["ff_b1"], prep["ff_w2"], prep["ff_b2"],
        prep["ln3_g"], prep["ln3_b"],
        prep["wout"], prep["bout"],
    ]

    out_pad = pl.pallas_call(
        decoder_kernel,
        out_shape=jax.ShapeDtypeStruct((B * L, PADDED_OUT), jnp.float32),
    )(*args)
    return out_pad[:, :OUTPUT_DIM].reshape(B, L, OUTPUT_DIM)


# ----------------------------- parameters -----------------------------------------
def sinusoidal_pe(length, d_model):
    pos = jnp.arange(length, dtype=jnp.float32)[:, None]
    i = jnp.arange(d_model // 2, dtype=jnp.float32)[None, :]
    div = jnp.exp(-math.log(10000.0) * (2.0 * i) / d_model)
    pe = jnp.zeros((length, d_model), jnp.float32)
    pe = pe.at[:, 0::2].set(jnp.sin(pos * div))
    pe = pe.at[:, 1::2].set(jnp.cos(pos * div))
    return pe


def init_params(key):
    keys = iter(jax.random.split(key, 128))

    def rnd(shape, scale=0.02):
        return jax.random.normal(next(keys), shape, jnp.float32) * scale

    params = {
        "tok_emb": rnd((OUTPUT_DIM, HIDDEN_DIM), 0.1),
        "pe": sinusoidal_pe(NUM_POS_EMBEDDINGS, HIDDEN_DIM),
        "layers": [],
        "W_out": rnd((HIDDEN_DIM, OUTPUT_DIM)),
        "b_out": rnd((1, OUTPUT_DIM)),
    }
    for _ in range(NUM_LAYERS):
        lp = {}
        for pre in ("sa", "ea"):
            for nm in ("q", "k", "v", "o"):
                lp[f"{pre}_w{nm}"] = rnd((HIDDEN_DIM, HIDDEN_DIM))
                lp[f"{pre}_b{nm}"] = rnd((1, HIDDEN_DIM))
        for ln in ("ln1", "ln2", "ln3"):
            lp[f"{ln}_g"] = jnp.ones((1, HIDDEN_DIM), jnp.float32)
            lp[f"{ln}_b"] = jnp.zeros((1, HIDDEN_DIM), jnp.float32)
        lp["ff_w1"] = rnd((HIDDEN_DIM, PFF_HIDDEN))
        lp["ff_b1"] = rnd((1, PFF_HIDDEN))
        lp["ff_w2"] = rnd((PFF_HIDDEN, HIDDEN_DIM))
        lp["ff_b2"] = rnd((1, HIDDEN_DIM))
        params["layers"].append(lp)
    return params


# ----------------------------- pure-JAX reference ---------------------------------
def _ref_mha(q_in, kv_in, mask, lp, pre):
    B, Lq, D = q_in.shape
    Lk = kv_in.shape[1]
    q = q_in @ lp[f"{pre}_wq"] + lp[f"{pre}_bq"]
    k = kv_in @ lp[f"{pre}_wk"] + lp[f"{pre}_bk"]
    v = kv_in @ lp[f"{pre}_wv"] + lp[f"{pre}_bv"]
    qh = q.reshape(B, Lq, NUM_HEADS, HEAD_DIM).transpose(0, 2, 1, 3)
    kh = k.reshape(B, Lk, NUM_HEADS, HEAD_DIM).transpose(0, 2, 1, 3)
    vh = v.reshape(B, Lk, NUM_HEADS, HEAD_DIM).transpose(0, 2, 1, 3)
    energy = (qh @ kh.transpose(0, 1, 3, 2)) / math.sqrt(HEAD_DIM)
    energy = jnp.where(mask == 0, NEG_INF, energy)
    attn = jax.nn.softmax(energy, axis=-1)
    out = (attn @ vh).transpose(0, 2, 1, 3).reshape(B, Lq, D)
    return out @ lp[f"{pre}_wo"] + lp[f"{pre}_bo"]


def _ref_ln(x, g, b):
    mu = jnp.mean(x, axis=-1, keepdims=True)
    var = jnp.mean((x - mu) ** 2, axis=-1, keepdims=True)
    return (x - mu) / jnp.sqrt(var + LN_EPS) * g + b


def reference_forward(trg_tokens, src, trg_mask, src_mask, params):
    B, L = trg_tokens.shape
    x = params["tok_emb"][trg_tokens] * math.sqrt(HIDDEN_DIM) + params["pe"][:L]
    for lp in params["layers"]:
        sa = _ref_mha(x, x, trg_mask, lp, "sa")
        x = _ref_ln(x + sa, lp["ln1_g"], lp["ln1_b"])
        ea = _ref_mha(x, src, src_mask, lp, "ea")
        x = _ref_ln(x + ea, lp["ln2_g"], lp["ln2_b"])
        h = jnp.maximum(x @ lp["ff_w1"] + lp["ff_b1"], 0.0)
        ff = h @ lp["ff_w2"] + lp["ff_b2"]
        x = _ref_ln(x + ff, lp["ln3_g"], lp["ln3_b"])
    return x @ params["W_out"] + params["b_out"]


# ----------------------------- main ------------------------------------------------
if __name__ == "__main__":
    key = jax.random.PRNGKey(0)
    k_tok, k_src, k_par = jax.random.split(key, 3)

    trg_tokens = jax.random.randint(k_tok, (BATCH, TRG_LEN), 0, OUTPUT_DIM)
    src = jax.random.normal(k_src, (BATCH, SRC_LEN, HIDDEN_DIM), jnp.float32)

    # trgMask: (B, 1, trgLen, trgLen) causal mask; srcMask: (B, 1, 1, srcLen)
    causal = jnp.tril(jnp.ones((TRG_LEN, TRG_LEN), jnp.int32))
    trg_mask = jnp.broadcast_to(causal[None, None], (BATCH, 1, TRG_LEN, TRG_LEN))
    src_mask = jnp.ones((BATCH, 1, 1, SRC_LEN), jnp.int32)
    src_mask = src_mask.at[1, 0, 0, SRC_LEN - 2:].set(0)   # pad last 2 src tokens of batch 1

    params = init_params(k_par)
    prep = prepare_params(params)        # one-time prep, hoisted out of the hot path

    fwd = jax.jit(decoder_forward)
    out = fwd(trg_tokens, src, trg_mask, src_mask, prep)
    out = jax.block_until_ready(out)
    assert out.shape == (BATCH, TRG_LEN, OUTPUT_DIM)

    ref = reference_forward(trg_tokens, src, trg_mask, src_mask, params)
    np.testing.assert_allclose(np.asarray(out), np.asarray(ref), rtol=1e-3, atol=1e-3)

    print("KERNEL_OK")
</pallas_src>

<mosaic_0001>
module attributes {stable_mosaic.version = 11 : i64} {
  func.func @decoder_kernel(%arg0: memref<16x32xf32, #tpu.memory_space<vmem>>, %arg1: memref<20x32xf32, #tpu.memory_space<vmem>>, %arg2: memref<16x64xf32, #tpu.memory_space<vmem>>, %arg3: memref<16x80xf32, #tpu.memory_space<vmem>>, %arg4: memref<64x64xf32, #tpu.memory_space<vmem>>, %arg5: memref<64x64xf32, #tpu.memory_space<vmem>>, %arg6: memref<64x64xf32, #tpu.memory_space<vmem>>, %arg7: memref<80x64xf32, #tpu.memory_space<vmem>>, %arg8: memref<80x64xf32, #tpu.memory_space<vmem>>, %arg9: memref<80x80xf32, #tpu.memory_space<vmem>>, %arg10: memref<2x32x64xf32, #tpu.memory_space<vmem>>, %arg11: memref<2x1x64xf32, #tpu.memory_space<vmem>>, %arg12: memref<2x32x64xf32, #tpu.memory_space<vmem>>, %arg13: memref<2x1x64xf32, #tpu.memory_space<vmem>>, %arg14: memref<2x64x32xf32, #tpu.memory_space<vmem>>, %arg15: memref<2x1x32xf32, #tpu.memory_space<vmem>>, %arg16: memref<2x1x32xf32, #tpu.memory_space<vmem>>, %arg17: memref<2x1x32xf32, #tpu.memory_space<vmem>>, %arg18: memref<2x32x64xf32, #tpu.memory_space<vmem>>, %arg19: memref<2x1x64xf32, #tpu.memory_space<vmem>>, %arg20: memref<2x32x64xf32, #tpu.memory_space<vmem>>, %arg21: memref<2x1x64xf32, #tpu.memory_space<vmem>>, %arg22: memref<2x64x32xf32, #tpu.memory_space<vmem>>, %arg23: memref<2x1x32xf32, #tpu.memory_space<vmem>>, %arg24: memref<2x1x32xf32, #tpu.memory_space<vmem>>, %arg25: memref<2x1x32xf32, #tpu.memory_space<vmem>>, %arg26: memref<2x32x64xf32, #tpu.memory_space<vmem>>, %arg27: memref<2x1x64xf32, #tpu.memory_space<vmem>>, %arg28: memref<2x64x32xf32, #tpu.memory_space<vmem>>, %arg29: memref<2x1x32xf32, #tpu.memory_space<vmem>>, %arg30: memref<2x1x32xf32, #tpu.memory_space<vmem>>, %arg31: memref<2x1x32xf32, #tpu.memory_space<vmem>>, %arg32: memref<32x128xf32, #tpu.memory_space<vmem>>, %arg33: memref<1x128xf32, #tpu.memory_space<vmem>>, %arg34: memref<16x128xf32, #tpu.memory_space<vmem>>) attributes {dimension_semantics = [], scalar_prefetch = 0 : i64, scratch_operands = 0 : i64, tpu.core_type = #tpu.core_type<tc>} {
    %c0 = arith.constant 0 : index
    %c0_0 = arith.constant 0 : index
    %0 = vector.load %arg0[%c0, %c0_0] : memref<16x32xf32, #tpu.memory_space<vmem>>, vector<16x32xf32>
    %c0_1 = arith.constant 0 : index
    %c0_2 = arith.constant 0 : index
    %1 = vector.load %arg1[%c0_1, %c0_2] : memref<20x32xf32, #tpu.memory_space<vmem>>, vector<20x32xf32>
    %c0_3 = arith.constant 0 : index
    %c0_4 = arith.constant 0 : index
    %2 = vector.load %arg2[%c0_3, %c0_4] : memref<16x64xf32, #tpu.memory_space<vmem>>, vector<16x64xf32>
    %c0_5 = arith.constant 0 : index
    %c0_6 = arith.constant 0 : index
    %3 = vector.load %arg3[%c0_5, %c0_6] : memref<16x80xf32, #tpu.memory_space<vmem>>, vector<16x80xf32>
    %c0_7 = arith.constant 0 : index
    %c0_8 = arith.constant 0 : index
    %4 = vector.load %arg4[%c0_7, %c0_8] : memref<64x64xf32, #tpu.memory_space<vmem>>, vector<64x64xf32>
    %c0_9 = arith.constant 0 : index
    %c0_10 = arith.constant 0 : index
    %5 = vector.load %arg5[%c0_9, %c0_10] : memref<64x64xf32, #tpu.memory_space<vmem>>, vector<64x64xf32>
    %c0_11 = arith.constant 0 : index
    %c0_12 = arith.constant 0 : index
    %6 = vector.load %arg6[%c0_11, %c0_12] : memref<64x64xf32, #tpu.memory_space<vmem>>, vector<64x64xf32>
    %c0_13 = arith.constant 0 : index
    %c0_14 = arith.constant 0 : index
    %7 = vector.load %arg7[%c0_13, %c0_14] : memref<80x64xf32, #tpu.memory_space<vmem>>, vector<80x64xf32>
    %c0_15 = arith.constant 0 : index
    %c0_16 = arith.constant 0 : index
    %8 = vector.load %arg8[%c0_15, %c0_16] : memref<80x64xf32, #tpu.memory_space<vmem>>, vector<80x64xf32>
    %c0_17 = arith.constant 0 : index
    %c0_18 = arith.constant 0 : index
    %9 = vector.load %arg9[%c0_17, %c0_18] : memref<80x80xf32, #tpu.memory_space<vmem>>, vector<80x80xf32>
    %c0_19 = arith.constant 0 : index
    %c0_20 = arith.constant 0 : index
    %c0_21 = arith.constant 0 : index
    %10 = vector.load %arg10[%c0_19, %c0_20, %c0_21] : memref<2x32x64xf32, #tpu.memory_space<vmem>>, vector<1x32x64xf32>
    %11 = vector.shape_cast %10 : vector<1x32x64xf32> to vector<32x64xf32>
    %c0_22 = arith.constant 0 : index
    %c0_23 = arith.constant 0 : index
    %c0_24 = arith.constant 0 : index
    %12 = vector.load %arg11[%c0_22, %c0_23, %c0_24] : memref<2x1x64xf32, #tpu.memory_space<vmem>>, vector<1x1x64xf32>
    %13 = vector.shape_cast %12 : vector<1x1x64xf32> to vector<1x64xf32>
    %c0_25 = arith.constant 0 : index
    %c0_26 = arith.constant 0 : index
    %c0_27 = arith.constant 0 : index
    %14 = vector.load %arg12[%c0_25, %c0_26, %c0_27] : memref<2x32x64xf32, #tpu.memory_space<vmem>>, vector<1x32x64xf32>
    %15 = vector.shape_cast %14 : vector<1x32x64xf32> to vector<32x64xf32>
    %c0_28 = arith.constant 0 : index
    %c0_29 = arith.constant 0 : index
    %c0_30 = arith.constant 0 : index
    %16 = vector.load %arg13[%c0_28, %c0_29, %c0_30] : memref<2x1x64xf32, #tpu.memory_space<vmem>>, vector<1x1x64xf32>
    %17 = vector.shape_cast %16 : vector<1x1x64xf32> to vector<1x64xf32>
    %c0_31 = arith.constant 0 : index
    %c0_32 = arith.constant 0 : index
    %c0_33 = arith.constant 0 : index
    %18 = vector.load %arg14[%c0_31, %c0_32, %c0_33] : memref<2x64x32xf32, #tpu.memory_space<vmem>>, vector<1x64x32xf32>
    %19 = vector.shape_cast %18 : vector<1x64x32xf32> to vector<64x32xf32>
    %c0_34 = arith.constant 0 : index
    %c0_35 = arith.constant 0 : index
    %c0_36 = arith.constant 0 : index
    %20 = vector.load %arg15[%c0_34, %c0_35, %c0_36] : memref<2x1x32xf32, #tpu.memory_space<vmem>>, vector<1x1x32xf32>
    %21 = vector.shape_cast %20 : vector<1x1x32xf32> to vector<1x32xf32>
    %cst = arith.constant dense<0.000000e+00> : vector<16x64xf32>
    %22 = tpu.matmul %0, %11, %cst {dimension_numbers = #tpu.dot_dimension_numbers<[1], [0], [0], [1], [0, 0, 1, 1], [], []>} : vector<16x32xf32>, vector<32x64xf32>, vector<16x64xf32> -> vector<16x64xf32>
    %23 = vector.broadcast %13 : vector<1x64xf32> to vector<16x64xf32>
    %24 = arith.addf %22, %23 : vector<16x64xf32>
    %cst_37 = arith.constant dense<0.000000e+00> : vector<16x64xf32>
    %25 = tpu.matmul %0, %15, %cst_37 {dimension_numbers = #tpu.dot_dimension_numbers<[1], [0], [0], [1], [0, 0, 1, 1], [], []>} : vector<16x32xf32>, vector<32x64xf32>, vector<16x64xf32> -> vector<16x64xf32>
    %26 = vector.broadcast %17 : vector<1x64xf32> to vector<16x64xf32>
    %27 = arith.addf %25, %26 : vector<16x64xf32>
    %28 = tpu.concatenate %27, %27, %27, %27 in 0 : vector<16x64xf32>, vector<16x64xf32>, vector<16x64xf32>, vector<16x64xf32> -> vector<64x64xf32>
    %29 = arith.mulf %28, %4 : vector<64x64xf32>
    %30 = arith.mulf %28, %5 : vector<64x64xf32>
    %cst_38 = arith.constant dense<0.000000e+00> : vector<16x64xf32>
    %31 = tpu.matmul %24, %29, %cst_38 {dimension_numbers = #tpu.dot_dimension_numbers<[1], [1], [0], [0], [0, 0, 1, 0], [], []>} : vector<16x64xf32>, vector<64x64xf32>, vector<16x64xf32> -> vector<16x64xf32>
    %32 = arith.addf %31, %2 : vector<16x64xf32>
    %cst_39 = arith.constant dense<0xFF800000> : vector<16xf32>
    %33 = vector.multi_reduction <maximumf>, %32, %cst_39 [1] : vector<16x64xf32> to vector<16xf32>
    %34 = vector.shape_cast %33 : vector<16xf32> to vector<16x1xf32>
    %35 = vector.broadcast %34 : vector<16x1xf32> to vector<16x64xf32>
    %36 = arith.subf %32, %35 : vector<16x64xf32>
    %37 = math.exp %36 : vector<16x64xf32>
    %cst_40 = arith.constant dense<0.000000e+00> : vector<16x64xf32>
    %38 = tpu.matmul %37, %6, %cst_40 {dimension_numbers = #tpu.dot_dimension_numbers<[1], [0], [0], [1], [0, 0, 1, 1], [], []>} : vector<16x64xf32>, vector<64x64xf32>, vector<16x64xf32> -> vector<16x64xf32>
    %39 = tpu.reciprocal %38 {approx = true} : vector<16x64xf32> -> vector<16x64xf32>
    %40 = arith.mulf %37, %39 : vector<16x64xf32>
    %cst_41 = arith.constant dense<0.000000e+00> : vector<16x64xf32>
    %41 = tpu.matmul %40, %30, %cst_41 {dimension_numbers = #tpu.dot_dimension_numbers<[1], [0], [0], [1], [0, 0, 1, 1], [], []>} : vector<16x64xf32>, vector<64x64xf32>, vector<16x64xf32> -> vector<16x64xf32>
    %cst_42 = arith.constant dense<0.000000e+00> : vector<16x32xf32>
    %42 = tpu.matmul %41, %19, %cst_42 {dimension_numbers = #tpu.dot_dimension_numbers<[1], [0], [0], [1], [0, 0, 1, 1], [], []>} : vector<16x64xf32>, vector<64x32xf32>, vector<16x32xf32> -> vector<16x32xf32>
    %43 = vector.broadcast %21 : vector<1x32xf32> to vector<16x32xf32>
    %44 = arith.addf %42, %43 : vector<16x32xf32>
    %45 = arith.addf %0, %44 : vector<16x32xf32>
    %c0_43 = arith.constant 0 : index
    %c0_44 = arith.constant 0 : index
    %c0_45 = arith.constant 0 : index
    %46 = vector.load %arg16[%c0_43, %c0_44, %c0_45] : memref<2x1x32xf32, #tpu.memory_space<vmem>>, vector<1x1x32xf32>
    %47 = vector.shape_cast %46 : vector<1x1x32xf32> to vector<1x32xf32>
    %c0_46 = arith.constant 0 : index
    %c0_47 = arith.constant 0 : index
    %c0_48 = arith.constant 0 : index
    %48 = vector.load %arg17[%c0_46, %c0_47, %c0_48] : memref<2x1x32xf32, #tpu.memory_space<vmem>>, vector<1x1x32xf32>
    %49 = vector.shape_cast %48 : vector<1x1x32xf32> to vector<1x32xf32>
    %cst_49 = arith.constant dense<0.000000e+00> : vector<16xf32>
    %50 = vector.multi_reduction <add>, %45, %cst_49 [1] : vector<16x32xf32> to vector<16xf32>
    %51 = vector.shape_cast %50 : vector<16xf32> to vector<16x1xf32>
    %cst_50 = arith.constant 3.200000e+01 : f32
    %52 = vector.broadcast %cst_50 : f32 to vector<16x1xf32>
    %53 = arith.divf %51, %52 : vector<16x1xf32>
    %54 = vector.broadcast %53 : vector<16x1xf32> to vector<16x32xf32>
    %55 = arith.subf %45, %54 : vector<16x32xf32>
    %56 = arith.mulf %55, %55 : vector<16x32xf32>
    %cst_51 = arith.constant dense<0.000000e+00> : vector<16xf32>
    %57 = vector.multi_reduction <add>, %56, %cst_51 [1] : vector<16x32xf32> to vector<16xf32>
    %58 = vector.shape_cast %57 : vector<16xf32> to vector<16x1xf32>
    %cst_52 = arith.constant 3.200000e+01 : f32
    %59 = vector.broadcast %cst_52 : f32 to vector<16x1xf32>
    %60 = arith.divf %58, %59 : vector<16x1xf32>
    %61 = vector.broadcast %53 : vector<16x1xf32> to vector<16x32xf32>
    %62 = arith.subf %45, %61 : vector<16x32xf32>
    %cst_53 = arith.constant 9.99999974E-6 : f32
    %63 = vector.broadcast %cst_53 : f32 to vector<16x1xf32>
    %64 = arith.addf %60, %63 : vector<16x1xf32>
    %65 = math.rsqrt %64 : vector<16x1xf32>
    %66 = vector.broadcast %65 : vector<16x1xf32> to vector<16x32xf32>
    %67 = arith.mulf %62, %66 : vector<16x32xf32>
    %68 = vector.broadcast %47 : vector<1x32xf32> to vector<16x32xf32>
    %69 = arith.mulf %67, %68 : vector<16x32xf32>
    %70 = vector.broadcast %49 : vector<1x32xf32> to vector<16x32xf32>
    %71 = arith.addf %69, %70 : vector<16x32xf32>
    %c0_54 = arith.constant 0 : index
    %c0_55 = arith.constant 0 : index
    %c0_56 = arith.constant 0 : index
    %72 = vector.load %arg18[%c0_54, %c0_55, %c0_56] : memref<2x32x64xf32, #tpu.memory_space<vmem>>, vector<1x32x64xf32>
    %73 = vector.shape_cast %72 : vector<1x32x64xf32> to vector<32x64xf32>
    %c0_57 = arith.constant 0 : index
    %c0_58 = arith.constant 0 : index
    %c0_59 = arith.constant 0 : index
    %74 = vector.load %arg19[%c0_57, %c0_58, %c0_59] : memref<2x1x64xf32, #tpu.memory_space<vmem>>, vector<1x1x64xf32>
    %75 = vector.shape_cast %74 : vector<1x1x64xf32> to vector<1x64xf32>
    %c0_60 = arith.constant 0 : index
    %c0_61 = arith.constant 0 : index
    %c0_62 = arith.constant 0 : index
    %76 = vector.load %arg20[%c0_60, %c0_61, %c0_62] : memref<2x32x64xf32, #tpu.memory_space<vmem>>, vector<1x32x64xf32>
    %77 = vector.shape_cast %76 : vector<1x32x64xf32> to vector<32x64xf32>
    %c0_63 = arith.constant 0 : index
    %c0_64 = arith.constant 0 : index
    %c0_65 = arith.constant 0 : index
    %78 = vector.load %arg21[%c0_63, %c0_64, %c0_65] : memref<2x1x64xf32, #tpu.memory_space<vmem>>, vector<1x1x64xf32>
    %79 = vector.shape_cast %78 : vector<1x1x64xf32> to vector<1x64xf32>
    %c0_66 = arith.constant 0 : index
    %c0_67 = arith.constant 0 : index
    %c0_68 = arith.constant 0 : index
    %80 = vector.load %arg22[%c0_66, %c0_67, %c0_68] : memref<2x64x32xf32, #tpu.memory_space<vmem>>, vector<1x64x32xf32>
    %81 = vector.shape_cast %80 : vector<1x64x32xf32> to vector<64x32xf32>
    %c0_69 = arith.constant 0 : index
    %c0_70 = arith.constant 0 : index
    %c0_71 = arith.constant 0 : index
    %82 = vector.load %arg23[%c0_69, %c0_70, %c0_71] : memref<2x1x32xf32, #tpu.memory_space<vmem>>, vector<1x1x32xf32>
    %83 = vector.shape_cast %82 : vector<1x1x32xf32> to vector<1x32xf32>
    %cst_72 = arith.constant dense<0.000000e+00> : vector<16x64xf32>
    %84 = tpu.matmul %71, %73, %cst_72 {dimension_numbers = #tpu.dot_dimension_numbers<[1], [0], [0], [1], [0, 0, 1, 1], [], []>} : vector<16x32xf32>, vector<32x64xf32>, vector<16x64xf32> -> vector<16x64xf32>
    %85 = vector.broadcast %75 : vector<1x64xf32> to vector<16x64xf32>
    %86 = arith.addf %84, %85 : vector<16x64xf32>
    %cst_73 = arith.constant dense<0.000000e+00> : vector<20x64xf32>
    %87 = tpu.matmul %1, %77, %cst_73 {dimension_numbers = #tpu.dot_dimension_numbers<[1], [0], [0], [1], [0, 0, 1, 1], [], []>} : vector<20x32xf32>, vector<32x64xf32>, vector<20x64xf32> -> vector<20x64xf32>
    %88 = vector.broadcast %79 : vector<1x64xf32> to vector<20x64xf32>
    %89 = arith.addf %87, %88 : vector<20x64xf32>
    %90 = tpu.concatenate %89, %89, %89, %89 in 0 : vector<20x64xf32>, vector<20x64xf32>, vector<20x64xf32>, vector<20x64xf32> -> vector<80x64xf32>
    %91 = arith.mulf %90, %7 : vector<80x64xf32>
    %92 = arith.mulf %90, %8 : vector<80x64xf32>
    %cst_74 = arith.constant dense<0.000000e+00> : vector<16x80xf32>
    %93 = tpu.matmul %86, %91, %cst_74 {dimension_numbers = #tpu.dot_dimension_numbers<[1], [1], [0], [0], [0, 0, 1, 0], [], []>} : vector<16x64xf32>, vector<80x64xf32>, vector<16x80xf32> -> vector<16x80xf32>
    %94 = arith.addf %93, %3 : vector<16x80xf32>
    %cst_75 = arith.constant dense<0xFF800000> : vector<16xf32>
    %95 = vector.multi_reduction <maximumf>, %94, %cst_75 [1] : vector<16x80xf32> to vector<16xf32>
    %96 = vector.shape_cast %95 : vector<16xf32> to vector<16x1xf32>
    %97 = vector.broadcast %96 : vector<16x1xf32> to vector<16x80xf32>
    %98 = arith.subf %94, %97 : vector<16x80xf32>
    %99 = math.exp %98 : vector<16x80xf32>
    %cst_76 = arith.constant dense<0.000000e+00> : vector<16x80xf32>
    %100 = tpu.matmul %99, %9, %cst_76 {dimension_numbers = #tpu.dot_dimension_numbers<[1], [0], [0], [1], [0, 0, 1, 1], [], []>} : vector<16x80xf32>, vector<80x80xf32>, vector<16x80xf32> -> vector<16x80xf32>
    %101 = tpu.reciprocal %100 {approx = true} : vector<16x80xf32> -> vector<16x80xf32>
    %102 = arith.mulf %99, %101 : vector<16x80xf32>
    %cst_77 = arith.constant dense<0.000000e+00> : vector<16x64xf32>
    %103 = tpu.matmul %102, %92, %cst_77 {dimension_numbers = #tpu.dot_dimension_numbers<[1], [0], [0], [1], [0, 0, 1, 1], [], []>} : vector<16x80xf32>, vector<80x64xf32>, vector<16x64xf32> -> vector<16x64xf32>
    %cst_78 = arith.constant dense<0.000000e+00> : vector<16x32xf32>
    %104 = tpu.matmul %103, %81, %cst_78 {dimension_numbers = #tpu.dot_dimension_numbers<[1], [0], [0], [1], [0, 0, 1, 1], [], []>} : vector<16x64xf32>, vector<64x32xf32>, vector<16x32xf32> -> vector<16x32xf32>
    %105 = vector.broadcast %83 : vector<1x32xf32> to vector<16x32xf32>
    %106 = arith.addf %104, %105 : vector<16x32xf32>
    %107 = arith.addf %71, %106 : vector<16x32xf32>
    %c0_79 = arith.constant 0 : index
    %c0_80 = arith.constant 0 : index
    %c0_81 = arith.constant 0 : index
    %108 = vector.load %arg24[%c0_79, %c0_80, %c0_81] : memref<2x1x32xf32, #tpu.memory_space<vmem>>, vector<1x1x32xf32>
    %109 = vector.shape_cast %108 : vector<1x1x32xf32> to vector<1x32xf32>
    %c0_82 = arith.constant 0 : index
    %c0_83 = arith.constant 0 : index
    %c0_84 = arith.constant 0 : index
    %110 = vector.load %arg25[%c0_82, %c0_83, %c0_84] : memref<2x1x32xf32, #tpu.memory_space<vmem>>, vector<1x1x32xf32>
    %111 = vector.shape_cast %110 : vector<1x1x32xf32> to vector<1x32xf32>
    %cst_85 = arith.constant dense<0.000000e+00> : vector<16xf32>
    %112 = vector.multi_reduction <add>, %107, %cst_85 [1] : vector<16x32xf32> to vector<16xf32>
    %113 = vector.shape_cast %112 : vector<16xf32> to vector<16x1xf32>
    %cst_86 = arith.constant 3.200000e+01 : f32
    %114 = vector.broadcast %cst_86 : f32 to vector<16x1xf32>
    %115 = arith.divf %113, %114 : vector<16x1xf32>
    %116 = vector.broadcast %115 : vector<16x1xf32> to vector<16x32xf32>
    %117 = arith.subf %107, %116 : vector<16x32xf32>
    %118 = arith.mulf %117, %117 : vector<16x32xf32>
    %cst_87 = arith.constant dense<0.000000e+00> : vector<16xf32>
    %119 = vector.multi_reduction <add>, %118, %cst_87 [1] : vector<16x32xf32> to vector<16xf32>
    %120 = vector.shape_cast %119 : vector<16xf32> to vector<16x1xf32>
    %cst_88 = arith.constant 3.200000e+01 : f32
    %121 = vector.broadcast %cst_88 : f32 to vector<16x1xf32>
    %122 = arith.divf %120, %121 : vector<16x1xf32>
    %123 = vector.broadcast %115 : vector<16x1xf32> to vector<16x32xf32>
    %124 = arith.subf %107, %123 : vector<16x32xf32>
    %cst_89 = arith.constant 9.99999974E-6 : f32
    %125 = vector.broadcast %cst_89 : f32 to vector<16x1xf32>
    %126 = arith.addf %122, %125 : vector<16x1xf32>
    %127 = math.rsqrt %126 : vector<16x1xf32>
    %128 = vector.broadcast %127 : vector<16x1xf32> to vector<16x32xf32>
    %129 = arith.mulf %124, %128 : vector<16x32xf32>
    %130 = vector.broadcast %109 : vector<1x32xf32> to vector<16x32xf32>
    %131 = arith.mulf %129, %130 : vector<16x32xf32>
    %132 = vector.broadcast %111 : vector<1x32xf32> to vector<16x32xf32>
    %133 = arith.addf %131, %132 : vector<16x32xf32>
    %c0_90 = arith.constant 0 : index
    %c0_91 = arith.constant 0 : index
    %c0_92 = arith.constant 0 : index
    %134 = vector.load %arg26[%c0_90, %c0_91, %c0_92] : memref<2x32x64xf32, #tpu.memory_space<vmem>>, vector<1x32x64xf32>
    %135 = vector.shape_cast %134 : vector<1x32x64xf32> to vector<32x64xf32>
    %cst_93 = arith.constant dense<0.000000e+00> : vector<16x64xf32>
    %136 = tpu.matmul %133, %135, %cst_93 {dimension_numbers = #tpu.dot_dimension_numbers<[1], [0], [0], [1], [0, 0, 1, 1], [], []>} : vector<16x32xf32>, vector<32x64xf32>, vector<16x64xf32> -> vector<16x64xf32>
    %c0_94 = arith.constant 0 : index
    %c0_95 = arith.constant 0 : index
    %c0_96 = arith.constant 0 : index
    %137 = vector.load %arg27[%c0_94, %c0_95, %c0_96] : memref<2x1x64xf32, #tpu.memory_space<vmem>>, vector<1x1x64xf32>
    %138 = vector.shape_cast %137 : vector<1x1x64xf32> to vector<1x64xf32>
    %139 = vector.broadcast %138 : vector<1x64xf32> to vector<16x64xf32>
    %140 = arith.addf %136, %139 : vector<16x64xf32>
    %cst_97 = arith.constant 0.000000e+00 : f32
    %141 = vector.broadcast %cst_97 : f32 to vector<16x64xf32>
    %142 = arith.maximumf %140, %141 : vector<16x64xf32>
    %c0_98 = arith.constant 0 : index
    %c0_99 = arith.constant 0 : index
    %c0_100 = arith.constant 0 : index
    %143 = vector.load %arg28[%c0_98, %c0_99, %c0_100] : memref<2x64x32xf32, #tpu.memory_space<vmem>>, vector<1x64x32xf32>
    %144 = vector.shape_cast %143 : vector<1x64x32xf32> to vector<64x32xf32>
    %cst_101 = arith.constant dense<0.000000e+00> : vector<16x32xf32>
    %145 = tpu.matmul %142, %144, %cst_101 {dimension_numbers = #tpu.dot_dimension_numbers<[1], [0], [0], [1], [0, 0, 1, 1], [], []>} : vector<16x64xf32>, vector<64x32xf32>, vector<16x32xf32> -> vector<16x32xf32>
    %c0_102 = arith.constant 0 : index
    %c0_103 = arith.constant 0 : index
    %c0_104 = arith.constant 0 : index
    %146 = vector.load %arg29[%c0_102, %c0_103, %c0_104] : memref<2x1x32xf32, #tpu.memory_space<vmem>>, vector<1x1x32xf32>
    %147 = vector.shape_cast %146 : vector<1x1x32xf32> to vector<1x32xf32>
    %148 = vector.broadcast %147 : vector<1x32xf32> to vector<16x32xf32>
    %149 = arith.addf %145, %148 : vector<16x32xf32>
    %150 = arith.addf %133, %149 : vector<16x32xf32>
    %c0_105 = arith.constant 0 : index
    %c0_106 = arith.constant 0 : index
    %c0_107 = arith.constant 0 : index
    %151 = vector.load %arg30[%c0_105, %c0_106, %c0_107] : memref<2x1x32xf32, #tpu.memory_space<vmem>>, vector<1x1x32xf32>
    %152 = vector.shape_cast %151 : vector<1x1x32xf32> to vector<1x32xf32>
    %c0_108 = arith.constant 0 : index
    %c0_109 = arith.constant 0 : index
    %c0_110 = arith.constant 0 : index
    %153 = vector.load %arg31[%c0_108, %c0_109, %c0_110] : memref<2x1x32xf32, #tpu.memory_space<vmem>>, vector<1x1x32xf32>
    %154 = vector.shape_cast %153 : vector<1x1x32xf32> to vector<1x32xf32>
    %cst_111 = arith.constant dense<0.000000e+00> : vector<16xf32>
    %155 = vector.multi_reduction <add>, %150, %cst_111 [1] : vector<16x32xf32> to vector<16xf32>
    %156 = vector.shape_cast %155 : vector<16xf32> to vector<16x1xf32>
    %cst_112 = arith.constant 3.200000e+01 : f32
    %157 = vector.broadcast %cst_112 : f32 to vector<16x1xf32>
    %158 = arith.divf %156, %157 : vector<16x1xf32>
    %159 = vector.broadcast %158 : vector<16x1xf32> to vector<16x32xf32>
    %160 = arith.subf %150, %159 : vector<16x32xf32>
    %161 = arith.mulf %160, %160 : vector<16x32xf32>
    %cst_113 = arith.constant dense<0.000000e+00> : vector<16xf32>
    %162 = vector.multi_reduction <add>, %161, %cst_113 [1] : vector<16x32xf32> to vector<16xf32>
    %163 = vector.shape_cast %162 : vector<16xf32> to vector<16x1xf32>
    %cst_114 = arith.constant 3.200000e+01 : f32
    %164 = vector.broadcast %cst_114 : f32 to vector<16x1xf32>
    %165 = arith.divf %163, %164 : vector<16x1xf32>
    %166 = vector.broadcast %158 : vector<16x1xf32> to vector<16x32xf32>
    %167 = arith.subf %150, %166 : vector<16x32xf32>
    %cst_115 = arith.constant 9.99999974E-6 : f32
    %168 = vector.broadcast %cst_115 : f32 to vector<16x1xf32>
    %169 = arith.addf %165, %168 : vector<16x1xf32>
    %170 = math.rsqrt %169 : vector<16x1xf32>
    %171 = vector.broadcast %170 : vector<16x1xf32> to vector<16x32xf32>
    %172 = arith.mulf %167, %171 : vector<16x32xf32>
    %173 = vector.broadcast %152 : vector<1x32xf32> to vector<16x32xf32>
    %174 = arith.mulf %172, %173 : vector<16x32xf32>
    %175 = vector.broadcast %154 : vector<1x32xf32> to vector<16x32xf32>
    %176 = arith.addf %174, %175 : vector<16x32xf32>
    %c1 = arith.constant 1 : index
    %c0_116 = arith.constant 0 : index
    %c0_117 = arith.constant 0 : index
    %177 = vector.load %arg10[%c1, %c0_116, %c0_117] : memref<2x32x64xf32, #tpu.memory_space<vmem>>, vector<1x32x64xf32>
    %178 = vector.shape_cast %177 : vector<1x32x64xf32> to vector<32x64xf32>
    %c1_118 = arith.constant 1 : index
    %c0_119 = arith.constant 0 : index
    %c0_120 = arith.constant 0 : index
    %179 = vector.load %arg11[%c1_118, %c0_119, %c0_120] : memref<2x1x64xf32, #tpu.memory_space<vmem>>, vector<1x1x64xf32>
    %180 = vector.shape_cast %179 : vector<1x1x64xf32> to vector<1x64xf32>
    %c1_121 = arith.constant 1 : index
    %c0_122 = arith.constant 0 : index
    %c0_123 = arith.constant 0 : index
    %181 = vector.load %arg12[%c1_121, %c0_122, %c0_123] : memref<2x32x64xf32, #tpu.memory_space<vmem>>, vector<1x32x64xf32>
    %182 = vector.shape_cast %181 : vector<1x32x64xf32> to vector<32x64xf32>
    %c1_124 = arith.constant 1 : index
    %c0_125 = arith.constant 0 : index
    %c0_126 = arith.constant 0 : index
    %183 = vector.load %arg13[%c1_124, %c0_125, %c0_126] : memref<2x1x64xf32, #tpu.memory_space<vmem>>, vector<1x1x64xf32>
    %184 = vector.shape_cast %183 : vector<1x1x64xf32> to vector<1x64xf32>
    %c1_127 = arith.constant 1 : index
    %c0_128 = arith.constant 0 : index
    %c0_129 = arith.constant 0 : index
    %185 = vector.load %arg14[%c1_127, %c0_128, %c0_129] : memref<2x64x32xf32, #tpu.memory_space<vmem>>, vector<1x64x32xf32>
    %186 = vector.shape_cast %185 : vector<1x64x32xf32> to vector<64x32xf32>
    %c1_130 = arith.constant 1 : index
    %c0_131 = arith.constant 0 : index
    %c0_132 = arith.constant 0 : index
    %187 = vector.load %arg15[%c1_130, %c0_131, %c0_132] : memref<2x1x32xf32, #tpu.memory_space<vmem>>, vector<1x1x32xf32>
    %188 = vector.shape_cast %187 : vector<1x1x32xf32> to vector<1x32xf32>
    %cst_133 = arith.constant dense<0.000000e+00> : vector<16x64xf32>
    %189 = tpu.matmul %176, %178, %cst_133 {dimension_numbers = #tpu.dot_dimension_numbers<[1], [0], [0], [1], [0, 0, 1, 1], [], []>} : vector<16x32xf32>, vector<32x64xf32>, vector<16x64xf32> -> vector<16x64xf32>
    %190 = vector.broadcast %180 : vector<1x64xf32> to vector<16x64xf32>
    %191 = arith.addf %189, %190 : vector<16x64xf32>
    %cst_134 = arith.constant dense<0.000000e+00> : vector<16x64xf32>
    %192 = tpu.matmul %176, %182, %cst_134 {dimension_numbers = #tpu.dot_dimension_numbers<[1], [0], [0], [1], [0, 0, 1, 1], [], []>} : vector<16x32xf32>, vector<32x64xf32>, vector<16x64xf32> -> vector<16x64xf32>
    %193 = vector.broadcast %184 : vector<1x64xf32> to vector<16x64xf32>
    %194 = arith.addf %192, %193 : vector<16x64xf32>
    %195 = tpu.concatenate %194, %194, %194, %194 in 0 : vector<16x64xf32>, vector<16x64xf32>, vector<16x64xf32>, vector<16x64xf32> -> vector<64x64xf32>
    %196 = arith.mulf %195, %4 : vector<64x64xf32>
    %197 = arith.mulf %195, %5 : vector<64x64xf32>
    %cst_135 = arith.constant dense<0.000000e+00> : vector<16x64xf32>
    %198 = tpu.matmul %191, %196, %cst_135 {dimension_numbers = #tpu.dot_dimension_numbers<[1], [1], [0], [0], [0, 0, 1, 0], [], []>} : vector<16x64xf32>, vector<64x64xf32>, vector<16x64xf32> -> vector<16x64xf32>
    %199 = arith.addf %198, %2 : vector<16x64xf32>
    %cst_136 = arith.constant dense<0xFF800000> : vector<16xf32>
    %200 = vector.multi_reduction <maximumf>, %199, %cst_136 [1] : vector<16x64xf32> to vector<16xf32>
    %201 = vector.shape_cast %200 : vector<16xf32> to vector<16x1xf32>
    %202 = vector.broadcast %201 : vector<16x1xf32> to vector<16x64xf32>
    %203 = arith.subf %199, %202 : vector<16x64xf32>
    %204 = math.exp %203 : vector<16x64xf32>
    %cst_137 = arith.constant dense<0.000000e+00> : vector<16x64xf32>
    %205 = tpu.matmul %204, %6, %cst_137 {dimension_numbers = #tpu.dot_dimension_numbers<[1], [0], [0], [1], [0, 0, 1, 1], [], []>} : vector<16x64xf32>, vector<64x64xf32>, vector<16x64xf32> -> vector<16x64xf32>
    %206 = tpu.reciprocal %205 {approx = true} : vector<16x64xf32> -> vector<16x64xf32>
    %207 = arith.mulf %204, %206 : vector<16x64xf32>
    %cst_138 = arith.constant dense<0.000000e+00> : vector<16x64xf32>
    %208 = tpu.matmul %207, %197, %cst_138 {dimension_numbers = #tpu.dot_dimension_numbers<[1], [0], [0], [1], [0, 0, 1, 1], [], []>} : vector<16x64xf32>, vector<64x64xf32>, vector<16x64xf32> -> vector<16x64xf32>
    %cst_139 = arith.constant dense<0.000000e+00> : vector<16x32xf32>
    %209 = tpu.matmul %208, %186, %cst_139 {dimension_numbers = #tpu.dot_dimension_numbers<[1], [0], [0], [1], [0, 0, 1, 1], [], []>} : vector<16x64xf32>, vector<64x32xf32>, vector<16x32xf32> -> vector<16x32xf32>
    %210 = vector.broadcast %188 : vector<1x32xf32> to vector<16x32xf32>
    %211 = arith.addf %209, %210 : vector<16x32xf32>
    %212 = arith.addf %176, %211 : vector<16x32xf32>
    %c1_140 = arith.constant 1 : index
    %c0_141 = arith.constant 0 : index
    %c0_142 = arith.constant 0 : index
    %213 = vector.load %arg16[%c1_140, %c0_141, %c0_142] : memref<2x1x32xf32, #tpu.memory_space<vmem>>, vector<1x1x32xf32>
    %214 = vector.shape_cast %213 : vector<1x1x32xf32> to vector<1x32xf32>
    %c1_143 = arith.constant 1 : index
    %c0_144 = arith.constant 0 : index
    %c0_145 = arith.constant 0 : index
    %215 = vector.load %arg17[%c1_143, %c0_144, %c0_145] : memref<2x1x32xf32, #tpu.memory_space<vmem>>, vector<1x1x32xf32>
    %216 = vector.shape_cast %215 : vector<1x1x32xf32> to vector<1x32xf32>
    %cst_146 = arith.constant dense<0.000000e+00> : vector<16xf32>
    %217 = vector.multi_reduction <add>, %212, %cst_146 [1] : vector<16x32xf32> to vector<16xf32>
    %218 = vector.shape_cast %217 : vector<16xf32> to vector<16x1xf32>
    %cst_147 = arith.constant 3.200000e+01 : f32
    %219 = vector.broadcast %cst_147 : f32 to vector<16x1xf32>
    %220 = arith.divf %218, %219 : vector<16x1xf32>
    %221 = vector.broadcast %220 : vector<16x1xf32> to vector<16x32xf32>
    %222 = arith.subf %212, %221 : vector<16x32xf32>
    %223 = arith.mulf %222, %222 : vector<16x32xf32>
    %cst_148 = arith.constant dense<0.000000e+00> : vector<16xf32>
    %224 = vector.multi_reduction <add>, %223, %cst_148 [1] : vector<16x32xf32> to vector<16xf32>
    %225 = vector.shape_cast %224 : vector<16xf32> to vector<16x1xf32>
    %cst_149 = arith.constant 3.200000e+01 : f32
    %226 = vector.broadcast %cst_149 : f32 to vector<16x1xf32>
    %227 = arith.divf %225, %226 : vector<16x1xf32>
    %228 = vector.broadcast %220 : vector<16x1xf32> to vector<16x32xf32>
    %229 = arith.subf %212, %228 : vector<16x32xf32>
    %cst_150 = arith.constant 9.99999974E-6 : f32
    %230 = vector.broadcast %cst_150 : f32 to vector<16x1xf32>
    %231 = arith.addf %227, %230 : vector<16x1xf32>
    %232 = math.rsqrt %231 : vector<16x1xf32>
    %233 = vector.broadcast %232 : vector<16x1xf32> to vector<16x32xf32>
    %234 = arith.mulf %229, %233 : vector<16x32xf32>
    %235 = vector.broadcast %214 : vector<1x32xf32> to vector<16x32xf32>
    %236 = arith.mulf %234, %235 : vector<16x32xf32>
    %237 = vector.broadcast %216 : vector<1x32xf32> to vector<16x32xf32>
    %238 = arith.addf %236, %237 : vector<16x32xf32>
    %c1_151 = arith.constant 1 : index
    %c0_152 = arith.constant 0 : index
    %c0_153 = arith.constant 0 : index
    %239 = vector.load %arg18[%c1_151, %c0_152, %c0_153] : memref<2x32x64xf32, #tpu.memory_space<vmem>>, vector<1x32x64xf32>
    %240 = vector.shape_cast %239 : vector<1x32x64xf32> to vector<32x64xf32>
    %c1_154 = arith.constant 1 : index
    %c0_155 = arith.constant 0 : index
    %c0_156 = arith.constant 0 : index
    %241 = vector.load %arg19[%c1_154, %c0_155, %c0_156] : memref<2x1x64xf32, #tpu.memory_space<vmem>>, vector<1x1x64xf32>
    %242 = vector.shape_cast %241 : vector<1x1x64xf32> to vector<1x64xf32>
    %c1_157 = arith.constant 1 : index
    %c0_158 = arith.constant 0 : index
    %c0_159 = arith.constant 0 : index
    %243 = vector.load %arg20[%c1_157, %c0_158, %c0_159] : memref<2x32x64xf32, #tpu.memory_space<vmem>>, vector<1x32x64xf32>
    %244 = vector.shape_cast %243 : vector<1x32x64xf32> to vector<32x64xf32>
    %c1_160 = arith.constant 1 : index
    %c0_161 = arith.constant 0 : index
    %c0_162 = arith.constant 0 : index
    %245 = vector.load %arg21[%c1_160, %c0_161, %c0_162] : memref<2x1x64xf32, #tpu.memory_space<vmem>>, vector<1x1x64xf32>
    %246 = vector.shape_cast %245 : vector<1x1x64xf32> to vector<1x64xf32>
    %c1_163 = arith.constant 1 : index
    %c0_164 = arith.constant 0 : index
    %c0_165 = arith.constant 0 : index
    %247 = vector.load %arg22[%c1_163, %c0_164, %c0_165] : memref<2x64x32xf32, #tpu.memory_space<vmem>>, vector<1x64x32xf32>
    %248 = vector.shape_cast %247 : vector<1x64x32xf32> to vector<64x32xf32>
    %c1_166 = arith.constant 1 : index
    %c0_167 = arith.constant 0 : index
    %c0_168 = arith.constant 0 : index
    %249 = vector.load %arg23[%c1_166, %c0_167, %c0_168] : memref<2x1x32xf32, #tpu.memory_space<vmem>>, vector<1x1x32xf32>
    %250 = vector.shape_cast %249 : vector<1x1x32xf32> to vector<1x32xf32>
    %cst_169 = arith.constant dense<0.000000e+00> : vector<16x64xf32>
    %251 = tpu.matmul %238, %240, %cst_169 {dimension_numbers = #tpu.dot_dimension_numbers<[1], [0], [0], [1], [0, 0, 1, 1], [], []>} : vector<16x32xf32>, vector<32x64xf32>, vector<16x64xf32> -> vector<16x64xf32>
    %252 = vector.broadcast %242 : vector<1x64xf32> to vector<16x64xf32>
    %253 = arith.addf %251, %252 : vector<16x64xf32>
    %cst_170 = arith.constant dense<0.000000e+00> : vector<20x64xf32>
    %254 = tpu.matmul %1, %244, %cst_170 {dimension_numbers = #tpu.dot_dimension_numbers<[1], [0], [0], [1], [0, 0, 1, 1], [], []>} : vector<20x32xf32>, vector<32x64xf32>, vector<20x64xf32> -> vector<20x64xf32>
    %255 = vector.broadcast %246 : vector<1x64xf32> to vector<20x64xf32>
    %256 = arith.addf %254, %255 : vector<20x64xf32>
    %257 = tpu.concatenate %256, %256, %256, %256 in 0 : vector<20x64xf32>, vector<20x64xf32>, vector<20x64xf32>, vector<20x64xf32> -> vector<80x64xf32>
    %258 = arith.mulf %257, %7 : vector<80x64xf32>
    %259 = arith.mulf %257, %8 : vector<80x64xf32>
    %cst_171 = arith.constant dense<0.000000e+00> : vector<16x80xf32>
    %260 = tpu.matmul %253, %258, %cst_171 {dimension_numbers = #tpu.dot_dimension_numbers<[1], [1], [0], [0], [0, 0, 1, 0], [], []>} : vector<16x64xf32>, vector<80x64xf32>, vector<16x80xf32> -> vector<16x80xf32>
    %261 = arith.addf %260, %3 : vector<16x80xf32>
    %cst_172 = arith.constant dense<0xFF800000> : vector<16xf32>
    %262 = vector.multi_reduction <maximumf>, %261, %cst_172 [1] : vector<16x80xf32> to vector<16xf32>
    %263 = vector.shape_cast %262 : vector<16xf32> to vector<16x1xf32>
    %264 = vector.broadcast %263 : vector<16x1xf32> to vector<16x80xf32>
    %265 = arith.subf %261, %264 : vector<16x80xf32>
    %266 = math.exp %265 : vector<16x80xf32>
    %cst_173 = arith.constant dense<0.000000e+00> : vector<16x80xf32>
    %267 = tpu.matmul %266, %9, %cst_173 {dimension_numbers = #tpu.dot_dimension_numbers<[1], [0], [0], [1], [0, 0, 1, 1], [], []>} : vector<16x80xf32>, vector<80x80xf32>, vector<16x80xf32> -> vector<16x80xf32>
    %268 = tpu.reciprocal %267 {approx = true} : vector<16x80xf32> -> vector<16x80xf32>
    %269 = arith.mulf %266, %268 : vector<16x80xf32>
    %cst_174 = arith.constant dense<0.000000e+00> : vector<16x64xf32>
    %270 = tpu.matmul %269, %259, %cst_174 {dimension_numbers = #tpu.dot_dimension_numbers<[1], [0], [0], [1], [0, 0, 1, 1], [], []>} : vector<16x80xf32>, vector<80x64xf32>, vector<16x64xf32> -> vector<16x64xf32>
    %cst_175 = arith.constant dense<0.000000e+00> : vector<16x32xf32>
    %271 = tpu.matmul %270, %248, %cst_175 {dimension_numbers = #tpu.dot_dimension_numbers<[1], [0], [0], [1], [0, 0, 1, 1], [], []>} : vector<16x64xf32>, vector<64x32xf32>, vector<16x32xf32> -> vector<16x32xf32>
    %272 = vector.broadcast %250 : vector<1x32xf32> to vector<16x32xf32>
    %273 = arith.addf %271, %272 : vector<16x32xf32>
    %274 = arith.addf %238, %273 : vector<16x32xf32>
    %c1_176 = arith.constant 1 : index
    %c0_177 = arith.constant 0 : index
    %c0_178 = arith.constant 0 : index
    %275 = vector.load %arg24[%c1_176, %c0_177, %c0_178] : memref<2x1x32xf32, #tpu.memory_space<vmem>>, vector<1x1x32xf32>
    %276 = vector.shape_cast %275 : vector<1x1x32xf32> to vector<1x32xf32>
    %c1_179 = arith.constant 1 : index
    %c0_180 = arith.constant 0 : index
    %c0_181 = arith.constant 0 : index
    %277 = vector.load %arg25[%c1_179, %c0_180, %c0_181] : memref<2x1x32xf32, #tpu.memory_space<vmem>>, vector<1x1x32xf32>
    %278 = vector.shape_cast %277 : vector<1x1x32xf32> to vector<1x32xf32>
    %cst_182 = arith.constant dense<0.000000e+00> : vector<16xf32>
    %279 = vector.multi_reduction <add>, %274, %cst_182 [1] : vector<16x32xf32> to vector<16xf32>
    %280 = vector.shape_cast %279 : vector<16xf32> to vector<16x1xf32>
    %cst_183 = arith.constant 3.200000e+01 : f32
    %281 = vector.broadcast %cst_183 : f32 to vector<16x1xf32>
    %282 = arith.divf %280, %281 : vector<16x1xf32>
    %283 = vector.broadcast %282 : vector<16x1xf32> to vector<16x32xf32>
    %284 = arith.subf %274, %283 : vector<16x32xf32>
    %285 = arith.mulf %284, %284 : vector<16x32xf32>
    %cst_184 = arith.constant dense<0.000000e+00> : vector<16xf32>
    %286 = vector.multi_reduction <add>, %285, %cst_184 [1] : vector<16x32xf32> to vector<16xf32>
    %287 = vector.shape_cast %286 : vector<16xf32> to vector<16x1xf32>
    %cst_185 = arith.constant 3.200000e+01 : f32
    %288 = vector.broadcast %cst_185 : f32 to vector<16x1xf32>
    %289 = arith.divf %287, %288 : vector<16x1xf32>
    %290 = vector.broadcast %282 : vector<16x1xf32> to vector<16x32xf32>
    %291 = arith.subf %274, %290 : vector<16x32xf32>
    %cst_186 = arith.constant 9.99999974E-6 : f32
    %292 = vector.broadcast %cst_186 : f32 to vector<16x1xf32>
    %293 = arith.addf %289, %292 : vector<16x1xf32>
    %294 = math.rsqrt %293 : vector<16x1xf32>
    %295 = vector.broadcast %294 : vector<16x1xf32> to vector<16x32xf32>
    %296 = arith.mulf %291, %295 : vector<16x32xf32>
    %297 = vector.broadcast %276 : vector<1x32xf32> to vector<16x32xf32>
    %298 = arith.mulf %296, %297 : vector<16x32xf32>
    %299 = vector.broadcast %278 : vector<1x32xf32> to vector<16x32xf32>
    %300 = arith.addf %298, %299 : vector<16x32xf32>
    %c1_187 = arith.constant 1 : index
    %c0_188 = arith.constant 0 : index
    %c0_189 = arith.constant 0 : index
    %301 = vector.load %arg26[%c1_187, %c0_188, %c0_189] : memref<2x32x64xf32, #tpu.memory_space<vmem>>, vector<1x32x64xf32>
    %302 = vector.shape_cast %301 : vector<1x32x64xf32> to vector<32x64xf32>
    %cst_190 = arith.constant dense<0.000000e+00> : vector<16x64xf32>
    %303 = tpu.matmul %300, %302, %cst_190 {dimension_numbers = #tpu.dot_dimension_numbers<[1], [0], [0], [1], [0, 0, 1, 1], [], []>} : vector<16x32xf32>, vector<32x64xf32>, vector<16x64xf32> -> vector<16x64xf32>
    %c1_191 = arith.constant 1 : index
    %c0_192 = arith.constant 0 : index
    %c0_193 = arith.constant 0 : index
    %304 = vector.load %arg27[%c1_191, %c0_192, %c0_193] : memref<2x1x64xf32, #tpu.memory_space<vmem>>, vector<1x1x64xf32>
    %305 = vector.shape_cast %304 : vector<1x1x64xf32> to vector<1x64xf32>
    %306 = vector.broadcast %305 : vector<1x64xf32> to vector<16x64xf32>
    %307 = arith.addf %303, %306 : vector<16x64xf32>
    %cst_194 = arith.constant 0.000000e+00 : f32
    %308 = vector.broadcast %cst_194 : f32 to vector<16x64xf32>
    %309 = arith.maximumf %307, %308 : vector<16x64xf32>
    %c1_195 = arith.constant 1 : index
    %c0_196 = arith.constant 0 : index
    %c0_197 = arith.constant 0 : index
    %310 = vector.load %arg28[%c1_195, %c0_196, %c0_197] : memref<2x64x32xf32, #tpu.memory_space<vmem>>, vector<1x64x32xf32>
    %311 = vector.shape_cast %310 : vector<1x64x32xf32> to vector<64x32xf32>
    %cst_198 = arith.constant dense<0.000000e+00> : vector<16x32xf32>
    %312 = tpu.matmul %309, %311, %cst_198 {dimension_numbers = #tpu.dot_dimension_numbers<[1], [0], [0], [1], [0, 0, 1, 1], [], []>} : vector<16x64xf32>, vector<64x32xf32>, vector<16x32xf32> -> vector<16x32xf32>
    %c1_199 = arith.constant 1 : index
    %c0_200 = arith.constant 0 : index
    %c0_201 = arith.constant 0 : index
    %313 = vector.load %arg29[%c1_199, %c0_200, %c0_201] : memref<2x1x32xf32, #tpu.memory_space<vmem>>, vector<1x1x32xf32>
    %314 = vector.shape_cast %313 : vector<1x1x32xf32> to vector<1x32xf32>
    %315 = vector.broadcast %314 : vector<1x32xf32> to vector<16x32xf32>
    %316 = arith.addf %312, %315 : vector<16x32xf32>
    %317 = arith.addf %300, %316 : vector<16x32xf32>
    %c1_202 = arith.constant 1 : index
    %c0_203 = arith.constant 0 : index
    %c0_204 = arith.constant 0 : index
    %318 = vector.load %arg30[%c1_202, %c0_203, %c0_204] : memref<2x1x32xf32, #tpu.memory_space<vmem>>, vector<1x1x32xf32>
    %319 = vector.shape_cast %318 : vector<1x1x32xf32> to vector<1x32xf32>
    %c1_205 = arith.constant 1 : index
    %c0_206 = arith.constant 0 : index
    %c0_207 = arith.constant 0 : index
    %320 = vector.load %arg31[%c1_205, %c0_206, %c0_207] : memref<2x1x32xf32, #tpu.memory_space<vmem>>, vector<1x1x32xf32>
    %321 = vector.shape_cast %320 : vector<1x1x32xf32> to vector<1x32xf32>
    %cst_208 = arith.constant dense<0.000000e+00> : vector<16xf32>
    %322 = vector.multi_reduction <add>, %317, %cst_208 [1] : vector<16x32xf32> to vector<16xf32>
    %323 = vector.shape_cast %322 : vector<16xf32> to vector<16x1xf32>
    %cst_209 = arith.constant 3.200000e+01 : f32
    %324 = vector.broadcast %cst_209 : f32 to vector<16x1xf32>
    %325 = arith.divf %323, %324 : vector<16x1xf32>
    %326 = vector.broadcast %325 : vector<16x1xf32> to vector<16x32xf32>
    %327 = arith.subf %317, %326 : vector<16x32xf32>
    %328 = arith.mulf %327, %327 : vector<16x32xf32>
    %cst_210 = arith.constant dense<0.000000e+00> : vector<16xf32>
    %329 = vector.multi_reduction <add>, %328, %cst_210 [1] : vector<16x32xf32> to vector<16xf32>
    %330 = vector.shape_cast %329 : vector<16xf32> to vector<16x1xf32>
    %cst_211 = arith.constant 3.200000e+01 : f32
    %331 = vector.broadcast %cst_211 : f32 to vector<16x1xf32>
    %332 = arith.divf %330, %331 : vector<16x1xf32>
    %333 = vector.broadcast %325 : vector<16x1xf32> to vector<16x32xf32>
    %334 = arith.subf %317, %333 : vector<16x32xf32>
    %cst_212 = arith.constant 9.99999974E-6 : f32
    %335 = vector.broadcast %cst_212 : f32 to vector<16x1xf32>
    %336 = arith.addf %332, %335 : vector<16x1xf32>
    %337 = math.rsqrt %336 : vector<16x1xf32>
    %338 = vector.broadcast %337 : vector<16x1xf32> to vector<16x32xf32>
    %339 = arith.mulf %334, %338 : vector<16x32xf32>
    %340 = vector.broadcast %319 : vector<1x32xf32> to vector<16x32xf32>
    %341 = arith.mulf %339, %340 : vector<16x32xf32>
    %342 = vector.broadcast %321 : vector<1x32xf32> to vector<16x32xf32>
    %343 = arith.addf %341, %342 : vector<16x32xf32>
    %c0_213 = arith.constant 0 : index
    %c0_214 = arith.constant 0 : index
    %344 = vector.load %arg32[%c0_213, %c0_214] : memref<32x128xf32, #tpu.memory_space<vmem>>, vector<32x128xf32>
    %cst_215 = arith.constant dense<0.000000e+00> : vector<16x128xf32>
    %345 = tpu.matmul %343, %344, %cst_215 {dimension_numbers = #tpu.dot_dimension_numbers<[1], [0], [0], [1], [0, 0, 1, 1], [], []>} : vector<16x32xf32>, vector<32x128xf32>, vector<16x128xf32> -> vector<16x128xf32>
    %c0_216 = arith.constant 0 : index
    %c0_217 = arith.constant 0 : index
    %346 = vector.load %arg33[%c0_216, %c0_217] : memref<1x128xf32, #tpu.memory_space<vmem>>, vector<1x128xf32>
    %347 = vector.broadcast %346 : vector<1x128xf32> to vector<16x128xf32>
    %348 = arith.addf %345, %347 : vector<16x128xf32>
    %c0_218 = arith.constant 0 : index
    %c0_219 = arith.constant 0 : index
    %349 = vector.load %arg34[%c0_218, %c0_219] : memref<16x128xf32, #tpu.memory_space<vmem>>, vector<16x128xf32>
    tpu.vector_store %arg34[%c0_218, %c0_219], %348 {strides = array<i32>} : memref<16x128xf32, #tpu.memory_space<vmem>>, vector<16x128xf32>,
    return
  }
}

</mosaic_0001>

<bundles_post_ra>
// kernel: tile.19
= control target key start
LH: loop header
LB: loop body
LE: loop exit
PB: predicated region body
PF: predicated region fallthrough
CT: control target
= control target key end

     0   :  { %vm83_vm0 = vcmask 1047556   ;;  %vm85_vm1 = vcmask 162816   ;;  %s196_s9 = smov 60   ;;  %s197_s14 = smov 20   ;;  %vm104_vm2 = vcmask 654816   ;;  %vm125_vm3 = vcmask 490816   ;;  %s290_s0 = inlined_call_operand.vmem [shape: f32[16,4,20], index: 0, kind: input, shape index: {}]   ;;  %s291_s1 = inlined_call_operand.vmem [shape: f32[16,80], index: 1, kind: output, shape index: {}]  }
   0x1   :  { %v181_v0 = vld [vmem:[%s290_s0 + $0x1c] sm:$0xf]  ;;  %v182_v1 = vld [vmem:[%s290_s0 + $0x18] sm:$0xf]  ;;  %v183_v2 = vld [vmem:[%s290_s0 + $0x14] sm:$0xf] }
   0x2   :  { %49 = vst [vmem:[#allocation0 + $0x38] sm:$0xf] %v181_v0  ;;  %54 = vst [vmem:[#allocation0 + $0x30] sm:$0xf] %v182_v1  ;;  %v184_v3 = vld [vmem:[%s290_s0 + $0x10] sm:$0xf] }
   0x3   :  { %59 = vst [vmem:[#allocation0 + $0x28] sm:$0xf] %v183_v2  ;;  %v185_v4 = vld [vmem:[%s290_s0 + $0xc] sm:$0xf]  ;;  %v186_v5 = vld [vmem:[%s290_s0 + $0x8] sm:$0xf] }
   0x4   :  { %64 = vst [vmem:[#allocation0 + $0x20] sm:$0xf] %v184_v3  ;;  %69 = vst [vmem:[#allocation0 + $0x18] sm:$0xf] %v185_v4  ;;  %v187_v6 = vld [vmem:[%s290_s0 + $0x4] sm:$0xf] }
   0x5   :  { %74 = vst [vmem:[#allocation0 + $0x10] sm:$0xf] %v186_v5  ;;  %v79_v7 = vld [vmem:[%s290_s0] sm:$0xf]  ;;  %78 = vst [vmem:[#allocation0 + $0x8] sm:$0xf] %v187_v6 }
   0x6   :  { %80 = vst [vmem:[#allocation0] sm:$0xf] %v79_v7  ;;  %v173_v8 = vld [vmem:[%s290_s0 + $0x3c] sm:$0xf]  ;;  %v174_v9 = vld [vmem:[%s290_s0 + $0x38] sm:$0xf] }
   0x7   :  { %9 = vst [vmem:[#allocation0 + $0x78] sm:$0xf] %v173_v8  ;;  %14 = vst [vmem:[#allocation0 + $0x70] sm:$0xf] %v174_v9  ;;  %v175_v10 = vld [vmem:[%s290_s0 + $0x34] sm:$0xf] }
   0x8   :  { %v176_v11 = vld [vmem:[%s290_s0 + $0x30] sm:$0xf]  ;;  %v177_v12 = vld [vmem:[%s290_s0 + $0x2c] sm:$0xf]  ;;  %19 = vst [vmem:[#allocation0 + $0x68] sm:$0xf] %v175_v10 }
   0x9   :  { %24 = vst [vmem:[#allocation0 + $0x60] sm:$0xf] %v176_v11  ;;  %29 = vst [vmem:[#allocation0 + $0x58] sm:$0xf] %v177_v12  ;;  %v178_v13 = vld [vmem:[%s290_s0 + $0x28] sm:$0xf] }
   0xa   :  { %v179_v14 = vld [vmem:[%s290_s0 + $0x24] sm:$0xf]  ;;  %v180_v15 = vld [vmem:[%s290_s0 + $0x20] sm:$0xf]  ;;  %34 = vst [vmem:[#allocation0 + $0x50] sm:$0xf] %v178_v13 }
   0xb   :  { %39 = vst [vmem:[#allocation0 + $0x48] sm:$0xf] %v179_v14  ;;  %44 = vst [vmem:[#allocation0 + $0x40] sm:$0xf] %v180_v15  ;;  %s195_s0 = smov 40   ;;  %vm146_vm4 = vcmask 326816  }
   0xc   :  { %v120_v16 = vld [vmem:[#allocation0 + $0x2] ss:$8 sm:$0xf0]   ;;  %v99_v17 = vld [vmem:[#allocation0 + $0x3] ss:$8 sm:$0xf0]  }
   0xd   :  { %v118_v18 = vld [vmem:[#allocation0 + $0x2] ss:$8 sm:$0xf]   ;;  %v97_v19 = vld [vmem:[#allocation0 + $0x3] ss:$8 sm:$0xf]  }
   0xe   :  { %v122_v20 = vsel %vm83_vm0, %v120_v16, %v118_v18  ;;  %v101_v21 = vsel %vm83_vm0, %v99_v17, %v97_v19  ;;  %v139_v24 = vld [vmem:[#allocation0 + $0x1] ss:$8 sm:$0xf]   ;;  %v81_v32 = vld [vmem:[#allocation0] ss:$8 sm:$0xf]  }
   0xf   :  { %123 = vrot.lane.b32.xlu1 %v122_v20, %s195_s0  ;;  %102 = vrot.lane.b32.xlu0 %v101_v21, %s196_s9  ;;  %v141_v25 = vld [vmem:[#allocation0 + $0x1] ss:$8 sm:$0xf0]   ;;  %v82_v33 = vld [vmem:[#allocation0] ss:$8 sm:$0xf0]  }
  0x10   :  { %v130_v22 = vld [vmem:[#allocation0 + $0x42] ss:$8 sm:$0xf0]   ;;  %v109_v23 = vld [vmem:[#allocation0 + $0x43] ss:$8 sm:$0xf0]   ;;  %v84_v34 = vsel %vm83_vm0, %v82_v33, %v81_v32  ;;  %v143_v38 = vsel %vm83_vm0, %v141_v25, %v139_v24 }
  0x11   :  { %v151_v31 = vld [vmem:[#allocation0 + $0x41] ss:$8 sm:$0xf0]   ;;  %v90_v36 = vld [vmem:[#allocation0 + $0x40] ss:$8 sm:$0xf0]  }
  0x12   :  { %v128_v26 = vld [vmem:[#allocation0 + $0x42] ss:$8 sm:$0xf]   ;;  %v107_v27 = vld [vmem:[#allocation0 + $0x43] ss:$8 sm:$0xf]  }
  0x13   :  { %v132_v28 = vsel %vm83_vm0, %v130_v22, %v128_v26  ;;  %v111_v29 = vsel %vm83_vm0, %v109_v23, %v107_v27  ;;  %v149_v30 = vld [vmem:[#allocation0 + $0x41] ss:$8 sm:$0xf]   ;;  %v88_v35 = vld [vmem:[#allocation0 + $0x40] ss:$8 sm:$0xf]  }
  0x14   :  { %133 = vrot.lane.b32.xlu1 %v132_v28, %s195_s0  ;;  %112 = vrot.lane.b32.xlu0 %v111_v29, %s196_s9  ;;  %v153_v37 = vsel %vm83_vm0, %v151_v31, %v149_v30  ;;  %86 = vst.msk [vmem:[%s291_s1] sm:$0xff] %vm85_vm1, %v84_v34   ;;  %v92_v39 = vsel %vm83_vm0, %v90_v36, %v88_v35 }
  0x15   :  { %188 = vst.msk [vmem:[%s291_s1 + $0x8] sm:$0xff] %vm85_vm1, %v92_v39  }
  0x18   :  { %154 = vrot.lane.b32.xlu1 %v153_v37, %s197_s14  ;;  %144 = vrot.lane.b32.xlu0 %v143_v38, %s197_s14 }
  0x81   :  { %v124_v40 = vpop.permute.xlu1 %123   ;;  %v103_v41 = vpop.permute.xlu0 %102  }
  0x82   :  { %105 = vst.msk [vmem:[%s291_s1] sm:$0xff] %vm104_vm2, %v103_v41  }
  0x83   :  { %126 = vst.msk [vmem:[%s291_s1] sm:$0xff] %vm125_vm3, %v124_v40  }
  0x86   :  { %v134_v42 = vpop.permute.xlu1 %133   ;;  %v113_v43 = vpop.permute.xlu0 %112  }
  0x87   :  { %189 = vst.msk [vmem:[%s291_s1 + $0x8] sm:$0xff] %vm104_vm2, %v113_v43  }
  0x88   :  { %190 = vst.msk [vmem:[%s291_s1 + $0x8] sm:$0xff] %vm125_vm3, %v134_v42  }
  0x8a   :  { %v155_v44 = vpop.permute.xlu1 %154   ;;  %v145_v45 = vpop.permute.xlu0 %144  }
  0x8b   :  { %191 = vst.msk [vmem:[%s291_s1 + $0x8] sm:$0xff] %vm146_vm4, %v155_v44   ;;  %147 = vst.msk [vmem:[%s291_s1] sm:$0xff] %vm146_vm4, %v145_v45  }

// kernel: tile.14
= control target key start
LH: loop header
LB: loop body
LE: loop exit
PB: predicated region body
PF: predicated region fallthrough
CT: control target
= control target key end

     0   :  { %vm83_vm0 = vcmask 1047556   ;;  %vm85_vm1 = vcmask 130048   ;;  %s196_s9 = smov 48   ;;  %s197_s14 = smov 16   ;;  %vm104_vm2 = vcmask 523648   ;;  %vm125_vm3 = vcmask 392448   ;;  %s290_s0 = inlined_call_operand.vmem [shape: f32[16,4,16], index: 0, kind: input, shape index: {}]   ;;  %s291_s1 = inlined_call_operand.vmem [shape: f32[16,64], index: 1, kind: output, shape index: {}]  }
   0x1   :  { %v181_v0 = vld [vmem:[%s290_s0 + $0x1c] sm:$0xf]  ;;  %v182_v1 = vld [vmem:[%s290_s0 + $0x18] sm:$0xf]  ;;  %v183_v2 = vld [vmem:[%s290_s0 + $0x14] sm:$0xf] }
   0x2   :  { %49 = vst [vmem:[#allocation0 + $0x38] sm:$0xf] %v181_v0  ;;  %54 = vst [vmem:[#allocation0 + $0x30] sm:$0xf] %v182_v1  ;;  %v184_v3 = vld [vmem:[%s290_s0 + $0x10] sm:$0xf] }
   0x3   :  { %59 = vst [vmem:[#allocation0 + $0x28] sm:$0xf] %v183_v2  ;;  %v185_v4 = vld [vmem:[%s290_s0 + $0xc] sm:$0xf]  ;;  %v186_v5 = vld [vmem:[%s290_s0 + $0x8] sm:$0xf] }
   0x4   :  { %64 = vst [vmem:[#allocation0 + $0x20] sm:$0xf] %v184_v3  ;;  %69 = vst [vmem:[#allocation0 + $0x18] sm:$0xf] %v185_v4  ;;  %v187_v6 = vld [vmem:[%s290_s0 + $0x4] sm:$0xf] }
   0x5   :  { %74 = vst [vmem:[#allocation0 + $0x10] sm:$0xf] %v186_v5  ;;  %v79_v7 = vld [vmem:[%s290_s0] sm:$0xf]  ;;  %78 = vst [vmem:[#allocation0 + $0x8] sm:$0xf] %v187_v6 }
   0x6   :  { %80 = vst [vmem:[#allocation0] sm:$0xf] %v79_v7  ;;  %v173_v8 = vld [vmem:[%s290_s0 + $0x3c] sm:$0xf]  ;;  %v174_v9 = vld [vmem:[%s290_s0 + $0x38] sm:$0xf] }
   0x7   :  { %9 = vst [vmem:[#allocation0 + $0x78] sm:$0xf] %v173_v8  ;;  %14 = vst [vmem:[#allocation0 + $0x70] sm:$0xf] %v174_v9  ;;  %v175_v10 = vld [vmem:[%s290_s0 + $0x34] sm:$0xf] }
   0x8   :  { %v176_v11 = vld [vmem:[%s290_s0 + $0x30] sm:$0xf]  ;;  %v177_v12 = vld [vmem:[%s290_s0 + $0x2c] sm:$0xf]  ;;  %19 = vst [vmem:[#allocation0 + $0x68] sm:$0xf] %v175_v10 }
   0x9   :  { %24 = vst [vmem:[#allocation0 + $0x60] sm:$0xf] %v176_v11  ;;  %29 = vst [vmem:[#allocation0 + $0x58] sm:$0xf] %v177_v12  ;;  %v178_v13 = vld [vmem:[%s290_s0 + $0x28] sm:$0xf] }
   0xa   :  { %v179_v14 = vld [vmem:[%s290_s0 + $0x24] sm:$0xf]  ;;  %v180_v15 = vld [vmem:[%s290_s0 + $0x20] sm:$0xf]  ;;  %34 = vst [vmem:[#allocation0 + $0x50] sm:$0xf] %v178_v13 }
   0xb   :  { %39 = vst [vmem:[#allocation0 + $0x48] sm:$0xf] %v179_v14  ;;  %44 = vst [vmem:[#allocation0 + $0x40] sm:$0xf] %v180_v15  ;;  %s195_s0 = smov 32   ;;  %vm146_vm4 = vcmask 261248  }
   0xc   :  { %v120_v16 = vld [vmem:[#allocation0 + $0x2] ss:$8 sm:$0xf0]   ;;  %v99_v17 = vld [vmem:[#allocation0 + $0x3] ss:$8 sm:$0xf0]  }
   0xd   :  { %v118_v18 = vld [vmem:[#allocation0 + $0x2] ss:$8 sm:$0xf]   ;;  %v97_v19 = vld [vmem:[#allocation0 + $0x3] ss:$8 sm:$0xf]  }
   0xe   :  { %v122_v20 = vsel %vm83_vm0, %v120_v16, %v118_v18  ;;  %v101_v21 = vsel %vm83_vm0, %v99_v17, %v97_v19  ;;  %v139_v24 = vld [vmem:[#allocation0 + $0x1] ss:$8 sm:$0xf]   ;;  %v81_v32 = vld [vmem:[#allocation0] ss:$8 sm:$0xf]  }
   0xf   :  { %123 = vrot.lane.b32.xlu1 %v122_v20, %s195_s0  ;;  %102 = vrot.lane.b32.xlu0 %v101_v21, %s196_s9  ;;  %v141_v25 = vld [vmem:[#allocation0 + $0x1] ss:$8 sm:$0xf0]   ;;  %v82_v33 = vld [vmem:[#allocation0] ss:$8 sm:$0xf0]  }
  0x10   :  { %v130_v22 = vld [vmem:[#allocation0 + $0x42] ss:$8 sm:$0xf0]   ;;  %v109_v23 = vld [vmem:[#allocation0 + $0x43] ss:$8 sm:$0xf0]   ;;  %v84_v34 = vsel %vm83_vm0, %v82_v33, %v81_v32  ;;  %v143_v38 = vsel %vm83_vm0, %v141_v25, %v139_v24 }
  0x11   :  { %v151_v31 = vld [vmem:[#allocation0 + $0x41] ss:$8 sm:$0xf0]   ;;  %v90_v36 = vld [vmem:[#allocation0 + $0x40] ss:$8 sm:$0xf0]  }
  0x12   :  { %v128_v26 = vld [vmem:[#allocation0 + $0x42] ss:$8 sm:$0xf]   ;;  %v107_v27 = vld [vmem:[#allocation0 + $0x43] ss:$8 sm:$0xf]  }
  0x13   :  { %v132_v28 = vsel %vm83_vm0, %v130_v22, %v128_v26  ;;  %v111_v29 = vsel %vm83_vm0, %v109_v23, %v107_v27  ;;  %v149_v30 = vld [vmem:[#allocation0 + $0x41] ss:$8 sm:$0xf]   ;;  %v88_v35 = vld [vmem:[#allocation0 + $0x40] ss:$8 sm:$0xf]  }
  0x14   :  { %133 = vrot.lane.b32.xlu1 %v132_v28, %s195_s0  ;;  %112 = vrot.lane.b32.xlu0 %v111_v29, %s196_s9  ;;  %v153_v37 = vsel %vm83_vm0, %v151_v31, %v149_v30  ;;  %86 = vst.msk [vmem:[%s291_s1] sm:$0xff] %vm85_vm1, %v84_v34   ;;  %v92_v39 = vsel %vm83_vm0, %v90_v36, %v88_v35 }
  0x15   :  { %188 = vst.msk [vmem:[%s291_s1 + $0x8] sm:$0xff] %vm85_vm1, %v92_v39  }
  0x18   :  { %154 = vrot.lane.b32.xlu1 %v153_v37, %s197_s14  ;;  %144 = vrot.lane.b32.xlu0 %v143_v38, %s197_s14 }
  0x81   :  { %v124_v40 = vpop.permute.xlu1 %123   ;;  %v103_v41 = vpop.permute.xlu0 %102  }
  0x82   :  { %105 = vst.msk [vmem:[%s291_s1] sm:$0xff] %vm104_vm2, %v103_v41  }
  0x83   :  { %126 = vst.msk [vmem:[%s291_s1] sm:$0xff] %vm125_vm3, %v124_v40  }
  0x86   :  { %v134_v42 = vpop.permute.xlu1 %133   ;;  %v113_v43 = vpop.permute.xlu0 %112  }
  0x87   :  { %189 = vst.msk [vmem:[%s291_s1 + $0x8] sm:$0xff] %vm104_vm2, %v113_v43  }
  0x88   :  { %190 = vst.msk [vmem:[%s291_s1 + $0x8] sm:$0xff] %vm125_vm3, %v134_v42  }
  0x8a   :  { %v155_v44 = vpop.permute.xlu1 %154   ;;  %v145_v45 = vpop.permute.xlu0 %144  }
  0x8b   :  { %191 = vst.msk [vmem:[%s291_s1 + $0x8] sm:$0xff] %vm146_vm4, %v155_v44   ;;  %147 = vst.msk [vmem:[%s291_s1] sm:$0xff] %vm146_vm4, %v145_v45  }

// kernel: decoder_forward.1
= control target key start
LH: loop header
LB: loop body
LE: loop exit
PB: predicated region body
PF: predicated region fallthrough
CT: control target
= control target key end

     0   :  { %s4470_s3 = smov 12   ;;  %s4471_s10 = smov 10   ;;  %vm230_vm0 = vcmask 261120   ;;  %vm409_vm1 = vcmask 523264   ;;  %vm4486_vm2 = vmmov 0   ;;  %vm1031_vm3 = vcmask 1043456   ;;  %s5288_s0 = inlined_call_operand.smem [shape: u32[35], index: -1, kind: input, shape index: {}] }
   0x1   :  { %s4514_s6 = sld [smem:[%s5288_s0 + %s4470_s3]]   ;;  %s4472_s14 = smov 6   ;;  %vm1172_vm4 = vcmask 654336  }
   0x2   :  { %s1_s9 = sld [smem:[%s5288_s0]]   ;;  %s4473_s18 = smov 13  }
   0x3   :  { %s4522_s13 = sld [smem:[%s5288_s0 + %s4471_s10]]   ;;  %s4474_s22 = smov 4  }
   0x4   :  { %s4529_s17 = sld [smem:[%s5288_s0 + %s4472_s14]]   ;;  %s4475_s26 = smov 5  }
   0x5   :  { %s4560_s21 = sld [smem:[%s5288_s0 + %s4473_s18]]   ;;  %s4476_s30 = smov 11  }
   0x6   :  { %s4565_s25 = sld [smem:[%s5288_s0 + %s4474_s22]]   ;;  %s4477_s4 = smov 2  }
   0x7   :  { %v213_v0 = vld [vmem:[%s4514_s6 + $0x18] sm:$0xff]  ;;  %v212_v1 = vld [vmem:[%s4514_s6 + $0x10] sm:$0xff]  ;;  %v211_v3 = vld [vmem:[%s4514_s6 + $0x8] sm:$0xff]  ;;  %s4570_s29 = sld [smem:[%s5288_s0 + %s4475_s26]]   ;;  %s4479_s14 = smov 15  }
   0x8   :  { %3829 = vmatprep.subr.mxu1 %v213_v0  ;;  %v4531_v2 = vld [vmem:[%s1_s9] sm:$0xff]  ;;  %v4540_v8 = vld [vmem:[%s1_s9 + $0x8] sm:$0xff]  ;;  %s4575_s3 = sld [smem:[%s5288_s0 + %s4476_s30]]   ;;  %s4478_s9 = smov 14  }
   0x9   :  { %3830 = vmatpush3.msra.mxu1 %v213_v0  ;;  %3837 = vmatprep.mubr.msk.f32.mxu1 %vm230_vm0, %v4531_v2  ;;  %v208_v4 = vld [vmem:[%s4522_s13 + $0x18] sm:$0xff]  ;;  %v207_v5 = vld [vmem:[%s4522_s13 + $0x10] sm:$0xff]  ;;  %v210_v6 = vld [vmem:[%s4514_s6] sm:$0xff]  ;;  %s4625_s8 = sld [smem:[%s5288_s0 + %s4477_s4]]   ;;  %s4480_s19 = smov 18  }
   0xa   :  { %3831 = vmatprep.subr.mxu1 %v212_v1  ;;  %3818 = vmatprep.subr.mxu0 %v208_v4  ;;  %v206_v7 = vld [vmem:[%s4522_s13 + $0x8] sm:$0xff]  ;;  %v205_v9 = vld [vmem:[%s4522_s13] sm:$0xff]  ;;  %v174_v10 = vld [vmem:[%s4529_s17 + $0x38] sm:$0xff]  ;;  %s4651_s12 = sld [smem:[%s5288_s0 + %s4478_s9]]   ;;  %s4482_s24 = smov 16  }
   0xb   :  { %3832 = vmatpush3.msra.mxu1 %v212_v1  ;;  %3819 = vmatpush3.msra.mxu0 %v208_v4  ;;  %v173_v11 = vld [vmem:[%s4529_s17 + $0x30] sm:$0xff]  ;;  %v172_v12 = vld [vmem:[%s4529_s17 + $0x28] sm:$0xff]  ;;  %v171_v13 = vld [vmem:[%s4529_s17 + $0x20] sm:$0xff]  ;;  %s4668_s18 = sld [smem:[%s5288_s0 + %s4479_s14]]   ;;  %s4483_s30 = smov 17  }
   0xc   :  { %3833 = vmatprep.subr.mxu1 %v211_v3  ;;  %3820 = vmatprep.subr.mxu0 %v207_v5  ;;  %v170_v14 = vld [vmem:[%s4529_s17 + $0x18] sm:$0xff]  ;;  %v169_v15 = vld [vmem:[%s4529_s17 + $0x10] sm:$0xff]  ;;  %v168_v16 = vld [vmem:[%s4529_s17 + $0x8] sm:$0xff]  ;;  %s4680_s23 = sld [smem:[%s5288_s0 + %s4480_s19]]   ;;  %s4484_s5 = smov 20  }
   0xd   :  { %3834 = vmatpush3.msra.mxu1 %v211_v3  ;;  %3821 = vmatpush3.msra.mxu0 %v207_v5  ;;  %v167_v17 = vld [vmem:[%s4529_s17] sm:$0xff]  ;;  %v158_v20 = vld [vmem:[%s4565_s25 + $0x38] sm:$0xff]  ;;  %v157_v24 = vld [vmem:[%s4565_s25 + $0x30] sm:$0xff]  ;;  %s4690_s28 = sld [smem:[%s5288_s0 + %s4482_s24]]   ;;  %s4485_s11 = smov 1  }
   0xe   :  { %3835 = vmatprep.subr.mxu1 %v210_v6  ;;  %3822 = vmatprep.subr.mxu0 %v206_v7  ;;  %v3378_v18 = vld [vmem:[%s4560_s21] ss:$0 sm:$0xff]  ;;  %v166_v21 = vld [vmem:[%s4570_s29 + $0x38] sm:$0xff]  ;;  %v156_v32 = vld [vmem:[%s4565_s25 + $0x28] sm:$0xff]  ;;  %s4695_s4 = sld [smem:[%s5288_s0 + %s4483_s30]]   ;;  %s4487_s19 = smov 9  }
   0xf   :  { %3836 = vmatpush3.msra.mxu1 %v210_v6  ;;  %3823 = vmatpush3.msra.mxu0 %v206_v7  ;;  %v3375_v29 = vld [vmem:[%s4575_s3] ss:$0 sm:$0xff]  ;;  %v154_v37 = vld [vmem:[%s4565_s25 + $0x18] sm:$0xff]  ;;  %v153_v39 = vld [vmem:[%s4565_s25 + $0x10] sm:$0xff]  ;;  %s4701_s10 = sld [smem:[%s5288_s0 + %s4484_s5]]   ;;  %s4488_s26 = smov 19  }
  0x10   :  { %3838 = vmatmul.mubr.msk.f32.vlgmr.msra.gmra.mxu1 %vm230_vm0, %v4540_v8  ;;  %3824 = vmatprep.subr.mxu0 %v205_v9  ;;  %v155_v35 = vld [vmem:[%s4565_s25 + $0x20] sm:$0xff]  ;;  %v152_v41 = vld [vmem:[%s4565_s25 + $0x8] sm:$0xff]  ;;  %v165_v61 = vld [vmem:[%s4570_s29 + $0x30] sm:$0xff]  ;;  %s4711_s16 = sld [smem:[%s5288_s0 + %s4485_s11]]   ;;  %s4489_s2 = smov 21  }
  0x11   :  { %3825 = vmatpush3.msra.mxu0 %v205_v9  ;;  %3826 = vmatprep.mubr.msk.f32.mxu0 %vm230_vm0, %v4531_v2  ;;  %v151_v43 = vld [vmem:[%s4565_s25] sm:$0xff]  ;;  %v148_v48 = vld [vmem:[%s4625_s8 + $0x8] sm:$0xff]  ;;  %v162_v4 = vld [vmem:[%s4570_s29 + $0x18] sm:$0xff]  ;;  %s4739_s24 = sld [smem:[%s5288_s0 + %s4487_s19]]   ;;  %s4490_s11 = smov 7  }
  0x12   :  { %3827 = vmatmul.mubr.msk.f32.vlgmr.msra.gmra.mxu0 %vm230_vm0, %v4540_v8  ;;  %3859 = vmatprep.subr.mxu1 %v174_v10  ;;  %v147_v47 = vld [vmem:[%s4625_s8] sm:$0xff]  ;;  %v164_v63 = vld [vmem:[%s4570_s29 + $0x28] sm:$0xff]  ;;  %v161_v6 = vld [vmem:[%s4570_s29 + $0x10] sm:$0xff]  ;;  %s4754_s1 = sld [smem:[%s5288_s0 + %s4488_s26]]   ;;  %s4491_s20 = smov 8  }
  0x13   :  { %3860 = vmatpush3.msra.mxu1 %v174_v10  ;;  %v163_v1 = vld [vmem:[%s4570_s29 + $0x20] sm:$0xff]  ;;  %v160_v9 = vld [vmem:[%s4570_s29 + $0x8] sm:$0xff]  ;;  %s4765_s9 = sld [smem:[%s5288_s0 + %s4489_s2]]   ;;  %s4492_s30 = smov 3  }
  0x14   :  { %3861 = vmatprep.subr.mxu1 %v173_v11  ;;  %s4772_s19 = sld [smem:[%s5288_s0 + %s4490_s11]]   ;;  %s4493_s11 = smov 22  }
  0x15   :  { %3862 = vmatpush3.msra.mxu1 %v173_v11  ;;  %v159_v11 = vld [vmem:[%s4570_s29] sm:$0xff]  ;;  %s4779_s27 = sld [smem:[%s5288_s0 + %s4491_s20]]   ;;  %s4494_s22 = smov 23  }
  0x16   :  { %3863 = vmatprep.subr.mxu1 %v172_v12  ;;  %s4845_s7 = sld [smem:[%s5288_s0 + %s4492_s30]]   ;;  %s4495_s5 = smov 26  }
  0x17   :  { %3864 = vmatpush3.msra.mxu1 %v172_v12  ;;  %s4881_s20 = sld [smem:[%s5288_s0 + %s4493_s11]]   ;;  %s4497_s11 = smov 24  }
  0x18   :  { %3865 = vmatprep.subr.mxu1 %v171_v13  ;;  %s4900_s2 = sld [smem:[%s5288_s0 + %s4494_s22]]   ;;  %s4496_s22 = smov 28  }
  0x19   :  { %3866 = vmatpush3.msra.mxu1 %v171_v13  ;;  %s4912_s15 = sld [smem:[%s5288_s0 + %s4495_s5]]   ;;  %s4500_s26 = smov 29  }
  0x1a   :  { %3867 = vmatprep.subr.mxu1 %v170_v14  ;;  %s4921_s5 = sld [smem:[%s5288_s0 + %s4496_s22]]   ;;  %s4498_s22 = smov 25  }
  0x1b   :  { %3868 = vmatpush3.msra.mxu1 %v170_v14  ;;  %v222_v14 = vld [vmem:[%s4651_s12 + $0x38] sm:$0xff]  ;;  %s4502_s14 = smov 31  }
  0x1c   :  { %3869 = vmatprep.subr.mxu1 %v169_v15 }
  0x1d   :  { %3870 = vmatpush3.msra.mxu1 %v169_v15  ;;  %v221_v15 = vld [vmem:[%s4651_s12 + $0x30] sm:$0xff]  ;;  %5297 = sst [smem:[#allocation2_spill]] %s4881_s20 }
  0x1e   :  { %3871 = vmatprep.subr.mxu1 %v168_v16  ;;  %5298 = sst [smem:[#allocation3_spill]] %s4900_s2 }
  0x1f   :  { %3872 = vmatpush3.msra.mxu1 %v168_v16  ;;  %v220_v16 = vld [vmem:[%s4651_s12 + $0x28] sm:$0xff]  ;;  %5299 = sst [smem:[#allocation4_spill]] %s4912_s15 }
  0x20   :  { %3873 = vmatprep.subr.mxu1 %v167_v17 }
  0x21   :  { %3874 = vmatpush3.msra.mxu1 %v167_v17  ;;  %v219_v17 = vld [vmem:[%s4651_s12 + $0x20] sm:$0xff] }
  0xd0   :  { %v3839_v19 = vpop.f32.mrf.mxu1 }
  0xd1   :  { %v4580_v22 = vadd.f32 %v3839_v19, %v3378_v18  ;;  %v217_v19 = vld [vmem:[%s4651_s12 + $0x10] sm:$0xff] }
  0xd2   :  { %v384_v23 = vpop.f32.mrf.mxu1  ;;  %v3828_v25 = vpop.f32.mrf.mxu0 }
  0xd3   :  { %v4583_v26 = vadd.f32 %v3378_v18, %v384_v23  ;;  %v400_v27 = vmul.f32 %v4580_v22, %v158_v20  ;;  %v4587_v28 = vmul.f32 %v4580_v22, %v166_v21  ;;  %v398_v34 = vmul.f32 %v4580_v22, %v156_v32  ;;  %v218_v18 = vld [vmem:[%s4651_s12 + $0x18] sm:$0xff] }
  0xd4   :  { %v303_v30 = vpop.f32.mrf.mxu0  ;;  %v396_v38 = vmul.f32 %v4580_v22, %v154_v37  ;;  %v394_v42 = vmul.f32 %v4580_v22, %v152_v41  ;;  %v309_v45 = vadd.f32 %v3828_v25, %v3375_v29  ;;  %v406_v3 = vmul.f32 %v4580_v22, %v164_v63 }
  0xd5   :  { %3840 = vmatprep.subr.msk.mxu0 %vm409_vm1, %v400_v27  ;;  %3878 = vmatprep.subr.mxu1 %v4587_v28  ;;  %v399_v31 = vmul.f32 %v4583_v26, %v157_v24  ;;  %v304_v33 = vadd.f32 %v3375_v29, %v303_v30  ;;  %v397_v36 = vmul.f32 %v4583_v26, %v155_v35 }
  0xd6   :  { %3841 = vmatpush3.xpose.msk.msra.mxu0 %vm409_vm1, %v400_v27  ;;  %v395_v40 = vmul.f32 %v4583_v26, %v153_v39  ;;  %v393_v44 = vmul.f32 %v4583_v26, %v151_v43  ;;  %v407_v0 = vmul.f32 %v4583_v26, %v165_v61  ;;  %v405_v5 = vmul.f32 %v4583_v26, %v163_v1  ;;  %v215_v27 = vld [vmem:[%s4651_s12] sm:$0xff] }
  0xd7   :  { %3842 = vmatprep.subr.msk.mxu0 %vm409_vm1, %v399_v31  ;;  %3856 = vmatprep.mubr.msk.f32.mxu0 %vm409_vm1, %v304_v33  ;;  %v404_v7 = vmul.f32 %v4580_v22, %v162_v4  ;;  %v403_v10 = vmul.f32 %v4583_v26, %v161_v6  ;;  %v402_v12 = vmul.f32 %v4580_v22, %v160_v9  ;;  %v3399_v61 = vld [vmem:[%s4695_s4] ss:$0 sm:$0xff]  ;;  %v834_v6 = vld [vmem:[%s4701_s10 + $0x10] sm:$0xff] }
  0xd8   :  { %v401_v13 = vmul.f32 %v4583_v26, %v159_v11  ;;  %v216_v26 = vld [vmem:[%s4651_s12 + $0x8] sm:$0xff]  ;;  %v832_v9 = vld [vmem:[%s4701_s10] sm:$0xff] }
  0xd9   :  { %v145_v11 = vld [vmem:[%s4711_s16 + $0x8] sm:$0xff] }
  0xda   :  { %3843 = vmatpush3.xpose.msk.msra.mxu0 %vm409_vm1, %v399_v31  ;;  %v3395_v31 = vld [vmem:[%s4668_s18] ss:$0 sm:$0xff] }
  0xdb   :  { %3844 = vmatprep.subr.msk.mxu0 %vm409_vm1, %v398_v34 }
  0xde   :  { %3845 = vmatpush3.xpose.msk.msra.mxu0 %vm409_vm1, %v398_v34 }
  0xdf   :  { %3846 = vmatprep.subr.msk.mxu0 %vm409_vm1, %v397_v36 }
  0xe2   :  { %3847 = vmatpush3.xpose.msk.msra.mxu0 %vm409_vm1, %v397_v36 }
  0xe3   :  { %3848 = vmatprep.subr.msk.mxu0 %vm409_vm1, %v396_v38 }
  0xe6   :  { %3849 = vmatpush3.xpose.msk.msra.mxu0 %vm409_vm1, %v396_v38 }
  0xe7   :  { %3850 = vmatprep.subr.msk.mxu0 %vm409_vm1, %v395_v40 }
  0xea   :  { %3851 = vmatpush3.xpose.msk.msra.mxu0 %vm409_vm1, %v395_v40 }
  0xeb   :  { %3852 = vmatprep.subr.msk.mxu0 %vm409_vm1, %v394_v42 }
  0xee   :  { %3853 = vmatpush3.xpose.msk.msra.mxu0 %vm409_vm1, %v394_v42 }
  0xef   :  { %3854 = vmatprep.subr.msk.mxu0 %vm409_vm1, %v393_v44 }
  0xf2   :  { %3855 = vmatpush3.xpose.msk.msra.mxu0 %vm409_vm1, %v393_v44 }
  0xf3   :  { %3897 = vmatprep.subr.mxu0 %v222_v14 }
  0xf5   :  { %3857 = vmatmul.mubr.msk.f32.vlgmr.msra.gmra.mxu0 %vm409_vm1, %v309_v45 }
  0xf6   :  { %3898 = vmatpush3.msra.mxu0 %v222_v14  ;;  %v203_v14 = vld [vmem:[%s4739_s24 + $0x40] sm:$0xff] }
  0xf7   :  { %3899 = vmatprep.subr.mxu0 %v221_v15 }
  0xf8   :  { %3900 = vmatpush3.msra.mxu0 %v221_v15  ;;  %v202_v15 = vld [vmem:[%s4739_s24 + $0x38] sm:$0xff] }
  0xf9   :  { %3901 = vmatprep.subr.mxu0 %v220_v16 }
  0xfa   :  { %3902 = vmatpush3.msra.mxu0 %v220_v16  ;;  %v201_v16 = vld [vmem:[%s4739_s24 + $0x30] sm:$0xff] }
  0xfb   :  { %3903 = vmatprep.subr.mxu0 %v219_v17 }
  0xfc   :  { %3904 = vmatpush3.msra.mxu0 %v219_v17  ;;  %v200_v17 = vld [vmem:[%s4739_s24 + $0x28] sm:$0xff] }
  0xfd   :  { %3905 = vmatprep.subr.mxu0 %v218_v18 }
  0xfe   :  { %3906 = vmatpush3.msra.mxu0 %v218_v18  ;;  %v199_v18 = vld [vmem:[%s4739_s24 + $0x20] sm:$0xff] }
  0xff   :  { %3907 = vmatprep.subr.mxu0 %v217_v19 }
 0x100   :  { %3908 = vmatpush3.msra.mxu0 %v217_v19  ;;  %v198_v19 = vld [vmem:[%s4739_s24 + $0x18] sm:$0xff] }
 0x101   :  { %3909 = vmatprep.subr.mxu0 %v216_v26 }
 0x102   :  { %3910 = vmatpush3.msra.mxu0 %v216_v26 }
 0x103   :  { %3911 = vmatprep.subr.mxu0 %v215_v27 }
 0x104   :  { %3912 = vmatpush3.msra.mxu0 %v215_v27 }
 0x1b5   :  { %v3858_v46 = vpop.f32.mrf.mxu0 }
 0x1b6   :  { %v512_v51 = vadd.f32 %v3858_v46, %v148_v48  ;;  %v829_v48 = vld [vmem:[%s4680_s23 + $0x10] sm:$0xff] }
 0x1b7   :  { %v506_v49 = vpop.f32.mrf.mxu0 }
 0x1b8   :  { %v507_v50 = vadd.f32 %v506_v49, %v147_v47  ;;  %v518_v53 = vsel %vm409_vm1, %v512_v51, -inf  ;;  %v828_v49 = vld [vmem:[%s4680_s23 + $0x8] sm:$0xff] }
 0x1ba   :  { %v515_v52 = vsel %vm409_vm1, %v507_v50, -inf }
 0x1bb   :  { %516 = vmax.xlane.f32.xlu0 %v515_v52 }
 0x1bf   :  { %519 = vmax.xlane.f32.xlu0 %v518_v53 }
 0x244   :  { %v517_v54 = vpop.xlane.xlu0 %516 }
 0x245   :  { %v521_v55 = vsub.f32 %v507_v50, %v517_v54  ;;  %v827_v50 = vld [vmem:[%s4680_s23] sm:$0xff] }
 0x247   :  { %v523_v56 = vmul.f32 1.442695, %v521_v55 }
 0x248   :  { %v520_v57 = vpop.xlane.xlu0 %519 }
 0x249   :  { %4353 = vpow2.f32 %v523_v56  ;;  %v522_v58 = vsub.f32 %v512_v51, %v520_v57  ;;  %v4481_v51 = vmov 0.0  }
 0x24b   :  { %v525_v59 = vmul.f32 1.442695, %v522_v58 }
 0x24d   :  { %4355 = vpow2.f32 %v525_v59  ;;  %v3398_v59 = vld [vmem:[%s4690_s28] ss:$0 sm:$0xff] }
 0x256   :  { %v4354_v60 = vpop.eup %4353 }
 0x257   :  { %3875 = vmatprep.mubr.msk.f32.mxu1 %vm409_vm1, %v4354_v60 }
 0x25a   :  { %v4356_v62 = vpop.eup %4355 }
 0x25b   :  { %3876 = vmatmul.mubr.msk.f32.vlgmr.msra.gmra.mxu1 %vm409_vm1, %v4356_v62 }
 0x25c   :  { %3879 = vmatpush3.msra.mxu1 %v4587_v28 }
 0x25d   :  { %3880 = vmatprep.subr.mxu1 %v407_v0 }
 0x25e   :  { %3881 = vmatpush3.msra.mxu1 %v407_v0 }
 0x25f   :  { %3882 = vmatprep.subr.mxu1 %v406_v3 }
 0x260   :  { %3883 = vmatpush3.msra.mxu1 %v406_v3 }
 0x261   :  { %3884 = vmatprep.subr.mxu1 %v405_v5 }
 0x262   :  { %3885 = vmatpush3.msra.mxu1 %v405_v5  ;;  %v835_v5 = vld [vmem:[%s4701_s10 + $0x18] sm:$0xff] }
 0x263   :  { %3886 = vmatprep.subr.mxu1 %v404_v7 }
 0x264   :  { %3887 = vmatpush3.msra.mxu1 %v404_v7  ;;  %v833_v7 = vld [vmem:[%s4701_s10 + $0x8] sm:$0xff] }
 0x265   :  { %3888 = vmatprep.subr.mxu1 %v403_v10 }
 0x266   :  { %3889 = vmatpush3.msra.mxu1 %v403_v10  ;;  %v144_v10 = vld [vmem:[%s4711_s16] sm:$0xff] }
 0x267   :  { %3890 = vmatprep.subr.mxu1 %v402_v12 }
 0x268   :  { %3891 = vmatpush3.msra.mxu1 %v402_v12  ;;  %v146_v12 = vld [vmem:[%s4711_s16 + $0x10] sm:$0xf] }
 0x269   :  { %3892 = vmatprep.subr.mxu1 %v401_v13 }
 0x26a   :  { %3893 = vmatpush3.msra.mxu1 %v401_v13  ;;  %v204_v13 = vld [vmem:[%s4739_s24 + $0x48] sm:$0xff] }
 0x31b   :  { %v3877_v20 = vpop.f32.mrf.mxu1 }
 0x31c   :  { %4357 = vrcp.f32 %v3877_v20  ;;  %v197_v20 = vld [vmem:[%s4739_s24 + $0x10] sm:$0xff] }
 0x31d   :  { %v599_v21 = vpop.f32.mrf.mxu1 }
 0x31e   :  { %4359 = vrcp.f32 %v599_v21  ;;  %v196_v21 = vld [vmem:[%s4739_s24 + $0x8] sm:$0xff] }
 0x329   :  { %v4358_v22 = vpop.eup %4357 }
 0x32a   :  { %v611_v25 = vmul.f32 %v4358_v22, %v4356_v62  ;;  %v195_v22 = vld [vmem:[%s4739_s24] sm:$0xff] }
 0x32b   :  { %v4360_v23 = vpop.eup %4359 }
 0x32c   :  { %v610_v24 = vmul.f32 %v4360_v23, %v4354_v60 }
 0x32e   :  { %3894 = vmatprep.mubr.msk.f32.mxu1 %vm409_vm1, %v610_v24  ;;  %v4759_v24 = vld [vmem:[%s4754_s1] ss:$0 sm:$0xff] }
 0x32f   :  { %3895 = vmatmul.mubr.msk.f32.vlgmr.msra.gmra.mxu1 %vm409_vm1, %v611_v25 }
 0x3ef   :  { %v3896_v28 = vpop.f32.mrf.mxu1 }
 0x3f1   :  { %v684_v29 = vpop.f32.mrf.mxu1 }
 0x3f2   :  { %3913 = vmatprep.mubr.msk.f32.mxu0 %vm409_vm1, %v684_v29  ;;  %v3403_v29 = vld [vmem:[%s4765_s9] ss:$0 sm:$0xff] }
 0x3f3   :  { %3914 = vmatmul.mubr.msk.f32.vlgmr.msra.gmra.mxu0 %vm409_vm1, %v3896_v28 }
 0x4b3   :  { %v3915_v30 = vpop.f32.mrf.mxu0 }
 0x4b4   :  { %v777_v33 = vadd.f32 %v3915_v30, %v3395_v31 }
 0x4b5   :  { %v771_v32 = vpop.f32.mrf.mxu0 }
 0x4b6   :  { %v772_v34 = vadd.f32 %v3395_v31, %v771_v32  ;;  %v781_v37 = vadd.f32 %v777_v33, %v4540_v8  ;;  %v830_v8 = vld [vmem:[%s4680_s23 + $0x18] sm:$0xff] }
 0x4b7   :  { %3916 = vmatprep.subr.mxu1 %v830_v8 }
 0x4b8   :  { %v780_v35 = vadd.f32 %v772_v34, %v4531_v2  ;;  %v787_v38 = vsel %vm230_vm0, %v781_v37, 0.0  ;;  %3917 = vmatpush3.msra.mxu1 %v830_v8  ;;  %v182_v8 = vld [vmem:[%s4772_s19 + $0x38] sm:$0xff] }
 0x4b9   :  { %3918 = vmatprep.subr.mxu1 %v829_v48 }
 0x4ba   :  { %v784_v36 = vsel %vm230_vm0, %v780_v35, 0.0  ;;  %3919 = vmatpush3.msra.mxu1 %v829_v48 }
 0x4bb   :  { %785 = vadd.xlane.f32.xlu1 %v784_v36  ;;  %3920 = vmatprep.subr.mxu1 %v828_v49 }
 0x4bc   :  { %3921 = vmatpush3.msra.mxu1 %v828_v49  ;;  %v181_v49 = vld [vmem:[%s4772_s19 + $0x30] sm:$0xff] }
 0x4bd   :  { %3922 = vmatprep.subr.mxu1 %v827_v50 }
 0x4be   :  { %3923 = vmatpush3.msra.mxu1 %v827_v50 }
 0x4bf   :  { %788 = vadd.xlane.f32.xlu1 %v787_v38  ;;  %3927 = vmatprep.subr.mxu1 %v4481_v51 }
 0x544   :  { %v786_v39 = vpop.xlane.xlu1 %785 }
 0x545   :  { %v791_v40 = vmul.f32 0.03125, %v786_v39 }
 0x547   :  { %v793_v41 = vsub.f32 %v780_v35, %v791_v40  ;;  %v184_v40 = vld [vmem:[%s4772_s19 + $0x48] sm:$0xff] }
 0x548   :  { %v789_v42 = vpop.xlane.xlu1 %788 }
 0x549   :  { %v792_v43 = vmul.f32 0.03125, %v789_v42  ;;  %v795_v44 = vmul.f32 %v793_v41, %v793_v41 }
 0x54b   :  { %v794_v45 = vsub.f32 %v781_v37, %v792_v43  ;;  %v797_v46 = vsel %vm230_vm0, %v795_v44, 0.0  ;;  %v183_v43 = vld [vmem:[%s4772_s19 + $0x40] sm:$0xff] }
 0x54c   :  { %798 = vadd.xlane.f32.xlu0 %v797_v46 }
 0x54d   :  { %v796_v47 = vmul.f32 %v794_v45, %v794_v45 }
 0x54f   :  { %v800_v2 = vsel %vm230_vm0, %v796_v47, 0.0 }
 0x550   :  { %801 = vadd.xlane.f32.xlu1 %v800_v2 }
 0x5d5   :  { %v799_v52 = vpop.xlane.xlu0 %798 }
 0x5d6   :  { %v803_v53 = vmul.f32 0.03125, %v799_v52  ;;  %v180_v52 = vld [vmem:[%s4772_s19 + $0x28] sm:$0xff] }
 0x5d8   :  { %v805_v54 = vadd.f32 1e-05, %v803_v53 }
 0x5d9   :  { %v802_v55 = vpop.xlane.xlu1 %801 }
 0x5da   :  { %4361 = vrsqrt.f32 %v805_v54  ;;  %v804_v56 = vmul.f32 0.03125, %v802_v55  ;;  %v179_v54 = vld [vmem:[%s4772_s19 + $0x20] sm:$0xff] }
 0x5dc   :  { %v806_v57 = vadd.f32 1e-05, %v804_v56  ;;  %v178_v56 = vld [vmem:[%s4772_s19 + $0x18] sm:$0xff] }
 0x5de   :  { %4363 = vrsqrt.f32 %v806_v57 }
 0x5e7   :  { %v4362_v58 = vpop.eup %4361 }
 0x5e8   :  { %v809_v60 = vmul.f32 %v4362_v58, %v793_v41  ;;  %v194_v41 = vld [vmem:[%s4779_s27 + $0x48] sm:$0xff]  ;;  %v177_v58 = vld [vmem:[%s4772_s19 + $0x10] sm:$0xff] }
 0x5ea   :  { %v817_v62 = vmul.f32 %v3398_v59, %v809_v60  ;;  %v176_v60 = vld [vmem:[%s4772_s19 + $0x8] sm:$0xff] }
 0x5eb   :  { %v4364_v63 = vpop.eup %4363 }
 0x5ec   :  { %v810_v0 = vmul.f32 %v4364_v63, %v794_v45  ;;  %v4704_v1 = vadd.f32 %v3399_v61, %v817_v62  ;;  %v175_v62 = vld [vmem:[%s4772_s19] sm:$0xff] }
 0x5ee   :  { %v818_v3 = vmul.f32 %v3398_v59, %v810_v0  ;;  %3924 = vmatprep.mubr.msk.f32.mxu1 %vm230_vm0, %v4704_v1 }
 0x5f0   :  { %v4713_v4 = vadd.f32 %v3399_v61, %v818_v3  ;;  %v150_v3 = vld [vmem:[%s4845_s7 + $0x8] sm:$0xff] }
 0x5f2   :  { %3925 = vmatmul.mubr.msk.f32.vlgmr.msra.gmra.mxu1 %vm230_vm0, %v4713_v4 }
 0x5f3   :  { %3928 = vmatpush3.msra.mxu1 %v835_v5  ;;  %3935 = vmatprep.mubr.msk.f32.mxu1 %vm4486_vm2, %v4481_v51 }
 0x5f4   :  { %3929 = vmatprep.subr.mxu1 %v4481_v51 }
 0x5f5   :  { %3930 = vmatpush3.msra.mxu1 %v834_v6  ;;  %v149_v6 = vld [vmem:[%s4845_s7] sm:$0xff] }
 0x5f6   :  { %3931 = vmatprep.subr.mxu1 %v4481_v51 }
 0x5f7   :  { %3932 = vmatpush3.msra.mxu1 %v833_v7 }
 0x5f8   :  { %3933 = vmatprep.subr.mxu1 %v4481_v51 }
 0x5f9   :  { %3934 = vmatpush3.msra.mxu1 %v832_v9 }
 0x5fa   :  { %3936 = vmatmul.mubr.msk.f32.vlgmr.msra.gmra.mxu1 %vm230_vm0, %v144_v10  ;;  %3967 = vmatprep.subr.mxu1 %v204_v13 }
 0x5fb   :  { %3938 = vmatprep.mubr.msk.f32.mxu1 %vm4486_vm2, %v4481_v51  ;;  %3968 = vmatpush3.msra.mxu1 %v204_v13 }
 0x5fc   :  { %3969 = vmatprep.subr.mxu1 %v203_v14 }
 0x5fd   :  { %3970 = vmatpush3.msra.mxu1 %v203_v14 }
 0x5fe   :  { %3939 = vmatmul.mubr.msk.f32.gmra.mxu1 %vm230_vm0, %v145_v11  ;;  %3971 = vmatprep.subr.mxu1 %v202_v15 }
 0x5ff   :  { %3941 = vmatprep.mubr.msk.f32.mxu1 %vm4486_vm2, %v4481_v51  ;;  %3972 = vmatpush3.msra.mxu1 %v202_v15 }
 0x600   :  { %3973 = vmatprep.subr.mxu1 %v201_v16 }
 0x601   :  { %3974 = vmatpush3.msra.mxu1 %v201_v16 }
 0x602   :  { %3942 = vmatmul.mubr.msk.f32.gmra.mxu1 %vm230_vm0, %v146_v12  ;;  %3975 = vmatprep.subr.mxu1 %v200_v17 }
 0x603   :  { %3976 = vmatpush3.msra.mxu1 %v200_v17 }
 0x604   :  { %3977 = vmatprep.subr.mxu1 %v199_v18 }
 0x605   :  { %3978 = vmatpush3.msra.mxu1 %v199_v18 }
 0x606   :  { %3979 = vmatprep.subr.mxu1 %v198_v19 }
 0x607   :  { %3980 = vmatpush3.msra.mxu1 %v198_v19  ;;  %v193_v19 = vld [vmem:[%s4779_s27 + $0x40] sm:$0xff] }
 0x608   :  { %3981 = vmatprep.subr.mxu1 %v197_v20 }
 0x609   :  { %3982 = vmatpush3.msra.mxu1 %v197_v20 }
 0x60a   :  { %3983 = vmatprep.subr.mxu1 %v196_v21 }
 0x60b   :  { %3984 = vmatpush3.msra.mxu1 %v196_v21 }
 0x60c   :  { %3985 = vmatprep.subr.mxu1 %v195_v22 }
 0x60d   :  { %3986 = vmatpush3.msra.mxu1 %v195_v22  ;;  %v192_v22 = vld [vmem:[%s4779_s27 + $0x38] sm:$0xff] }
 0x6b2   :  { %v4756_v23 = vpop.f32.mrf.mxu1 }
 0x6b3   :  { %v930_v0 = vadd.f32 %v4756_v23, %v4759_v24 }
 0x6b4   :  { %v924_v25 = vpop.f32.mrf.mxu1 }
 0x6b5   :  { %v925_v26 = vadd.f32 %v4759_v24, %v924_v25  ;;  %v191_v24 = vld [vmem:[%s4779_s27 + $0x30] sm:$0xff] }
 0x6b7   :  { %3964 = vmatprep.mubr.msk.f32.mxu0 %vm409_vm1, %v925_v26  ;;  %v190_v26 = vld [vmem:[%s4779_s27 + $0x28] sm:$0xff] }
 0x6ba   :  { %v1014_v27 = vpop.f32.mrf.mxu1 }
 0x6bb   :  { %v4781_v33 = vadd.f32 %v3403_v29, %v1014_v27 }
 0x6bc   :  { %v3937_v28 = vpop.f32.mrf.mxu1 }
 0x6bd   :  { %v1032_v38 = vrot.slane %v4781_v33, 4  ;;  %v1046_v53 = vmul.f32 %v4781_v33, %v180_v52  ;;  %v1041_v63 = vmul.f32 %v4781_v33, %v175_v62  ;;  %v189_v28 = vld [vmem:[%s4779_s27 + $0x20] sm:$0xff] }
 0x6be   :  { %v1019_v30 = vpop.f32.mrf.mxu1 }
 0x6bf   :  { %v4774_v31 = vadd.f32 %v3403_v29, %v1019_v30  ;;  %v188_v30 = vld [vmem:[%s4779_s27 + $0x18] sm:$0xff] }
 0x6c0   :  { %v3940_v32 = vpop.f32.mrf.mxu1 }
 0x6c1   :  { %v1033_v36 = vrot.slane %v4774_v31, 4  ;;  %v1047_v50 = vmul.f32 %v4774_v31, %v181_v49  ;;  %v1042_v61 = vmul.f32 %v4774_v31, %v176_v60  ;;  %v1057_v27 = vmul.f32 %v4774_v31, %v191_v24  ;;  %v838_v49 = vld [vmem:[%s4881_s20 + $0x8] sm:$0xff] }
 0x6c2   :  { %v1024_v34 = vpop.f32.mrf.mxu1 }
 0x6c3   :  { %v1025_v35 = vadd.f32 %v3403_v29, %v1024_v34  ;;  %v4792_v44 = vsel %vm1031_vm3, %v1032_v38, %v1033_v36  ;;  %v1056_v29 = vmul.f32 %v4781_v33, %v190_v26  ;;  %v187_v34 = vld [vmem:[%s4779_s27 + $0x10] sm:$0xff] }
 0x6c4   :  { %v3943_v37 = vpop.f32.mrf.mxu1  ;;  %v1049_v47 = vmul.f32 %v4792_v44, %v183_v43  ;;  %v1044_v57 = vmul.f32 %v4792_v44, %v178_v56  ;;  %v1059_v23 = vmul.f32 %v4792_v44, %v193_v19  ;;  %v840_v43 = vld [vmem:[%s4881_s20 + $0x18] sm:$0xff] }
 0x6c5   :  { %v1035_v39 = vrot.slane %v1025_v35, 4  ;;  %v4802_v2 = vsel %vm1031_vm3, %v1025_v35, %v1032_v38  ;;  %v1054_v35 = vmul.f32 %v4792_v44, %v188_v30  ;;  %v185_v38 = vld [vmem:[%s4779_s27] sm:$0xff]  ;;  %v839_v44 = vld [vmem:[%s4881_s20 + $0x10] sm:$0xff] }
 0x6c6   :  { %v1048_v48 = vmul.f32 %v4802_v2, %v182_v8  ;;  %v1043_v59 = vmul.f32 %v4802_v2, %v177_v58  ;;  %v1058_v25 = vmul.f32 %v4802_v2, %v192_v22  ;;  %v1053_v37 = vmul.f32 %v4802_v2, %v187_v34  ;;  %v1584_v34 = vld [vmem:[%s4921_s5 + $0x30] sm:$0xff] }
 0x6c7   :  { %v4788_v42 = vsel %vm1031_vm3, %v1033_v36, %v1035_v39  ;;  %v186_v36 = vld [vmem:[%s4779_s27 + $0x8] sm:$0xff] }
 0x6c8   :  { %v1050_v45 = vmul.f32 %v4788_v42, %v184_v40  ;;  %v4796_v46 = vmul.f32 %v4788_v42, %v194_v41  ;;  %v1045_v55 = vmul.f32 %v4788_v42, %v179_v54  ;;  %v1055_v32 = vmul.f32 %v4788_v42, %v189_v28  ;;  %v843_v41 = vld [vmem:[%s4881_s20 + $0x30] sm:$0xff]  ;;  %v841_v42 = vld [vmem:[%s4881_s20 + $0x20] sm:$0xff] }
 0x6c9   :  { %v1052_v39 = vmul.f32 %v4774_v31, %v186_v36  ;;  %v1051_v40 = vmul.f32 %v4781_v33, %v185_v38  ;;  %v844_v31 = vld [vmem:[%s4881_s20 + $0x38] sm:$0xff]  ;;  %v842_v33 = vld [vmem:[%s4881_s20 + $0x28] sm:$0xff]  ;;  %v3423_v54 = vld [vmem:[%s4900_s2] ss:$0 sm:$0xff]  ;;  %s4927_s2 = sld [smem:[%s5288_s0 + %s4497_s11]]  }
 0x6ca   :  { %3944 = vmatprep.subr.msk.mxu0 %vm409_vm1, %v1050_v45  ;;  %3990 = vmatprep.subr.mxu1 %v4796_v46  ;;  %v1582_v36 = vld [vmem:[%s4921_s5 + $0x20] sm:$0xff]  ;;  %v1580_v38 = vld [vmem:[%s4921_s5 + $0x10] sm:$0xff] }
 0x6cb   :  { %3945 = vmatpush3.xpose.msk.msra.mxu0 %vm409_vm1, %v1050_v45 }
 0x6cc   :  { %3946 = vmatprep.subr.msk.mxu0 %vm409_vm1, %v1049_v47 }
 0x6cf   :  { %3947 = vmatpush3.xpose.msk.msra.mxu0 %vm409_vm1, %v1049_v47  ;;  %5300 = sst [smem:[#allocation5_spill]] %s4927_s2 }
 0x6d0   :  { %3948 = vmatprep.subr.msk.mxu0 %vm409_vm1, %v1048_v48 }
 0x6d3   :  { %3949 = vmatpush3.xpose.msk.msra.mxu0 %vm409_vm1, %v1048_v48 }
 0x6d4   :  { %3950 = vmatprep.subr.msk.mxu0 %vm409_vm1, %v1047_v50 }
 0x6d7   :  { %3951 = vmatpush3.xpose.msk.msra.mxu0 %vm409_vm1, %v1047_v50  ;;  %v837_v50 = vld [vmem:[%s4881_s20] sm:$0xff]  ;;  %s4932_s20 = sld [smem:[%s5288_s0 + %s4498_s22]]  }
 0x6d8   :  { %3952 = vmatprep.subr.msk.mxu0 %vm409_vm1, %v1046_v53 }
 0x6db   :  { %3953 = vmatpush3.xpose.msk.msra.mxu0 %vm409_vm1, %v1046_v53 }
 0x6dc   :  { %3954 = vmatprep.subr.msk.mxu0 %vm409_vm1, %v1045_v55 }
 0x6dd   :  { %5301 = sst [smem:[#allocation6_spill]] %s4932_s20  ;;  %v3427_v28 = vld [vmem:[%s4932_s20] ss:$0 sm:$0xff]  ;;  %s4501_s20 = smov 30  }
 0x6df   :  { %3955 = vmatpush3.xpose.msk.msra.mxu0 %vm409_vm1, %v1045_v55 }
 0x6e0   :  { %3956 = vmatprep.subr.msk.mxu0 %vm409_vm1, %v1044_v57 }
 0x6e3   :  { %3957 = vmatpush3.xpose.msk.msra.mxu0 %vm409_vm1, %v1044_v57 }
 0x6e4   :  { %3958 = vmatprep.subr.msk.mxu0 %vm409_vm1, %v1043_v59 }
 0x6e7   :  { %3959 = vmatpush3.xpose.msk.msra.mxu0 %vm409_vm1, %v1043_v59 }
 0x6e8   :  { %3960 = vmatprep.subr.msk.mxu0 %vm409_vm1, %v1042_v61 }
 0x6eb   :  { %3961 = vmatpush3.xpose.msk.msra.mxu0 %vm409_vm1, %v1042_v61 }
 0x6ec   :  { %3962 = vmatprep.subr.msk.mxu0 %vm409_vm1, %v1041_v63 }
 0x6ef   :  { %3963 = vmatpush3.xpose.msk.msra.mxu0 %vm409_vm1, %v1041_v63 }
 0x6f0   :  { %4013 = vmatprep.subr.mxu0 %v844_v31 }
 0x6f2   :  { %3965 = vmatmul.mubr.msk.f32.vlgmr.msra.gmra.mxu0 %vm409_vm1, %v930_v0 }
 0x6f3   :  { %4014 = vmatpush3.msra.mxu0 %v844_v31 }
 0x6f4   :  { %4015 = vmatprep.subr.mxu0 %v843_v41 }
 0x6f5   :  { %4016 = vmatpush3.msra.mxu0 %v843_v41 }
 0x6f6   :  { %4017 = vmatprep.subr.mxu0 %v842_v33 }
 0x6f7   :  { %4018 = vmatpush3.msra.mxu0 %v842_v33 }
 0x6f8   :  { %4019 = vmatprep.subr.mxu0 %v841_v42 }
 0x6f9   :  { %4020 = vmatpush3.msra.mxu0 %v841_v42 }
 0x6fa   :  { %4021 = vmatprep.subr.mxu0 %v840_v43 }
 0x6fb   :  { %4022 = vmatpush3.msra.mxu0 %v840_v43 }
 0x6fc   :  { %4023 = vmatprep.subr.mxu0 %v839_v44 }
 0x6fd   :  { %4024 = vmatpush3.msra.mxu0 %v839_v44 }
 0x6fe   :  { %4025 = vmatprep.subr.mxu0 %v838_v49 }
 0x6ff   :  { %4026 = vmatpush3.msra.mxu0 %v838_v49 }
 0x700   :  { %4027 = vmatprep.subr.mxu0 %v837_v50 }
 0x701   :  { %4028 = vmatpush3.msra.mxu0 %v837_v50 }
 0x7b2   :  { %v3966_v5 = vpop.f32.mrf.mxu0 }
 0x7b3   :  { %v1169_v7 = vadd.f32 %v3966_v5, %v150_v3 }
 0x7b4   :  { %v1163_v9 = vpop.f32.mrf.mxu0 }
 0x7b5   :  { %v1164_v10 = vadd.f32 %v1163_v9, %v149_v6  ;;  %v1176_v11 = vsel %vm1172_vm4, %v1169_v7, -inf }
 0x7b6   :  { %1177 = vmax.xlane.f32.xlu1 %v1176_v11 }
 0x7b7   :  { %v1173_v12 = vsel %vm1172_vm4, %v1164_v10, -inf }
 0x7b8   :  { %1174 = vmax.xlane.f32.xlu0 %v1173_v12  ;;  %v1486_v12 = vld [vmem:[%s4912_s15 + $0x10] sm:$0xff] }
 0x83f   :  { %v1178_v13 = vpop.xlane.xlu1 %1177 }
 0x840   :  { %v1180_v14 = vsub.f32 %v1169_v7, %v1178_v13  ;;  %v1485_v13 = vld [vmem:[%s4912_s15 + $0x8] sm:$0xff] }
 0x841   :  { %v1175_v15 = vpop.xlane.xlu0 %1174 }
 0x842   :  { %v1179_v16 = vsub.f32 %v1164_v10, %v1175_v15  ;;  %v1183_v17 = vmul.f32 1.442695, %v1180_v14  ;;  %v1484_v14 = vld [vmem:[%s4912_s15] sm:$0xff]  ;;  %v1585_v15 = vld [vmem:[%s4921_s5 + $0x38] sm:$0xff] }
 0x844   :  { %v1181_v18 = vmul.f32 1.442695, %v1179_v16 }
 0x846   :  { %4365 = vpow2.f32 %v1181_v18 }
 0x847   :  { %4367 = vpow2.f32 %v1183_v17 }
 0x853   :  { %v4852_v20 = vpop.eup %4365 }
 0x854   :  { %v4854_v21 = vpop.eup %4367  ;;  %3987 = vmatprep.mubr.msk.f32.mxu1 %vm1172_vm4, %v4852_v20 }
 0x855   :  { %3988 = vmatmul.mubr.msk.f32.vlgmr.msra.gmra.mxu1 %vm1172_vm4, %v4854_v21 }
 0x856   :  { %3991 = vmatpush3.msra.mxu1 %v4796_v46 }
 0x857   :  { %3992 = vmatprep.subr.mxu1 %v1059_v23 }
 0x858   :  { %3993 = vmatpush3.msra.mxu1 %v1059_v23  ;;  %v3426_v23 = vld [vmem:[%s4927_s2] ss:$0 sm:$0xff]  ;;  %s4956_s2 = sld [smem:[%s5288_s0 + %s4500_s26]]  }
 0x859   :  { %3994 = vmatprep.subr.mxu1 %v1058_v25 }
 0x85a   :  { %3995 = vmatpush3.msra.mxu1 %v1058_v25 }
 0x85b   :  { %3996 = vmatprep.subr.mxu1 %v1057_v27 }
 0x85c   :  { %3997 = vmatpush3.msra.mxu1 %v1057_v27 }
 0x85d   :  { %3998 = vmatprep.subr.mxu1 %v1056_v29 }
 0x85e   :  { %3999 = vmatpush3.msra.mxu1 %v1056_v29  ;;  %5302 = sst [smem:[#allocation7_spill]] %s4956_s2 }
 0x85f   :  { %4000 = vmatprep.subr.mxu1 %v1055_v32 }
 0x860   :  { %4001 = vmatpush3.msra.mxu1 %v1055_v32 }
 0x861   :  { %4002 = vmatprep.subr.mxu1 %v1054_v35 }
 0x862   :  { %4003 = vmatpush3.msra.mxu1 %v1054_v35  ;;  %v1583_v35 = vld [vmem:[%s4921_s5 + $0x28] sm:$0xff] }
 0x863   :  { %4004 = vmatprep.subr.mxu1 %v1053_v37 }
 0x864   :  { %4005 = vmatpush3.msra.mxu1 %v1053_v37  ;;  %v1581_v37 = vld [vmem:[%s4921_s5 + $0x18] sm:$0xff] }
 0x865   :  { %4006 = vmatprep.subr.mxu1 %v1052_v39 }
 0x866   :  { %4007 = vmatpush3.msra.mxu1 %v1052_v39  ;;  %v1579_v39 = vld [vmem:[%s4921_s5 + $0x8] sm:$0xff] }
 0x867   :  { %4008 = vmatprep.subr.mxu1 %v1051_v40 }
 0x868   :  { %4009 = vmatpush3.msra.mxu1 %v1051_v40  ;;  %v1578_v40 = vld [vmem:[%s4921_s5] sm:$0xff] }
 0x915   :  { %v3989_v45 = vpop.f32.mrf.mxu1 }
 0x916   :  { %4369 = vrcp.f32 %v3989_v45 }
 0x917   :  { %v1257_v46 = vpop.f32.mrf.mxu1 }
 0x918   :  { %4371 = vrcp.f32 %v1257_v46  ;;  %v3431_v46 = vld [vmem:[%s4956_s2] ss:$0 sm:$0xff]  ;;  %s4976_s2 = sld [smem:[%s5288_s0 + %s4502_s14]]  }
 0x923   :  { %v4370_v47 = vpop.eup %4369 }
 0x924   :  { %v1269_v48 = vmul.f32 %v4370_v47, %v4854_v21 }
 0x925   :  { %v4372_v2 = vpop.eup %4371 }
 0x926   :  { %v1268_v8 = vmul.f32 %v4372_v2, %v4852_v20 }
 0x928   :  { %4010 = vmatprep.mubr.msk.f32.mxu1 %vm1172_vm4, %v1268_v8 }
 0x929   :  { %4011 = vmatmul.mubr.msk.f32.vlgmr.msra.gmra.mxu1 %vm1172_vm4, %v1269_v48 }
 0x9e9   :  { %v4012_v52 = vpop.f32.mrf.mxu1 }
 0x9eb   :  { %v1342_v53 = vpop.f32.mrf.mxu1 }
 0x9ec   :  { %4029 = vmatprep.mubr.msk.f32.mxu0 %vm409_vm1, %v1342_v53 }
 0x9ed   :  { %4030 = vmatmul.mubr.msk.f32.vlgmr.msra.gmra.mxu0 %vm409_vm1, %v4012_v52 }
 0xaad   :  { %v4031_v55 = vpop.f32.mrf.mxu0 }
 0xaae   :  { %v1435_v56 = vadd.f32 %v4031_v55, %v3423_v54 }
 0xaaf   :  { %v1429_v57 = vpop.f32.mrf.mxu0 }
 0xab0   :  { %v1430_v58 = vadd.f32 %v3423_v54, %v1429_v57  ;;  %v1439_v59 = vadd.f32 %v1435_v56, %v4713_v4 }
 0xab2   :  { %v1445_v60 = vsel %vm230_vm0, %v1439_v59, 0.0  ;;  %v1438_v61 = vadd.f32 %v1430_v58, %v4704_v1  ;;  %v1487_v1 = vld [vmem:[%s4912_s15 + $0x18] sm:$0xff]  ;;  %s4499_s15 = smov 27  }
 0xab3   :  { %1446 = vadd.xlane.f32.xlu1 %v1445_v60  ;;  %4032 = vmatprep.subr.mxu1 %v1487_v1  ;;  %s4948_s22 = sld [smem:[%s5288_s0 + %s4499_s15]]  }
 0xab4   :  { %v1442_v62 = vsel %vm230_vm0, %v1438_v61, 0.0  ;;  %4033 = vmatpush3.msra.mxu1 %v1487_v1 }
 0xab5   :  { %1443 = vadd.xlane.f32.xlu0 %v1442_v62  ;;  %4034 = vmatprep.subr.mxu1 %v1486_v12 }
 0xab6   :  { %4035 = vmatpush3.msra.mxu1 %v1486_v12 }
 0xab7   :  { %4036 = vmatprep.subr.mxu1 %v1485_v13 }
 0xab8   :  { %4037 = vmatpush3.msra.mxu1 %v1485_v13 }
 0xab9   :  { %4038 = vmatprep.subr.mxu1 %v1484_v14  ;;  %v3428_v31 = vld [vmem:[%s4948_s22] ss:$0 sm:$0xff] }
 0xaba   :  { %4039 = vmatpush3.msra.mxu1 %v1484_v14 }
 0xabb   :  { %4043 = vmatprep.subr.mxu1 %v1585_v15 }
 0xb3c   :  { %v1447_v63 = vpop.xlane.xlu1 %1446 }
 0xb3d   :  { %v1449_v0 = vmul.f32 0.03125, %v1447_v63 }
 0xb3e   :  { %v1444_v3 = vpop.xlane.xlu0 %1443 }
 0xb3f   :  { %v1451_v5 = vsub.f32 %v1439_v59, %v1449_v0  ;;  %v1448_v6 = vmul.f32 0.03125, %v1444_v3  ;;  %v3439_v0 = vld [vmem:[%s4522_s13 + $0x38] sm:$0xff]  ;;  %v3438_v3 = vld [vmem:[%s4522_s13 + $0x30] sm:$0xff] }
 0xb40   :  { %4062 = vmatprep.subr.mxu0 %v3439_v0 }
 0xb41   :  { %v1450_v7 = vsub.f32 %v1438_v61, %v1448_v6  ;;  %v1453_v9 = vmul.f32 %v1451_v5, %v1451_v5  ;;  %4063 = vmatpush3.msra.mxu0 %v3439_v0  ;;  %v3436_v6 = vld [vmem:[%s4522_s13 + $0x20] sm:$0xff] }
 0xb42   :  { %4064 = vmatprep.subr.mxu0 %v3438_v3 }
 0xb43   :  { %v1457_v10 = vsel %vm230_vm0, %v1453_v9, 0.0  ;;  %v1452_v11 = vmul.f32 %v1450_v7, %v1450_v7  ;;  %4065 = vmatpush3.msra.mxu0 %v3438_v3  ;;  %v4427_v3 = vld [vmem:[%s4625_s8] sm:$0xff] }
 0xb44   :  { %1458 = vadd.xlane.f32.xlu1 %v1457_v10 }
 0xb45   :  { %v1454_v4 = vsel %vm230_vm0, %v1452_v11, 0.0 }
 0xb46   :  { %1455 = vadd.xlane.f32.xlu0 %v1454_v4 }
 0xbcd   :  { %v1459_v16 = vpop.xlane.xlu1 %1458 }
 0xbce   :  { %v1461_v17 = vmul.f32 0.03125, %v1459_v16 }
 0xbcf   :  { %v1456_v18 = vpop.xlane.xlu0 %1455 }
 0xbd0   :  { %v1463_v19 = vadd.f32 1e-05, %v1461_v17  ;;  %v1460_v20 = vmul.f32 0.03125, %v1456_v18 }
 0xbd2   :  { %4373 = vrsqrt.f32 %v1463_v19  ;;  %v1462_v21 = vadd.f32 1e-05, %v1460_v20  ;;  %v3435_v19 = vld [vmem:[%s4976_s2] ss:$0 sm:$0xff] }
 0xbd4   :  { %4375 = vrsqrt.f32 %v1462_v21 }
 0xbdf   :  { %v4374_v22 = vpop.eup %4373 }
 0xbe0   :  { %v1467_v24 = vmul.f32 %v4374_v22, %v1451_v5  ;;  %v3437_v5 = vld [vmem:[%s4522_s13 + $0x28] sm:$0xff]  ;;  %s4971_s13 = sld [smem:[%s5288_s0 + %s4501_s20]]  }
 0xbe1   :  { %v4376_v25 = vpop.eup %4375  ;;  %4066 = vmatprep.subr.mxu0 %v3437_v5 }
 0xbe2   :  { %v1466_v26 = vmul.f32 %v4376_v25, %v1450_v7  ;;  %v1475_v27 = vmul.f32 %v3426_v23, %v1467_v24  ;;  %4067 = vmatpush3.msra.mxu0 %v3437_v5  ;;  %v3444_v7 = vld [vmem:[%s4514_s6 + $0x38] sm:$0xff]  ;;  %v3442_v24 = vld [vmem:[%s4514_s6 + $0x28] sm:$0xff]  ;;  %v3441_v25 = vld [vmem:[%s4514_s6 + $0x20] sm:$0xff] }
 0xbe3   :  { %4068 = vmatprep.subr.mxu0 %v3436_v6 }
 0xbe4   :  { %v1474_v29 = vmul.f32 %v3426_v23, %v1466_v26  ;;  %v1483_v32 = vadd.f32 %v3427_v28, %v1475_v27  ;;  %4069 = vmatpush3.msra.mxu0 %v3436_v6  ;;  %v3443_v23 = vld [vmem:[%s4514_s6 + $0x30] sm:$0xff]  ;;  %v4409_v26 = vld [vmem:[%s4529_s17 + $0x38] sm:$0xff]  ;;  %s5303_s6 = sld [smem:[#allocation2_spill]] }
 0xbe5   :  { %4073 = vmatprep.subr.mxu0 %v3444_v7  ;;  %v4410_v27 = vld [vmem:[%s4529_s17 + $0x30] sm:$0xff] }
 0xbe6   :  { %v1482_v30 = vadd.f32 %v3427_v28, %v1474_v29  ;;  %v3434_v14 = vld [vmem:[%s4971_s13] ss:$0 sm:$0xff]  ;;  %v4411_v28 = vld [vmem:[%s4529_s17 + $0x28] sm:$0xff] }
 0xbe7   :  { %v4412_v29 = vld [vmem:[%s4529_s17 + $0x20] sm:$0xff] }
 0xbe8   :  { %4040 = vmatprep.mubr.msk.f32.mxu1 %vm230_vm0, %v1482_v30 }
 0xbe9   :  { %4041 = vmatmul.mubr.msk.f32.vlgmr.msra.gmra.mxu1 %vm230_vm0, %v1483_v32 }
 0xbea   :  { %4044 = vmatpush3.msra.mxu1 %v1585_v15 }
 0xbeb   :  { %4045 = vmatprep.subr.mxu1 %v1584_v34 }
 0xbec   :  { %4046 = vmatpush3.msra.mxu1 %v1584_v34  ;;  %v4415_v34 = vld [vmem:[%s4529_s17 + $0x8] sm:$0xff] }
 0xbed   :  { %4047 = vmatprep.subr.mxu1 %v1583_v35 }
 0xbee   :  { %4048 = vmatpush3.msra.mxu1 %v1583_v35  ;;  %v4416_v35 = vld [vmem:[%s4529_s17] sm:$0xff] }
 0xbef   :  { %4049 = vmatprep.subr.mxu1 %v1582_v36 }
 0xbf0   :  { %4050 = vmatpush3.msra.mxu1 %v1582_v36 }
 0xbf1   :  { %4051 = vmatprep.subr.mxu1 %v1581_v37 }
 0xbf2   :  { %4052 = vmatpush3.msra.mxu1 %v1581_v37  ;;  %v3455_v37 = vld [vmem:[%s4575_s3 + $0x1] ss:$0 sm:$0xff]  ;;  %s5308_s3 = sld [smem:[#allocation7_spill]] }
 0xbf3   :  { %4053 = vmatprep.subr.mxu1 %v1580_v38 }
 0xbf4   :  { %4054 = vmatpush3.msra.mxu1 %v1580_v38 }
 0xbf5   :  { %4055 = vmatprep.subr.mxu1 %v1579_v39 }
 0xbf6   :  { %4056 = vmatpush3.msra.mxu1 %v1579_v39 }
 0xbf7   :  { %4057 = vmatprep.subr.mxu1 %v1578_v40 }
 0xbf8   :  { %4058 = vmatpush3.msra.mxu1 %v1578_v40  ;;  %v3458_v40 = vld [vmem:[%s4560_s21 + $0x1] ss:$0 sm:$0xff]  ;;  %s5305_s21 = sld [smem:[#allocation4_spill]] }
 0xca9   :  { %v4042_v41 = vpop.f32.mrf.mxu1 }
 0xcaa   :  { %v1573_v33 = vadd.f32 %v4042_v41, %v3428_v31 }
 0xcab   :  { %v1567_v42 = vpop.f32.mrf.mxu1 }
 0xcac   :  { %v1568_v43 = vadd.f32 %v3428_v31, %v1567_v42  ;;  %v1577_v45 = vmax.f32 %v1573_v33, 0.0 }
 0xcae   :  { %v1576_v44 = vmax.f32 %v1568_v43, 0.0  ;;  %v4417_v43 = vld [vmem:[%s4565_s25 + $0x38] sm:$0xff] }
 0xcb0   :  { %4059 = vmatprep.mubr.msk.f32.mxu1 %vm409_vm1, %v1576_v44 }
 0xcb1   :  { %4060 = vmatmul.mubr.msk.f32.vlgmr.msra.gmra.mxu1 %vm409_vm1, %v1577_v45  ;;  %v4418_v45 = vld [vmem:[%s4570_s29 + $0x38] sm:$0xff] }
 0xd71   :  { %v4061_v47 = vpop.f32.mrf.mxu1 }
 0xd72   :  { %v1671_v2 = vadd.f32 %v4061_v47, %v3431_v46  ;;  %v4419_v47 = vld [vmem:[%s4565_s25 + $0x30] sm:$0xff] }
 0xd73   :  { %v1665_v8 = vpop.f32.mrf.mxu1 }
 0xd74   :  { %v1666_v48 = vadd.f32 %v3431_v46, %v1665_v8  ;;  %v1675_v49 = vadd.f32 %v1671_v2, %v1483_v32  ;;  %v4414_v32 = vld [vmem:[%s4529_s17 + $0x10] sm:$0xff]  ;;  %v4420_v8 = vld [vmem:[%s4565_s25 + $0x28] sm:$0xff] }
 0xd76   :  { %v1681_v50 = vsel %vm230_vm0, %v1675_v49, 0.0  ;;  %v1674_v52 = vadd.f32 %v1666_v48, %v1482_v30  ;;  %v4413_v30 = vld [vmem:[%s4529_s17 + $0x18] sm:$0xff]  ;;  %s5304_s17 = sld [smem:[#allocation3_spill]] }
 0xd77   :  { %1682 = vadd.xlane.f32.xlu1 %v1681_v50 }
 0xd78   :  { %v1678_v53 = vsel %vm230_vm0, %v1674_v52, 0.0 }
 0xd79   :  { %1679 = vadd.xlane.f32.xlu0 %v1678_v53 }
 0xe00   :  { %v1683_v54 = vpop.xlane.xlu1 %1682 }
 0xe01   :  { %v1685_v55 = vmul.f32 0.03125, %v1683_v54  ;;  %v4423_v54 = vld [vmem:[%s4565_s25 + $0x10] sm:$0xff] }
 0xe02   :  { %v1680_v56 = vpop.xlane.xlu0 %1679 }
 0xe03   :  { %v1687_v57 = vsub.f32 %v1675_v49, %v1685_v55  ;;  %v1684_v58 = vmul.f32 0.03125, %v1680_v56  ;;  %v4421_v49 = vld [vmem:[%s4565_s25 + $0x20] sm:$0xff]  ;;  %v4424_v56 = vld [vmem:[%s4565_s25 + $0x8] sm:$0xff] }
 0xe05   :  { %v1686_v59 = vsub.f32 %v1674_v52, %v1684_v58  ;;  %v1689_v60 = vmul.f32 %v1687_v57, %v1687_v57  ;;  %v4422_v52 = vld [vmem:[%s4565_s25 + $0x18] sm:$0xff]  ;;  %v4425_v58 = vld [vmem:[%s4565_s25] sm:$0xff]  ;;  %s5306_s25 = sld [smem:[#allocation5_spill]] }
 0xe07   :  { %v1693_v61 = vsel %vm230_vm0, %v1689_v60, 0.0  ;;  %v1688_v62 = vmul.f32 %v1686_v59, %v1686_v59 }
 0xe08   :  { %1694 = vadd.xlane.f32.xlu1 %v1693_v61 }
 0xe09   :  { %v1690_v63 = vsel %vm230_vm0, %v1688_v62, 0.0  ;;  %v4426_v62 = vld [vmem:[%s4625_s8 + $0x8] sm:$0xff]  ;;  %s4503_s8 = smov 32  }
 0xe0a   :  { %1691 = vadd.xlane.f32.xlu0 %v1690_v63 }
 0xe91   :  { %v1695_v9 = vpop.xlane.xlu1 %1694 }
 0xe92   :  { %v1697_v10 = vmul.f32 0.03125, %v1695_v9 }
 0xe93   :  { %v1692_v11 = vpop.xlane.xlu0 %1691 }
 0xe94   :  { %v1699_v4 = vadd.f32 1e-05, %v1697_v10  ;;  %v1696_v1 = vmul.f32 0.03125, %v1692_v11 }
 0xe96   :  { %4377 = vrsqrt.f32 %v1699_v4  ;;  %v1698_v12 = vadd.f32 1e-05, %v1696_v1 }
 0xe98   :  { %4379 = vrsqrt.f32 %v1698_v12 }
 0xea3   :  { %v4378_v13 = vpop.eup %4377 }
 0xea4   :  { %v1703_v15 = vmul.f32 %v4378_v13, %v1687_v57 }
 0xea5   :  { %v4380_v16 = vpop.eup %4379 }
 0xea6   :  { %v1702_v17 = vmul.f32 %v4380_v16, %v1686_v59  ;;  %v1711_v18 = vmul.f32 %v3434_v14, %v1703_v15  ;;  %v4428_v15 = vld [vmem:[%s4570_s29 + $0x30] sm:$0xff] }
 0xea8   :  { %v1710_v20 = vmul.f32 %v3434_v14, %v1702_v17  ;;  %v4982_v22 = vadd.f32 %v3435_v19, %v1711_v18  ;;  %v4429_v17 = vld [vmem:[%s4570_s29 + $0x28] sm:$0xff] }
 0xeaa   :  { %v4980_v21 = vadd.f32 %v3435_v19, %v1710_v20  ;;  %v4430_v19 = vld [vmem:[%s4570_s29 + $0x20] sm:$0xff] }
 0xeac   :  { %4070 = vmatprep.mubr.msk.f32.mxu0 %vm230_vm0, %v4980_v21 }
 0xead   :  { %4071 = vmatmul.mubr.msk.f32.vlgmr.msra.gmra.mxu0 %vm230_vm0, %v4982_v22 }
 0xeae   :  { %4074 = vmatpush3.msra.mxu0 %v3444_v7  ;;  %4081 = vmatprep.mubr.msk.f32.mxu0 %vm230_vm0, %v4980_v21 }
 0xeaf   :  { %4075 = vmatprep.subr.mxu0 %v3443_v23 }
 0xeb0   :  { %4076 = vmatpush3.msra.mxu0 %v3443_v23  ;;  %v4431_v23 = vld [vmem:[%s4570_s29 + $0x18] sm:$0xff] }
 0xeb1   :  { %4077 = vmatprep.subr.mxu0 %v3442_v24 }
 0xeb2   :  { %4078 = vmatpush3.msra.mxu0 %v3442_v24 }
 0xeb3   :  { %4079 = vmatprep.subr.mxu0 %v3441_v25 }
 0xeb4   :  { %4080 = vmatpush3.msra.mxu0 %v3441_v25  ;;  %v4432_v25 = vld [vmem:[%s4570_s29 + $0x10] sm:$0xff] }
 0xeb5   :  { %4082 = vmatmul.mubr.msk.f32.vlgmr.msra.gmra.mxu0 %vm230_vm0, %v4982_v22  ;;  %4103 = vmatprep.subr.mxu0 %v4409_v26 }
 0xeb6   :  { %4104 = vmatpush3.msra.mxu0 %v4409_v26 }
 0xeb7   :  { %4105 = vmatprep.subr.mxu0 %v4410_v27 }
 0xeb8   :  { %4106 = vmatpush3.msra.mxu0 %v4410_v27  ;;  %v4433_v27 = vld [vmem:[%s4570_s29 + $0x8] sm:$0xff] }
 0xeb9   :  { %4107 = vmatprep.subr.mxu0 %v4411_v28 }
 0xeba   :  { %4108 = vmatpush3.msra.mxu0 %v4411_v28 }
 0xebb   :  { %4109 = vmatprep.subr.mxu0 %v4412_v29 }
 0xebc   :  { %4110 = vmatpush3.msra.mxu0 %v4412_v29  ;;  %v4434_v29 = vld [vmem:[%s4570_s29] sm:$0xff]  ;;  %s5307_s29 = sld [smem:[#allocation6_spill]] }
 0xebd   :  { %4111 = vmatprep.subr.mxu0 %v4413_v30 }
 0xebe   :  { %4112 = vmatpush3.msra.mxu0 %v4413_v30 }
 0xebf   :  { %4113 = vmatprep.subr.mxu0 %v4414_v32 }
 0xec0   :  { %4114 = vmatpush3.msra.mxu0 %v4414_v32  ;;  %v3453_v32 = vld [vmem:[%s4651_s12 + $0x78] sm:$0xff] }
 0xec1   :  { %4115 = vmatprep.subr.mxu0 %v4415_v34 }
 0xec2   :  { %4116 = vmatpush3.msra.mxu0 %v4415_v34  ;;  %v3452_v34 = vld [vmem:[%s4651_s12 + $0x70] sm:$0xff] }
 0xec3   :  { %4117 = vmatprep.subr.mxu0 %v4416_v35 }
 0xec4   :  { %4118 = vmatpush3.msra.mxu0 %v4416_v35  ;;  %v3451_v35 = vld [vmem:[%s4651_s12 + $0x68] sm:$0xff] }
 0xf6d   :  { %v4072_v36 = vpop.f32.mrf.mxu0 }
 0xf6e   :  { %v1829_v60 = vadd.f32 %v4072_v36, %v3455_v37  ;;  %v3450_v36 = vld [vmem:[%s4651_s12 + $0x60] sm:$0xff] }
 0xf6f   :  { %v1823_v38 = vpop.f32.mrf.mxu0 }
 0xf70   :  { %v1824_v39 = vadd.f32 %v3455_v37, %v1823_v38  ;;  %v3449_v37 = vld [vmem:[%s4651_s12 + $0x58] sm:$0xff]  ;;  %v3448_v38 = vld [vmem:[%s4651_s12 + $0x50] sm:$0xff] }
 0xf72   :  { %4100 = vmatprep.mubr.msk.f32.mxu1 %vm409_vm1, %v1824_v39 }
 0xf75   :  { %v4083_v31 = vpop.f32.mrf.mxu0 }
 0xf76   :  { %v5006_v41 = vadd.f32 %v4083_v31, %v3458_v40 }
 0xf77   :  { %v1904_v33 = vpop.f32.mrf.mxu0 }
 0xf78   :  { %v5008_v42 = vadd.f32 %v3458_v40, %v1904_v33  ;;  %v1920_v44 = vmul.f32 %v4417_v43, %v5006_v41  ;;  %v1928_v46 = vmul.f32 %v4418_v45, %v5006_v41  ;;  %v1918_v48 = vmul.f32 %v4420_v8, %v5006_v41  ;;  %v3447_v43 = vld [vmem:[%s4651_s12 + $0x48] sm:$0xff] }
 0xf79   :  { %v1916_v53 = vmul.f32 %v4422_v52, %v5006_v41  ;;  %v1914_v57 = vmul.f32 %v4424_v56, %v5006_v41  ;;  %v1926_v18 = vmul.f32 %v4429_v17, %v5006_v41  ;;  %v1924_v24 = vmul.f32 %v4431_v23, %v5006_v41  ;;  %v3481_v17 = vld [vmem:[%s4695_s4 + $0x1] ss:$0 sm:$0xff]  ;;  %v3490_v23 = vld [vmem:[%s4701_s10 + $0x38] sm:$0xff] }
 0xf7a   :  { %4084 = vmatprep.subr.msk.mxu1 %vm409_vm1, %v1920_v44  ;;  %4122 = vmatprep.subr.mxu0 %v1928_v46  ;;  %v1919_v2 = vmul.f32 %v4419_v47, %v5008_v42  ;;  %v1917_v50 = vmul.f32 %v4421_v49, %v5008_v42  ;;  %v1915_v55 = vmul.f32 %v4423_v54, %v5008_v42  ;;  %v3475_v47 = vld [vmem:[%s4668_s18 + $0x1] ss:$0 sm:$0xff] }
 0xf7b   :  { %4085 = vmatpush3.xpose.msk.msra.mxu1 %vm409_vm1, %v1920_v44  ;;  %v1913_v59 = vmul.f32 %v4425_v58, %v5008_v42  ;;  %v1927_v16 = vmul.f32 %v4428_v15, %v5008_v42  ;;  %v1925_v20 = vmul.f32 %v4430_v19, %v5008_v42  ;;  %v1923_v26 = vmul.f32 %v4432_v25, %v5008_v42  ;;  %v3446_v44 = vld [vmem:[%s4651_s12 + $0x40] sm:$0xff]  ;;  %v3488_v25 = vld [vmem:[%s4701_s10 + $0x28] sm:$0xff] }
 0xf7c   :  { %4086 = vmatprep.subr.msk.mxu1 %vm409_vm1, %v1919_v2  ;;  %v1922_v28 = vmul.f32 %v4433_v27, %v5006_v41  ;;  %v1921_v30 = vmul.f32 %v4434_v29, %v5008_v42  ;;  %v4435_v27 = vld [vmem:[%s4711_s16] sm:$0xff] }
 0xf7d   :  { %v4437_v29 = vld [vmem:[%s4739_s24 + $0x40] sm:$0xff] }
 0xf7f   :  { %4087 = vmatpush3.xpose.msk.msra.mxu1 %vm409_vm1, %v1919_v2 }
 0xf80   :  { %4088 = vmatprep.subr.msk.mxu1 %vm409_vm1, %v1918_v48 }
 0xf83   :  { %4089 = vmatpush3.xpose.msk.msra.mxu1 %vm409_vm1, %v1918_v48 }
 0xf84   :  { %4090 = vmatprep.subr.msk.mxu1 %vm409_vm1, %v1917_v50 }
 0xf87   :  { %4091 = vmatpush3.xpose.msk.msra.mxu1 %vm409_vm1, %v1917_v50 }
 0xf88   :  { %4092 = vmatprep.subr.msk.mxu1 %vm409_vm1, %v1916_v53 }
 0xf8b   :  { %4093 = vmatpush3.xpose.msk.msra.mxu1 %vm409_vm1, %v1916_v53 }
 0xf8c   :  { %4094 = vmatprep.subr.msk.mxu1 %vm409_vm1, %v1915_v55 }
 0xf8f   :  { %4095 = vmatpush3.xpose.msk.msra.mxu1 %vm409_vm1, %v1915_v55 }
 0xf90   :  { %4096 = vmatprep.subr.msk.mxu1 %vm409_vm1, %v1914_v57 }
 0xf93   :  { %4097 = vmatpush3.xpose.msk.msra.mxu1 %vm409_vm1, %v1914_v57 }
 0xf94   :  { %4098 = vmatprep.subr.msk.mxu1 %vm409_vm1, %v1913_v59 }
 0xf97   :  { %4099 = vmatpush3.xpose.msk.msra.mxu1 %vm409_vm1, %v1913_v59 }
 0xf98   :  { %4141 = vmatprep.subr.mxu1 %v3453_v32 }
 0xf9a   :  { %4101 = vmatmul.mubr.msk.f32.vlgmr.msra.gmra.mxu1 %vm409_vm1, %v1829_v60 }
 0xf9b   :  { %4142 = vmatpush3.msra.mxu1 %v3453_v32  ;;  %v4439_v32 = vld [vmem:[%s4739_s24 + $0x38] sm:$0xff] }
 0xf9c   :  { %4143 = vmatprep.subr.mxu1 %v3452_v34 }
 0xf9d   :  { %4144 = vmatpush3.msra.mxu1 %v3452_v34  ;;  %v4440_v34 = vld [vmem:[%s4739_s24 + $0x30] sm:$0xff] }
 0xf9e   :  { %4145 = vmatprep.subr.mxu1 %v3451_v35 }
 0xf9f   :  { %4146 = vmatpush3.msra.mxu1 %v3451_v35  ;;  %v4441_v35 = vld [vmem:[%s4711_s16 + $0x10] sm:$0xf] }
 0xfa0   :  { %4147 = vmatprep.subr.mxu1 %v3450_v36 }
 0xfa1   :  { %4148 = vmatpush3.msra.mxu1 %v3450_v36  ;;  %v4442_v36 = vld [vmem:[%s4739_s24 + $0x28] sm:$0xff] }
 0xfa2   :  { %4149 = vmatprep.subr.mxu1 %v3449_v37 }
 0xfa3   :  { %4150 = vmatpush3.msra.mxu1 %v3449_v37  ;;  %v4443_v37 = vld [vmem:[%s4739_s24 + $0x20] sm:$0xff] }
 0xfa4   :  { %4151 = vmatprep.subr.mxu1 %v3448_v38 }
 0xfa5   :  { %4152 = vmatpush3.msra.mxu1 %v3448_v38  ;;  %v4444_v38 = vld [vmem:[%s4739_s24 + $0x18] sm:$0xff] }
 0xfa6   :  { %4153 = vmatprep.subr.mxu1 %v3447_v43 }
 0xfa7   :  { %4154 = vmatpush3.msra.mxu1 %v3447_v43 }
 0xfa8   :  { %4155 = vmatprep.subr.mxu1 %v3446_v44 }
 0xfa9   :  { %4156 = vmatpush3.msra.mxu1 %v3446_v44 }
0x105a   :  { %v4102_v61 = vpop.f32.mrf.mxu1 }
0x105b   :  { %v2031_v63 = vadd.f32 %v4426_v62, %v4102_v61 }
0x105c   :  { %v2025_v0 = vpop.f32.mrf.mxu1 }
0x105d   :  { %v2026_v5 = vadd.f32 %v4427_v3, %v2025_v0  ;;  %v2037_v6 = vsel %vm409_vm1, %v2031_v63, -inf  ;;  %v3484_v0 = vld [vmem:[%s4680_s23 + $0x30] sm:$0xff]  ;;  %v3483_v3 = vld [vmem:[%s4680_s23 + $0x28] sm:$0xff] }
0x105e   :  { %2038 = vmax.xlane.f32.xlu1 %v2037_v6 }
0x105f   :  { %v2034_v7 = vsel %vm409_vm1, %v2026_v5, -inf }
0x1060   :  { %2035 = vmax.xlane.f32.xlu0 %v2034_v7 }
0x10e7   :  { %v2039_v9 = vpop.xlane.xlu1 %2038 }
0x10e8   :  { %v2041_v10 = vsub.f32 %v2031_v63, %v2039_v9  ;;  %v3485_v63 = vld [vmem:[%s4680_s23 + $0x38] sm:$0xff] }
0x10e9   :  { %v2036_v11 = vpop.xlane.xlu0 %2035 }
0x10ea   :  { %v2040_v4 = vsub.f32 %v2026_v5, %v2036_v11  ;;  %v2044_v1 = vmul.f32 1.442695, %v2041_v10  ;;  %v3482_v5 = vld [vmem:[%s4680_s23 + $0x20] sm:$0xff]  ;;  %s3372_s23 = sld [smem:[%s5288_s0 + %s4503_s8]]  }
0x10ec   :  { %v2042_v12 = vmul.f32 1.442695, %v2040_v4 }
0x10ee   :  { %4381 = vpow2.f32 %v2042_v12  ;;  %v3480_v12 = vld [vmem:[%s4690_s28 + $0x1] ss:$0 sm:$0xff]  ;;  %s4504_s28 = smov 33  }
0x10ef   :  { %4383 = vpow2.f32 %v2044_v1 }
0x10fb   :  { %v4382_v13 = vpop.eup %4381 }
0x10fc   :  { %v4384_v14 = vpop.eup %4383  ;;  %4119 = vmatprep.mubr.msk.f32.mxu0 %vm409_vm1, %v4382_v13 }
0x10fd   :  { %4120 = vmatmul.mubr.msk.f32.vlgmr.msra.gmra.mxu0 %vm409_vm1, %v4384_v14 }
0x10fe   :  { %4123 = vmatpush3.msra.mxu0 %v1928_v46 }
0x10ff   :  { %4124 = vmatprep.subr.mxu0 %v1927_v16 }
0x1100   :  { %4125 = vmatpush3.msra.mxu0 %v1927_v16 }
0x1101   :  { %4126 = vmatprep.subr.mxu0 %v1926_v18 }
0x1102   :  { %4127 = vmatpush3.msra.mxu0 %v1926_v18 }
0x1103   :  { %4128 = vmatprep.subr.mxu0 %v1925_v20 }
0x1104   :  { %4129 = vmatpush3.msra.mxu0 %v1925_v20 }
0x1105   :  { %4130 = vmatprep.subr.mxu0 %v1924_v24 }
0x1106   :  { %4131 = vmatpush3.msra.mxu0 %v1924_v24  ;;  %v3489_v24 = vld [vmem:[%s4701_s10 + $0x30] sm:$0xff] }
0x1107   :  { %4132 = vmatprep.subr.mxu0 %v1923_v26 }
0x1108   :  { %4133 = vmatpush3.msra.mxu0 %v1923_v26  ;;  %v3487_v26 = vld [vmem:[%s4701_s10 + $0x20] sm:$0xff] }
0x1109   :  { %4134 = vmatprep.subr.mxu0 %v1922_v28 }
0x110a   :  { %4135 = vmatpush3.msra.mxu0 %v1922_v28  ;;  %v4436_v28 = vld [vmem:[%s4739_s24 + $0x48] sm:$0xff] }
0x110b   :  { %4136 = vmatprep.subr.mxu0 %v1921_v30 }
0x110c   :  { %4137 = vmatpush3.msra.mxu0 %v1921_v30  ;;  %v4438_v30 = vld [vmem:[%s4711_s16 + $0x8] sm:$0xff]  ;;  %s3373_s16 = sld [smem:[%s5288_s0 + %s4504_s28]]  }
0x110d   :  { %4160 = vmatprep.subr.mxu0 %v3485_v63 }
0x11bd   :  { %v4121_v39 = vpop.f32.mrf.mxu0 }
0x11be   :  { %4385 = vrcp.f32 %v4121_v39  ;;  %v4446_v39 = vld [vmem:[%s4739_s24 + $0x8] sm:$0xff] }
0x11bf   :  { %v2118_v40 = vpop.f32.mrf.mxu0 }
0x11c0   :  { %4387 = vrcp.f32 %v2118_v40  ;;  %v4447_v40 = vld [vmem:[%s4739_s24] sm:$0xff] }
0x11cb   :  { %v4386_v31 = vpop.eup %4385 }
0x11cc   :  { %v2130_v42 = vmul.f32 %v4386_v31, %v4384_v14 }
0x11cd   :  { %v4388_v41 = vpop.eup %4387 }
0x11ce   :  { %v2129_v33 = vmul.f32 %v4388_v41, %v4382_v13  ;;  %v5131_v41 = vld [vmem:[%s4754_s1 + $0x1] ss:$0 sm:$0xff] }
0x11d0   :  { %4138 = vmatprep.mubr.msk.f32.mxu0 %vm409_vm1, %v2129_v33 }
0x11d1   :  { %4139 = vmatmul.mubr.msk.f32.vlgmr.msra.gmra.mxu0 %vm409_vm1, %v2130_v42 }
0x11d2   :  { %4161 = vmatpush3.msra.mxu0 %v3485_v63 }
0x11d3   :  { %4162 = vmatprep.subr.mxu0 %v3484_v0 }
0x11d4   :  { %4163 = vmatpush3.msra.mxu0 %v3484_v0  ;;  %v4452_v0 = vld [vmem:[%s4772_s19 + $0x30] sm:$0xff] }
0x11d5   :  { %4164 = vmatprep.subr.mxu0 %v3483_v3 }
0x11d6   :  { %4165 = vmatpush3.msra.mxu0 %v3483_v3 }
0x11d7   :  { %4166 = vmatprep.subr.mxu0 %v3482_v5 }
0x11d8   :  { %4167 = vmatpush3.msra.mxu0 %v3482_v5  ;;  %v4453_v5 = vld [vmem:[%s4772_s19 + $0x28] sm:$0xff] }
0x11d9   :  { %4171 = vmatprep.subr.mxu0 %v4481_v51 }
0x1291   :  { %v4140_v45 = vpop.f32.mrf.mxu0 }
0x1293   :  { %v2203_v46 = vpop.f32.mrf.mxu0 }
0x1294   :  { %4157 = vmatprep.mubr.msk.f32.mxu1 %vm409_vm1, %v2203_v46 }
0x1295   :  { %4158 = vmatmul.mubr.msk.f32.vlgmr.msra.gmra.mxu1 %vm409_vm1, %v4140_v45  ;;  %v3504_v45 = vld [vmem:[%s4765_s9 + $0x1] ss:$0 sm:$0xff] }
0x1355   :  { %v4159_v2 = vpop.f32.mrf.mxu1 }
0x1356   :  { %v2296_v8 = vadd.f32 %v4159_v2, %v3475_v47 }
0x1357   :  { %v2290_v48 = vpop.f32.mrf.mxu1 }
0x1358   :  { %v2291_v49 = vadd.f32 %v3475_v47, %v2290_v48  ;;  %v2300_v50 = vadd.f32 %v2296_v8, %v4982_v22 }
0x135a   :  { %v2308_v52 = vsel %vm230_vm0, %v2300_v50, 0.0  ;;  %v2299_v53 = vadd.f32 %v2291_v49, %v4980_v21 }
0x135b   :  { %2309 = vadd.xlane.f32.xlu1 %v2308_v52 }
0x135c   :  { %v2305_v54 = vsel %vm230_vm0, %v2299_v53, 0.0 }
0x135d   :  { %2306 = vadd.xlane.f32.xlu0 %v2305_v54 }
0x13e4   :  { %v2310_v55 = vpop.xlane.xlu1 %2309 }
0x13e5   :  { %v2312_v56 = vmul.f32 0.03125, %v2310_v55 }
0x13e6   :  { %v2307_v57 = vpop.xlane.xlu0 %2306 }
0x13e7   :  { %v2314_v58 = vsub.f32 %v2300_v50, %v2312_v56  ;;  %v2311_v59 = vmul.f32 0.03125, %v2307_v57  ;;  %v4448_v57 = vld [vmem:[%s4772_s19 + $0x48] sm:$0xff] }
0x13e9   :  { %v2313_v60 = vsub.f32 %v2299_v53, %v2311_v59  ;;  %v2316_v61 = vmul.f32 %v2314_v58, %v2314_v58  ;;  %v4449_v59 = vld [vmem:[%s4779_s27 + $0x48] sm:$0xff] }
0x13eb   :  { %v2320_v22 = vsel %vm230_vm0, %v2316_v61, 0.0  ;;  %v2315_v62 = vmul.f32 %v2313_v60, %v2313_v60  ;;  %v4450_v61 = vld [vmem:[%s4772_s19 + $0x40] sm:$0xff] }
0x13ec   :  { %2321 = vadd.xlane.f32.xlu1 %v2320_v22 }
0x13ed   :  { %v2317_v21 = vsel %vm230_vm0, %v2315_v62, 0.0 }
0x13ee   :  { %2318 = vadd.xlane.f32.xlu0 %v2317_v21  ;;  %v4451_v21 = vld [vmem:[%s4772_s19 + $0x38] sm:$0xff] }
0x1475   :  { %v2322_v6 = vpop.xlane.xlu1 %2321 }
0x1476   :  { %v2324_v7 = vmul.f32 0.03125, %v2322_v6 }
0x1477   :  { %v2319_v9 = vpop.xlane.xlu0 %2318 }
0x1478   :  { %v2326_v10 = vadd.f32 1e-05, %v2324_v7  ;;  %v2323_v11 = vmul.f32 0.03125, %v2319_v9  ;;  %v4454_v7 = vld [vmem:[%s4772_s19 + $0x20] sm:$0xff] }
0x147a   :  { %4389 = vrsqrt.f32 %v2326_v10  ;;  %v2325_v4 = vadd.f32 1e-05, %v2323_v11  ;;  %v4455_v10 = vld [vmem:[%s4772_s19 + $0x18] sm:$0xff] }
0x147c   :  { %4391 = vrsqrt.f32 %v2325_v4  ;;  %v4456_v4 = vld [vmem:[%s4772_s19 + $0x10] sm:$0xff] }
0x1487   :  { %v4390_v1 = vpop.eup %4389 }
0x1488   :  { %v2330_v13 = vmul.f32 %v4390_v1, %v2314_v58 }
0x1489   :  { %v4392_v14 = vpop.eup %4391 }
0x148a   :  { %v2329_v15 = vmul.f32 %v4392_v14, %v2313_v60  ;;  %v2338_v16 = vmul.f32 %v3480_v12, %v2330_v13  ;;  %v4458_v14 = vld [vmem:[%s4772_s19] sm:$0xff] }
0x148c   :  { %v2337_v18 = vmul.f32 %v3480_v12, %v2329_v15  ;;  %v5093_v20 = vadd.f32 %v3481_v17, %v2338_v16  ;;  %v4457_v12 = vld [vmem:[%s4772_s19 + $0x8] sm:$0xff] }
0x148e   :  { %v5091_v19 = vadd.f32 %v3481_v17, %v2337_v18  ;;  %v4459_v18 = vld [vmem:[%s4845_s7 + $0x8] sm:$0xff] }
0x1490   :  { %4168 = vmatprep.mubr.msk.f32.mxu0 %vm230_vm0, %v5091_v19 }
0x1491   :  { %4169 = vmatmul.mubr.msk.f32.vlgmr.msra.gmra.mxu0 %vm230_vm0, %v5093_v20 }
0x1492   :  { %4172 = vmatpush3.msra.mxu0 %v3490_v23  ;;  %4179 = vmatprep.mubr.msk.f32.mxu0 %vm4486_vm2, %v4481_v51 }
0x1493   :  { %4173 = vmatprep.subr.mxu0 %v4481_v51 }
0x1494   :  { %4174 = vmatpush3.msra.mxu0 %v3489_v24 }
0x1495   :  { %4175 = vmatprep.subr.mxu0 %v4481_v51 }
0x1496   :  { %4176 = vmatpush3.msra.mxu0 %v3488_v25  ;;  %v4460_v25 = vld [vmem:[%s4845_s7] sm:$0xff] }
0x1497   :  { %4177 = vmatprep.subr.mxu0 %v4481_v51 }
0x1498   :  { %4178 = vmatpush3.msra.mxu0 %v3487_v26 }
0x1499   :  { %4180 = vmatmul.mubr.msk.f32.vlgmr.msra.gmra.mxu0 %vm230_vm0, %v4435_v27  ;;  %4211 = vmatprep.subr.mxu0 %v4436_v28 }
0x149a   :  { %4182 = vmatprep.mubr.msk.f32.mxu0 %vm4486_vm2, %v4481_v51  ;;  %4212 = vmatpush3.msra.mxu0 %v4436_v28 }
0x149b   :  { %4213 = vmatprep.subr.mxu0 %v4437_v29 }
0x149c   :  { %4214 = vmatpush3.msra.mxu0 %v4437_v29 }
0x149d   :  { %4183 = vmatmul.mubr.msk.f32.gmra.mxu0 %vm230_vm0, %v4438_v30  ;;  %4215 = vmatprep.subr.mxu0 %v4439_v32 }
0x149e   :  { %4185 = vmatprep.mubr.msk.f32.mxu0 %vm4486_vm2, %v4481_v51  ;;  %4216 = vmatpush3.msra.mxu0 %v4439_v32  ;;  %v4445_v51 = vld [vmem:[%s4739_s24 + $0x10] sm:$0xff]  ;;  %s4505_s24 = smov 34  }
0x149f   :  { %4217 = vmatprep.subr.mxu0 %v4440_v34  ;;  %s3374_s19 = sld [smem:[%s5288_s0 + %s4505_s24]]  }
0x14a0   :  { %4218 = vmatpush3.msra.mxu0 %v4440_v34 }
0x14a1   :  { %4186 = vmatmul.mubr.msk.f32.gmra.mxu0 %vm230_vm0, %v4441_v35  ;;  %4219 = vmatprep.subr.mxu0 %v4442_v36 }
0x14a2   :  { %4220 = vmatpush3.msra.mxu0 %v4442_v36 }
0x14a3   :  { %4221 = vmatprep.subr.mxu0 %v4443_v37 }
0x14a4   :  { %4222 = vmatpush3.msra.mxu0 %v4443_v37 }
0x14a5   :  { %4223 = vmatprep.subr.mxu0 %v4444_v38 }
0x14a6   :  { %4224 = vmatpush3.msra.mxu0 %v4444_v38 }
0x14a7   :  { %4225 = vmatprep.subr.mxu0 %v4445_v51 }
0x14a8   :  { %4226 = vmatpush3.msra.mxu0 %v4445_v51  ;;  %v4461_v51 = vld [vmem:[%s4779_s27 + $0x40] sm:$0xff] }
0x14a9   :  { %4227 = vmatprep.subr.mxu0 %v4446_v39 }
0x14aa   :  { %4228 = vmatpush3.msra.mxu0 %v4446_v39 }
0x14ab   :  { %4229 = vmatprep.subr.mxu0 %v4447_v40 }
0x14ac   :  { %4230 = vmatpush3.msra.mxu0 %v4447_v40  ;;  %v4462_v40 = vld [vmem:[%s4779_s27 + $0x38] sm:$0xff] }
0x1551   :  { %v5128_v31 = vpop.f32.mrf.mxu0 }
0x1552   :  { %v2456_v16 = vadd.f32 %v5128_v31, %v5131_v41 }
0x1553   :  { %v2450_v33 = vpop.f32.mrf.mxu0 }
0x1554   :  { %v2451_v42 = vadd.f32 %v5131_v41, %v2450_v33  ;;  %v4463_v41 = vld [vmem:[%s4779_s27 + $0x30] sm:$0xff] }
0x1556   :  { %4208 = vmatprep.mubr.msk.f32.mxu1 %vm409_vm1, %v2451_v42  ;;  %v4464_v42 = vld [vmem:[%s4779_s27 + $0x28] sm:$0xff] }
0x1559   :  { %v2531_v43 = vpop.f32.mrf.mxu0 }
0x155a   :  { %v5138_v8 = vadd.f32 %v3504_v45, %v2531_v43 }
0x155b   :  { %v4181_v44 = vpop.f32.mrf.mxu0 }
0x155c   :  { %v2548_v53 = vrot.slane %v5138_v8, 4  ;;  %v2562_v6 = vmul.f32 %v4453_v5, %v5138_v8  ;;  %v2557_v15 = vmul.f32 %v4458_v14, %v5138_v8  ;;  %v2572_v43 = vmul.f32 %v4464_v42, %v5138_v8  ;;  %v4465_v44 = vld [vmem:[%s4779_s27 + $0x20] sm:$0xff] }
0x155d   :  { %v2536_v46 = vpop.f32.mrf.mxu0  ;;  %v3530_v42 = vld [vmem:[%s5307_s29 + $0x1] ss:$0 sm:$0xff] }
0x155e   :  { %v5136_v47 = vadd.f32 %v3504_v45, %v2536_v46  ;;  %v4466_v46 = vld [vmem:[%s4779_s27 + $0x18] sm:$0xff] }
0x155f   :  { %v4184_v2 = vpop.f32.mrf.mxu0 }
0x1560   :  { %v2549_v50 = vrot.slane %v5136_v47, 4  ;;  %v2563_v3 = vmul.f32 %v4452_v0, %v5136_v47  ;;  %v2558_v13 = vmul.f32 %v4457_v12, %v5136_v47  ;;  %v2573_v33 = vmul.f32 %v4463_v41, %v5136_v47  ;;  %v3492_v0 = vld [vmem:[%s5303_s6 + $0x40] sm:$0xff] }
0x1561   :  { %v2541_v48 = vpop.f32.mrf.mxu0 }
0x1562   :  { %v2542_v49 = vadd.f32 %v3504_v45, %v2541_v48  ;;  %v5146_v56 = vsel %vm1031_vm3, %v2548_v53, %v2549_v50  ;;  %v4467_v48 = vld [vmem:[%s4779_s27 + $0x10] sm:$0xff] }
0x1563   :  { %v4187_v52 = vpop.f32.mrf.mxu0  ;;  %v2565_v22 = vmul.f32 %v4450_v61, %v5146_v56  ;;  %v2560_v11 = vmul.f32 %v4455_v10, %v5146_v56  ;;  %v2575_v39 = vmul.f32 %v4461_v51, %v5146_v56  ;;  %v2570_v2 = vmul.f32 %v4466_v46, %v5146_v56  ;;  %v3498_v56 = vld [vmem:[%s5303_s6 + $0x70] sm:$0xff] }
0x1564   :  { %v2551_v54 = vrot.slane %v2542_v49, 4  ;;  %v5159_v62 = vsel %vm1031_vm3, %v2542_v49, %v2548_v53  ;;  %v4469_v53 = vld [vmem:[%s4779_s27] sm:$0xff]  ;;  %v3545_v46 = vld [vmem:[%s4921_s5 + $0x70] sm:$0xff] }
0x1565   :  { %v2564_v63 = vmul.f32 %v4451_v21, %v5159_v62  ;;  %v2559_v1 = vmul.f32 %v4456_v4, %v5159_v62  ;;  %v2574_v31 = vmul.f32 %v4462_v40, %v5159_v62  ;;  %v2569_v49 = vmul.f32 %v4467_v48, %v5159_v62  ;;  %v3543_v48 = vld [vmem:[%s4921_s5 + $0x60] sm:$0xff] }
0x1566   :  { %v5143_v55 = vsel %vm1031_vm3, %v2549_v50, %v2551_v54  ;;  %v4468_v50 = vld [vmem:[%s4779_s27 + $0x8] sm:$0xff]  ;;  %v2567_v54 = vmul.f32 %v4469_v53, %v5138_v8  ;;  %v3539_v53 = vld [vmem:[%s4921_s5 + $0x40] sm:$0xff] }
0x1567   :  { %v2566_v58 = vmul.f32 %v4448_v57, %v5143_v55  ;;  %v5152_v60 = vmul.f32 %v4449_v59, %v5143_v55  ;;  %v2561_v9 = vmul.f32 %v4454_v7, %v5143_v55  ;;  %v2571_v45 = vmul.f32 %v4465_v44, %v5143_v55  ;;  %v3499_v55 = vld [vmem:[%s5303_s6 + $0x78] sm:$0xff]  ;;  %v3497_v57 = vld [vmem:[%s5303_s6 + $0x68] sm:$0xff]  ;;  %v3494_v59 = vld [vmem:[%s5303_s6 + $0x50] sm:$0xff] }
0x1568   :  { %v2568_v52 = vmul.f32 %v4468_v50, %v5136_v47  ;;  %v3495_v47 = vld [vmem:[%s5303_s6 + $0x58] sm:$0xff]  ;;  %v3541_v50 = vld [vmem:[%s4921_s5 + $0x50] sm:$0xff] }
0x1569   :  { %4188 = vmatprep.subr.msk.mxu1 %vm409_vm1, %v2566_v58  ;;  %4234 = vmatprep.subr.mxu0 %v5152_v60 }
0x156a   :  { %4189 = vmatpush3.xpose.msk.msra.mxu1 %vm409_vm1, %v2566_v58  ;;  %v3496_v58 = vld [vmem:[%s5303_s6 + $0x60] sm:$0xff] }
0x156b   :  { %4190 = vmatprep.subr.msk.mxu1 %vm409_vm1, %v2565_v22 }
0x156e   :  { %4191 = vmatpush3.xpose.msk.msra.mxu1 %vm409_vm1, %v2565_v22 }
0x156f   :  { %4192 = vmatprep.subr.msk.mxu1 %vm409_vm1, %v2564_v63 }
0x1572   :  { %4193 = vmatpush3.xpose.msk.msra.mxu1 %vm409_vm1, %v2564_v63  ;;  %v3493_v63 = vld [vmem:[%s5303_s6 + $0x48] sm:$0xff] }
0x1573   :  { %4194 = vmatprep.subr.msk.mxu1 %vm409_vm1, %v2563_v3 }
0x1576   :  { %4195 = vmatpush3.xpose.msk.msra.mxu1 %vm409_vm1, %v2563_v3 }
0x1577   :  { %4196 = vmatprep.subr.msk.mxu1 %vm409_vm1, %v2562_v6 }
0x157a   :  { %4197 = vmatpush3.xpose.msk.msra.mxu1 %vm409_vm1, %v2562_v6  ;;  %v3524_v6 = vld [vmem:[%s5304_s17 + $0x1] ss:$0 sm:$0xff] }
0x157b   :  { %4198 = vmatprep.subr.msk.mxu1 %vm409_vm1, %v2561_v9 }
0x157e   :  { %4199 = vmatpush3.xpose.msk.msra.mxu1 %vm409_vm1, %v2561_v9 }
0x157f   :  { %4200 = vmatprep.subr.msk.mxu1 %vm409_vm1, %v2560_v11 }
0x1582   :  { %4201 = vmatpush3.xpose.msk.msra.mxu1 %vm409_vm1, %v2560_v11 }
0x1583   :  { %4202 = vmatprep.subr.msk.mxu1 %vm409_vm1, %v2559_v1 }
0x1586   :  { %4203 = vmatpush3.xpose.msk.msra.mxu1 %vm409_vm1, %v2559_v1 }
0x1587   :  { %4204 = vmatprep.subr.msk.mxu1 %vm409_vm1, %v2558_v13 }
0x158a   :  { %4205 = vmatpush3.xpose.msk.msra.mxu1 %vm409_vm1, %v2558_v13 }
0x158b   :  { %4206 = vmatprep.subr.msk.mxu1 %vm409_vm1, %v2557_v15 }
0x158e   :  { %4207 = vmatpush3.xpose.msk.msra.mxu1 %vm409_vm1, %v2557_v15 }
0x158f   :  { %4257 = vmatprep.subr.mxu1 %v3499_v55 }
0x1591   :  { %4209 = vmatmul.mubr.msk.f32.vlgmr.msra.gmra.mxu1 %vm409_vm1, %v2456_v16 }
0x1592   :  { %4258 = vmatpush3.msra.mxu1 %v3499_v55 }
0x1593   :  { %4259 = vmatprep.subr.mxu1 %v3498_v56 }
0x1594   :  { %4260 = vmatpush3.msra.mxu1 %v3498_v56 }
0x1595   :  { %4261 = vmatprep.subr.mxu1 %v3497_v57 }
0x1596   :  { %4262 = vmatpush3.msra.mxu1 %v3497_v57 }
0x1597   :  { %4263 = vmatprep.subr.mxu1 %v3496_v58 }
0x1598   :  { %4264 = vmatpush3.msra.mxu1 %v3496_v58 }
0x1599   :  { %4265 = vmatprep.subr.mxu1 %v3495_v47 }
0x159a   :  { %4266 = vmatpush3.msra.mxu1 %v3495_v47 }
0x159b   :  { %4267 = vmatprep.subr.mxu1 %v3494_v59 }
0x159c   :  { %4268 = vmatpush3.msra.mxu1 %v3494_v59 }
0x159d   :  { %4269 = vmatprep.subr.mxu1 %v3493_v63 }
0x159e   :  { %4270 = vmatpush3.msra.mxu1 %v3493_v63 }
0x159f   :  { %4271 = vmatprep.subr.mxu1 %v3492_v0 }
0x15a0   :  { %4272 = vmatpush3.msra.mxu1 %v3492_v0 }
0x1651   :  { %v4210_v17 = vpop.f32.mrf.mxu1 }
0x1652   :  { %v2685_v23 = vadd.f32 %v4459_v18, %v4210_v17 }
0x1653   :  { %v2679_v24 = vpop.f32.mrf.mxu1 }
0x1654   :  { %v2680_v26 = vadd.f32 %v4460_v25, %v2679_v24  ;;  %v2691_v27 = vsel %vm1172_vm4, %v2685_v23, -inf }
0x1655   :  { %2692 = vmax.xlane.f32.xlu1 %v2691_v27  ;;  %v3533_v27 = vld [vmem:[%s5305_s21 + $0x30] sm:$0xff] }
0x1656   :  { %v2688_v28 = vsel %vm1172_vm4, %v2680_v26, -inf }
0x1657   :  { %2689 = vmax.xlane.f32.xlu0 %v2688_v28  ;;  %v3532_v28 = vld [vmem:[%s5305_s21 + $0x28] sm:$0xff] }
0x16de   :  { %v2693_v29 = vpop.xlane.xlu1 %2692 }
0x16df   :  { %v2695_v30 = vsub.f32 %v2685_v23, %v2693_v29  ;;  %v3531_v29 = vld [vmem:[%s5305_s21 + $0x20] sm:$0xff] }
0x16e0   :  { %v2690_v32 = vpop.xlane.xlu0 %2689 }
0x16e1   :  { %v2694_v34 = vsub.f32 %v2680_v26, %v2690_v32  ;;  %v2698_v35 = vmul.f32 1.442695, %v2695_v30  ;;  %v3534_v26 = vld [vmem:[%s5305_s21 + $0x38] sm:$0xff] }
0x16e2   :  { %v3546_v30 = vld [vmem:[%s4921_s5 + $0x78] sm:$0xff] }
0x16e3   :  { %v2696_v36 = vmul.f32 1.442695, %v2694_v34 }
0x16e5   :  { %4393 = vpow2.f32 %v2696_v36 }
0x16e6   :  { %4395 = vpow2.f32 %v2698_v35 }
0x16f2   :  { %v5203_v37 = vpop.eup %4393 }
0x16f3   :  { %v5205_v38 = vpop.eup %4395  ;;  %4231 = vmatprep.mubr.msk.f32.mxu0 %vm1172_vm4, %v5203_v37 }
0x16f4   :  { %4232 = vmatmul.mubr.msk.f32.vlgmr.msra.gmra.mxu0 %vm1172_vm4, %v5205_v38 }
0x16f5   :  { %4235 = vmatpush3.msra.mxu0 %v5152_v60 }
0x16f6   :  { %4236 = vmatprep.subr.mxu0 %v2575_v39 }
0x16f7   :  { %4237 = vmatpush3.msra.mxu0 %v2575_v39  ;;  %v3529_v39 = vld [vmem:[%s5306_s25 + $0x1] ss:$0 sm:$0xff] }
0x16f8   :  { %4238 = vmatprep.subr.mxu0 %v2574_v31 }
0x16f9   :  { %4239 = vmatpush3.msra.mxu0 %v2574_v31 }
0x16fa   :  { %4240 = vmatprep.subr.mxu0 %v2573_v33 }
0x16fb   :  { %4241 = vmatpush3.msra.mxu0 %v2573_v33 }
0x16fc   :  { %4242 = vmatprep.subr.mxu0 %v2572_v43 }
0x16fd   :  { %4243 = vmatpush3.msra.mxu0 %v2572_v43 }
0x16fe   :  { %4244 = vmatprep.subr.mxu0 %v2571_v45 }
0x16ff   :  { %4245 = vmatpush3.msra.mxu0 %v2571_v45 }
0x1700   :  { %4246 = vmatprep.subr.mxu0 %v2570_v2 }
0x1701   :  { %4247 = vmatpush3.msra.mxu0 %v2570_v2  ;;  %v3544_v2 = vld [vmem:[%s4921_s5 + $0x68] sm:$0xff] }
0x1702   :  { %4248 = vmatprep.subr.mxu0 %v2569_v49 }
0x1703   :  { %4249 = vmatpush3.msra.mxu0 %v2569_v49  ;;  %v3542_v49 = vld [vmem:[%s4921_s5 + $0x58] sm:$0xff] }
0x1704   :  { %4250 = vmatprep.subr.mxu0 %v2568_v52 }
0x1705   :  { %4251 = vmatpush3.msra.mxu0 %v2568_v52  ;;  %v3540_v52 = vld [vmem:[%s4921_s5 + $0x48] sm:$0xff] }
0x1706   :  { %4252 = vmatprep.subr.mxu0 %v2567_v54 }
0x1707   :  { %4253 = vmatpush3.msra.mxu0 %v2567_v54  ;;  %v3536_v54 = vld [vmem:[%s4948_s22 + $0x1] ss:$0 sm:$0xff] }
0x1708   :  { %4276 = vmatprep.subr.mxu0 %v3534_v26 }
0x17b4   :  { %v4233_v8 = vpop.f32.mrf.mxu0 }
0x17b5   :  { %4397 = vrcp.f32 %v4233_v8  ;;  %v3548_v8 = vld [vmem:[%s5308_s3 + $0x1] ss:$0 sm:$0xff] }
0x17b6   :  { %v2772_v60 = vpop.f32.mrf.mxu0 }
0x17b7   :  { %4399 = vrcp.f32 %v2772_v60 }
0x17c2   :  { %v4398_v61 = vpop.eup %4397 }
0x17c3   :  { %v2784_v21 = vmul.f32 %v4398_v61, %v5205_v38 }
0x17c4   :  { %v4400_v22 = vpop.eup %4399 }
0x17c5   :  { %v2783_v62 = vmul.f32 %v4400_v22, %v5203_v37 }
0x17c7   :  { %4254 = vmatprep.mubr.msk.f32.mxu0 %vm1172_vm4, %v2783_v62 }
0x17c8   :  { %4255 = vmatmul.mubr.msk.f32.vlgmr.msra.gmra.mxu0 %vm1172_vm4, %v2784_v21 }
0x17c9   :  { %4277 = vmatpush3.msra.mxu0 %v3534_v26 }
0x17ca   :  { %4278 = vmatprep.subr.mxu0 %v3533_v27 }
0x17cb   :  { %4279 = vmatpush3.msra.mxu0 %v3533_v27  ;;  %v3553_v27 = vld [vmem:[%s4971_s13 + $0x1] ss:$0 sm:$0xff] }
0x17cc   :  { %4280 = vmatprep.subr.mxu0 %v3532_v28 }
0x17cd   :  { %4281 = vmatpush3.msra.mxu0 %v3532_v28 }
0x17ce   :  { %4282 = vmatprep.subr.mxu0 %v3531_v29 }
0x17cf   :  { %4283 = vmatpush3.msra.mxu0 %v3531_v29 }
0x17d0   :  { %4287 = vmatprep.subr.mxu0 %v3546_v30 }
0x1888   :  { %v4256_v3 = vpop.f32.mrf.mxu0 }
0x188a   :  { %v2857_v5 = vpop.f32.mrf.mxu0 }
0x188b   :  { %4273 = vmatprep.mubr.msk.f32.mxu1 %vm409_vm1, %v2857_v5 }
0x188c   :  { %4274 = vmatmul.mubr.msk.f32.vlgmr.msra.gmra.mxu1 %vm409_vm1, %v4256_v3 }
0x194c   :  { %v4275_v7 = vpop.f32.mrf.mxu1 }
0x194d   :  { %v2950_v9 = vadd.f32 %v4275_v7, %v3524_v6 }
0x194e   :  { %v2944_v10 = vpop.f32.mrf.mxu1 }
0x194f   :  { %v2945_v11 = vadd.f32 %v3524_v6, %v2944_v10  ;;  %v2954_v4 = vadd.f32 %v2950_v9, %v5093_v20 }
0x1951   :  { %v2962_v1 = vsel %vm230_vm0, %v2954_v4, 0.0  ;;  %v2953_v12 = vadd.f32 %v2945_v11, %v5091_v19 }
0x1952   :  { %2963 = vadd.xlane.f32.xlu1 %v2962_v1 }
0x1953   :  { %v2959_v13 = vsel %vm230_vm0, %v2953_v12, 0.0 }
0x1954   :  { %2960 = vadd.xlane.f32.xlu0 %v2959_v13 }
0x19db   :  { %v2964_v14 = vpop.xlane.xlu1 %2963 }
0x19dc   :  { %v2966_v15 = vmul.f32 0.03125, %v2964_v14  ;;  %v3246_v14 = vld [vmem:[%s3372_s23 + $0x18] sm:$0xff] }
0x19dd   :  { %v2961_v16 = vpop.xlane.xlu0 %2960  ;;  %4306 = vmatprep.subr.mxu1 %v3246_v14 }
0x19de   :  { %v2968_v17 = vsub.f32 %v2954_v4, %v2966_v15  ;;  %v2965_v18 = vmul.f32 0.03125, %v2961_v16  ;;  %v3245_v15 = vld [vmem:[%s3372_s23 + $0x10] sm:$0xff]  ;;  %4307 = vmatpush3.msra.mxu1 %v3246_v14  ;;  %v3244_v16 = vld [vmem:[%s3372_s23 + $0x8] sm:$0xff] }
0x19df   :  { %4308 = vmatprep.subr.mxu1 %v3245_v15 }
0x19e0   :  { %v2967_v23 = vsub.f32 %v2953_v12, %v2965_v18  ;;  %v2970_v24 = vmul.f32 %v2968_v17, %v2968_v17  ;;  %4309 = vmatpush3.msra.mxu1 %v3245_v15 }
0x19e1   :  { %4310 = vmatprep.subr.mxu1 %v3244_v16 }
0x19e2   :  { %v2974_v20 = vsel %vm230_vm0, %v2970_v24, 0.0  ;;  %v2969_v25 = vmul.f32 %v2967_v23, %v2967_v23  ;;  %4311 = vmatpush3.msra.mxu1 %v3244_v16 }
0x19e3   :  { %2975 = vadd.xlane.f32.xlu1 %v2974_v20 }
0x19e4   :  { %v2971_v19 = vsel %vm230_vm0, %v2969_v25, 0.0 }
0x19e5   :  { %2972 = vadd.xlane.f32.xlu0 %v2971_v19 }
0x1a6c   :  { %v2976_v32 = vpop.xlane.xlu1 %2975 }
0x1a6d   :  { %v2978_v34 = vmul.f32 0.03125, %v2976_v32 }
0x1a6e   :  { %v2973_v35 = vpop.xlane.xlu0 %2972 }
0x1a6f   :  { %v2980_v36 = vadd.f32 1e-05, %v2978_v34  ;;  %v2977_v37 = vmul.f32 0.03125, %v2973_v35  ;;  %v3554_v34 = vld [vmem:[%s4976_s2 + $0x1] ss:$0 sm:$0xff] }
0x1a71   :  { %4401 = vrsqrt.f32 %v2980_v36  ;;  %v2979_v38 = vadd.f32 1e-05, %v2977_v37 }
0x1a73   :  { %4403 = vrsqrt.f32 %v2979_v38  ;;  %v3555_v38 = vld [vmem:[%s3373_s16] ss:$0 sm:$0xff] }
0x1a7e   :  { %v4402_v51 = vpop.eup %4401 }
0x1a7f   :  { %v2984_v40 = vmul.f32 %v4402_v51, %v2968_v17  ;;  %v3243_v17 = vld [vmem:[%s3372_s23] sm:$0xff] }
0x1a80   :  { %v4404_v31 = vpop.eup %4403  ;;  %4312 = vmatprep.subr.mxu1 %v3243_v17 }
0x1a81   :  { %v2983_v41 = vmul.f32 %v4404_v31, %v2967_v23  ;;  %v2992_v33 = vmul.f32 %v3529_v39, %v2984_v40  ;;  %4313 = vmatpush3.msra.mxu1 %v3243_v17 }
0x1a83   :  { %v2991_v43 = vmul.f32 %v3529_v39, %v2983_v41  ;;  %v3000_v45 = vadd.f32 %v3530_v42, %v2992_v33 }
0x1a85   :  { %v2999_v44 = vadd.f32 %v3530_v42, %v2991_v43 }
0x1a87   :  { %4284 = vmatprep.mubr.msk.f32.mxu0 %vm230_vm0, %v2999_v44 }
0x1a88   :  { %4285 = vmatmul.mubr.msk.f32.vlgmr.msra.gmra.mxu0 %vm230_vm0, %v3000_v45 }
0x1a89   :  { %4288 = vmatpush3.msra.mxu0 %v3546_v30 }
0x1a8a   :  { %4289 = vmatprep.subr.mxu0 %v3545_v46 }
0x1a8b   :  { %4290 = vmatpush3.msra.mxu0 %v3545_v46 }
0x1a8c   :  { %4291 = vmatprep.subr.mxu0 %v3544_v2 }
0x1a8d   :  { %4292 = vmatpush3.msra.mxu0 %v3544_v2 }
0x1a8e   :  { %4293 = vmatprep.subr.mxu0 %v3543_v48 }
0x1a8f   :  { %4294 = vmatpush3.msra.mxu0 %v3543_v48 }
0x1a90   :  { %4295 = vmatprep.subr.mxu0 %v3542_v49 }
0x1a91   :  { %4296 = vmatpush3.msra.mxu0 %v3542_v49 }
0x1a92   :  { %4297 = vmatprep.subr.mxu0 %v3541_v50 }
0x1a93   :  { %4298 = vmatpush3.msra.mxu0 %v3541_v50 }
0x1a94   :  { %4299 = vmatprep.subr.mxu0 %v3540_v52 }
0x1a95   :  { %4300 = vmatpush3.msra.mxu0 %v3540_v52 }
0x1a96   :  { %4301 = vmatprep.subr.mxu0 %v3539_v53 }
0x1a97   :  { %4302 = vmatpush3.msra.mxu0 %v3539_v53 }
0x1b48   :  { %v4286_v55 = vpop.f32.mrf.mxu0 }
0x1b49   :  { %v3092_v56 = vadd.f32 %v4286_v55, %v3536_v54 }
0x1b4a   :  { %v3086_v57 = vpop.f32.mrf.mxu0 }
0x1b4b   :  { %v3087_v58 = vadd.f32 %v3536_v54, %v3086_v57  ;;  %v3096_v59 = vmax.f32 %v3092_v56, 0.0 }
0x1b4d   :  { %v3095_v47 = vmax.f32 %v3087_v58, 0.0 }
0x1b4f   :  { %4303 = vmatprep.mubr.msk.f32.mxu0 %vm409_vm1, %v3095_v47 }
0x1b50   :  { %4304 = vmatmul.mubr.msk.f32.vlgmr.msra.gmra.mxu0 %vm409_vm1, %v3096_v59 }
0x1c10   :  { %v4305_v60 = vpop.f32.mrf.mxu0 }
0x1c11   :  { %v3192_v61 = vadd.f32 %v4305_v60, %v3548_v8 }
0x1c12   :  { %v3186_v22 = vpop.f32.mrf.mxu0 }
0x1c13   :  { %v3187_v62 = vadd.f32 %v3548_v8, %v3186_v22  ;;  %v3196_v21 = vadd.f32 %v3192_v61, %v3000_v45 }
0x1c15   :  { %v3204_v63 = vsel %vm230_vm0, %v3196_v21, 0.0  ;;  %v3195_v0 = vadd.f32 %v3187_v62, %v2999_v44 }
0x1c16   :  { %3205 = vadd.xlane.f32.xlu1 %v3204_v63 }
0x1c17   :  { %v3201_v3 = vsel %vm230_vm0, %v3195_v0, 0.0 }
0x1c18   :  { %3202 = vadd.xlane.f32.xlu0 %v3201_v3 }
0x1c9f   :  { %v3206_v5 = vpop.xlane.xlu1 %3205 }
0x1ca0   :  { %v3208_v6 = vmul.f32 0.03125, %v3206_v5 }
0x1ca1   :  { %v3203_v7 = vpop.xlane.xlu0 %3202 }
0x1ca2   :  { %v3210_v9 = vsub.f32 %v3196_v21, %v3208_v6  ;;  %v3207_v10 = vmul.f32 0.03125, %v3203_v7 }
0x1ca4   :  { %v3209_v11 = vsub.f32 %v3195_v0, %v3207_v10  ;;  %v3212_v4 = vmul.f32 %v3210_v9, %v3210_v9 }
0x1ca6   :  { %v3216_v1 = vsel %vm230_vm0, %v3212_v4, 0.0  ;;  %v3211_v12 = vmul.f32 %v3209_v11, %v3209_v11 }
0x1ca7   :  { %3217 = vadd.xlane.f32.xlu1 %v3216_v1 }
0x1ca8   :  { %v3213_v13 = vsel %vm230_vm0, %v3211_v12, 0.0 }
0x1ca9   :  { %3214 = vadd.xlane.f32.xlu0 %v3213_v13 }
0x1d30   :  { %v3218_v18 = vpop.xlane.xlu1 %3217 }
0x1d31   :  { %v3220_v23 = vmul.f32 0.03125, %v3218_v18 }
0x1d32   :  { %v3215_v24 = vpop.xlane.xlu0 %3214 }
0x1d33   :  { %v3222_v20 = vadd.f32 1e-05, %v3220_v23  ;;  %v3219_v25 = vmul.f32 0.03125, %v3215_v24 }
0x1d35   :  { %4405 = vrsqrt.f32 %v3222_v20  ;;  %v3221_v19 = vadd.f32 1e-05, %v3219_v25 }
0x1d37   :  { %4407 = vrsqrt.f32 %v3221_v19 }
0x1d42   :  { %v4406_v26 = vpop.eup %4405 }
0x1d43   :  { %v3226_v28 = vmul.f32 %v4406_v26, %v3210_v9 }
0x1d44   :  { %v4408_v29 = vpop.eup %4407 }
0x1d45   :  { %v3225_v30 = vmul.f32 %v4408_v29, %v3209_v11  ;;  %v3234_v32 = vmul.f32 %v3553_v27, %v3226_v28 }
0x1d47   :  { %v3233_v35 = vmul.f32 %v3553_v27, %v3225_v30  ;;  %v3242_v37 = vadd.f32 %v3554_v34, %v3234_v32 }
0x1d49   :  { %v3241_v36 = vadd.f32 %v3554_v34, %v3233_v35 }
0x1d4b   :  { %4314 = vmatprep.mubr.msk.f32.mxu1 %vm230_vm0, %v3241_v36 }
0x1d4c   :  { %4315 = vmatmul.mubr.msk.f32.vlgmr.msra.gmra.mxu1 %vm230_vm0, %v3242_v37 }
0x1e0c   :  { %v4316_v51 = vpop.f32.mrf.mxu1 }
0x1e0d   :  { %v3332_v39 = vadd.f32 %v4316_v51, %v3555_v38 }
0x1e0e   :  { %v3326_v40 = vpop.f32.mrf.mxu1 }
0x1e0f   :  { %3336 = vst [vmem:[%s3374_s19 + $0x8] sm:$0xff] %v3332_v39  ;;  %v3327_v31 = vadd.f32 %v3555_v38, %v3326_v40 }
0x1e11   :  { %3335 = vst [vmem:[%s3374_s19] sm:$0xff] %v3327_v31 }

</bundles_post_ra>
